<compile_context>
chip_gen: v6e
topology: v6e:2x2x1
jax: 0.10.0
libtpu: 0.0.40
codegen_flags: <defaults>
</compile_context>

<pallas_src>
import functools

import jax
import jax.numpy as jnp
from jax import lax
from jax.experimental import pallas as pl
from jax.experimental.pallas import tpu as pltpu

HIDDEN = 32
LOOK_BACK = 5
NUM_LAYERS = 2
HEAD_DIM = 16
H2 = 2 * HIDDEN                        # 64: packed (fwd|rev) state width
GATE_COLS = 4 * H2                     # 256: [i|f|o|g] x [fwd|rev]
W_IN_COLS = 2 * GATE_COLS              # 512: fwd-time-stream | rev-time-stream
PAD_IN0 = ((LOOK_BACK + 7) // 8) * 8   # layer-0 input padded 5 -> 8

# LSTM weight-slab row layout (f32, 512 columns wide):
W_IN0_ROW0 = 0                         # rows   0:8    layer-0 input weights
W_IN1_ROW0 = PAD_IN0                   # rows   8:72   layer-1 input weights
WHH_ROW0 = PAD_IN0 + H2                # rows  72:136  W_hh (cols 0:256 L0, 256:512 L1)
BIAS_ROW = PAD_IN0 + 2 * H2            # row  136      biases (cols 0:256 L0, 256:512 L1)
LSTM_SLAB_ROWS = BIAS_ROW + 8          # 144 (padded to a sublane multiple)
HEAD_SLAB_SHAPE = (72, 128)            # rows 0:64 W1^T, 64 b1, 65 W2, 66 b2

_VMEM = pl.BlockSpec(memory_space=pltpu.MemorySpace.VMEM)

# Gate-column order [i | f | o | g], each 2H wide ([fwd 32 | rev 32]).  The
# three sigmoid gates come first and their weight columns carry a 0.5 pre-scale
# so sigmoid(x) = 0.5*(1 + tanh(x/2)) needs only the shared 256-lane tanh.
_GATE_SLOT = {"i": 0, "f": 1, "o": 2, "g": 3}
_PT_ROW = {"i": 0, "f": 1, "g": 2, "o": 3}           # PyTorch row order [i,f,g,o]
_GATE_SCALE = {"i": 0.5, "f": 0.5, "o": 0.5, "g": 1.0}


# --------------------------------------------------------------------------
# Fused Pallas kernel: 2 BiLSTM layers + head, batched, one invocation
# --------------------------------------------------------------------------
def _fused_kernel(x_ref, lstm_ref, head_ref, out_ref,
                  xw_sc, pre_sc, hseq_sc, feats0_sc, feats1_sc,
                  *, seq_len, batch):
    """Shapes (all f32, time-major rows: row t*B + b):
      x_ref    : (T*B, 8)        padded input
      lstm_ref : (144, 512)      packed LSTM weight slab (see row layout above)
      head_ref : (72, 128)       packed head slab
      out_ref  : (T*B, 1)
      xw_sc    : (T*B, 512)      hoisted input projection (fwd | rev streams)
      pre_sc   : (T*B, 256)      fwd + time-reversed rev + bias
      hseq_sc  : (T*B, 64)       per-step packed hidden history
      feats*_sc: (T*B, 64)       time-aligned (fwd|rev) features per layer
    """
    T, B = seq_len, batch
    H = HIDDEN
    G = GATE_COLS

    def run_layer(inp, w_row0, w_rows, col0, out_feats_ref):
        w_in = lstm_ref[pl.ds(w_row0, w_rows), :]                  # (w_rows, 512)
        whh = lstm_ref[pl.ds(WHH_ROW0, H2), pl.ds(col0, G)]        # (64, 256) block-diag
        bias = lstm_ref[pl.ds(BIAS_ROW, 1), pl.ds(col0, G)]        # (1, 256)

        # Hoisted input projection for all timesteps, both directions at once.
        xw_sc[...] = jnp.dot(inp, w_in, preferred_element_type=jnp.float32)

        # Pre-add the time-reversed reverse-stream projection and the bias so
        # the serial recurrence only does pre_x[s] + h @ W_hh per step.
        for s in range(T):
            pre_sc[pl.ds(s * B, B), :] = (
                xw_sc[pl.ds(s * B, B), pl.ds(0, G)]
                + xw_sc[pl.ds((T - 1 - s) * B, B), pl.ds(G, G)]
                + bias)

        def step(s, carry):
            h, c = carry                                           # (B, 64) each, vreg-resident
            hh = jnp.dot(h, whh, preferred_element_type=jnp.float32)   # (B, 256)
            row = pl.multiple_of(s * B, B)
            pre = pre_sc[pl.ds(row, B), :] + hh
            t_all = jnp.tanh(pre)                  # ONE EUP pass over all 256 gate cols
            sig = t_all * 0.5 + 0.5                # sigmoid for [i | f | o] (weights pre-scaled)
            i_g = sig[:, 0:H2]
            f_g = sig[:, H2:2 * H2]
            o_g = sig[:, 2 * H2:3 * H2]
            g_g = t_all[:, 3 * H2:4 * H2]
            c_new = f_g * c + i_g * g_g                            # (B, 64)
            h_new = o_g * jnp.tanh(c_new)                          # (B, 64)
            hseq_sc[pl.ds(row, B), :] = h_new                      # one store per step
            return h_new, c_new

        h0 = jnp.zeros((B, H2), jnp.float32)
        c0 = jnp.zeros((B, H2), jnp.float32)
        lax.fori_loop(0, T, step, (h0, c0), unroll=True)

        # Re-align into time-ordered (fwd|rev) features, outside the serial loop:
        #   feats[t, 0:32]  = fwd hidden produced at step t
        #   feats[t, 32:64] = rev hidden produced at step T-1-t
        out_feats_ref[...] = hseq_sc[...]
        for s in range(T):
            out_feats_ref[pl.ds(s * B, B), pl.ds(H, H)] = \
                hseq_sc[pl.ds((T - 1 - s) * B, B), pl.ds(H, H)]

    run_layer(x_ref[...], W_IN0_ROW0, PAD_IN0, 0, feats0_sc)
    run_layer(feats0_sc[...], W_IN1_ROW0, H2, GATE_COLS, feats1_sc)

    # Head: logits = tanh(feats @ W1^T + b1) @ W2^T + b2.  Final 16 -> 1 step is
    # a VPU multiply + lane reduce instead of an N=1 MXU matmul.
    feats = feats1_sc[...]
    w1 = head_ref[pl.ds(0, H2), pl.ds(0, HEAD_DIM)]          # (64, 16)
    b1 = head_ref[pl.ds(H2, 1), pl.ds(0, HEAD_DIM)]          # (1, 16)
    w2 = head_ref[pl.ds(H2 + 1, 1), pl.ds(0, HEAD_DIM)]      # (1, 16)
    b2 = head_ref[pl.ds(H2 + 2, 1), pl.ds(0, 1)]             # (1, 1)
    hid = jnp.tanh(jnp.dot(feats, w1, preferred_element_type=jnp.float32) + b1)
    out_ref[...] = jnp.sum(hid * w2, axis=-1, keepdims=True) + b2


# --------------------------------------------------------------------------
# One-time weight packing (outside the per-inference path)
# --------------------------------------------------------------------------
def _spread_ih(wih, direction, d_pad):
    """wih: (4H, D_in) PyTorch layout [i,f,g,o]; returns (d_pad, 256) with gate
    columns in [i|f|o|g] order, this direction's 32-lane slot populated, and the
    sigmoid gates pre-scaled by 0.5."""
    H = HIDDEN
    d_in = wih.shape[1]
    wt = jnp.pad(wih.T.astype(jnp.float32), ((0, d_pad - d_in), (0, 0)))
    out = jnp.zeros((d_pad, GATE_COLS), jnp.float32)
    for name, slot in _GATE_SLOT.items():
        src = wt[:, _PT_ROW[name] * H:(_PT_ROW[name] + 1) * H] * _GATE_SCALE[name]
        col0 = slot * 2 * H + direction * H
        out = out.at[:, col0:col0 + H].set(src)
    return out


def _pack_whh(whh_f, whh_r):
    """Block-diagonal recurrent weights: rows 0:32 = h_fwd, rows 32:64 = h_rev,
    mapped into their direction's gate-column slots (0.5-scaled sigmoid gates)."""
    H = HIDDEN
    blk = jnp.zeros((H2, GATE_COLS), jnp.float32)
    for d, whh in enumerate((whh_f, whh_r)):
        wt = whh.T.astype(jnp.float32)                     # (H, 4H)
        for name, slot in _GATE_SLOT.items():
            src = wt[:, _PT_ROW[name] * H:(_PT_ROW[name] + 1) * H] * _GATE_SCALE[name]
            col0 = slot * 2 * H + d * H
            blk = blk.at[d * H:(d + 1) * H, col0:col0 + H].set(src)
    return blk


def _pack_bias(pf, pr):
    H = HIDDEN
    bias = jnp.zeros((1, GATE_COLS), jnp.float32)
    for d, p in enumerate((pf, pr)):
        b = (p["b_ih"] + p["b_hh"]).astype(jnp.float32)
        for name, slot in _GATE_SLOT.items():
            src = b[_PT_ROW[name] * H:(_PT_ROW[name] + 1) * H] * _GATE_SCALE[name]
            col0 = slot * 2 * H + d * H
            bias = bias.at[0, col0:col0 + H].set(src)
    return bias


def prepare_params(params):
    """Pack raw (PyTorch-layout) params into two kernel-ready slabs. Call once."""
    slab = jnp.zeros((LSTM_SLAB_ROWS, W_IN_COLS), jnp.float32)
    for layer in range(NUM_LAYERS):
        d_pad = PAD_IN0 if layer == 0 else H2
        row0 = W_IN0_ROW0 if layer == 0 else W_IN1_ROW0
        pf = params["lstm"][(layer, 0)]
        pr = params["lstm"][(layer, 1)]
        w_in = jnp.concatenate([_spread_ih(pf["wih"], 0, d_pad),
                                _spread_ih(pr["wih"], 1, d_pad)], axis=1)
        slab = slab.at[row0:row0 + d_pad, :].set(w_in)
        slab = slab.at[WHH_ROW0:WHH_ROW0 + H2,
                       layer * GATE_COLS:(layer + 1) * GATE_COLS].set(
            _pack_whh(pf["whh"], pr["whh"]))
        slab = slab.at[BIAS_ROW,
                       layer * GATE_COLS:(layer + 1) * GATE_COLS].set(
            _pack_bias(pf, pr)[0])

    head = jnp.zeros(HEAD_SLAB_SHAPE, jnp.float32)
    head = head.at[0:H2, 0:HEAD_DIM].set(params["w1"].T.astype(jnp.float32))
    head = head.at[H2, 0:HEAD_DIM].set(params["b1"].astype(jnp.float32))
    head = head.at[H2 + 1, 0:HEAD_DIM].set(
        params["w2"].reshape(-1).astype(jnp.float32))
    head = head.at[H2 + 2, 0].set(params["b2"].reshape(())[()].astype(jnp.float32))
    return (slab, head)


# --------------------------------------------------------------------------
# Forward wrapper: a single pallas_call, everything VMEM-resident
# --------------------------------------------------------------------------
@jax.jit
def lstm_predictor_forward(x, packed):
    """x: (B, T, LOOK_BACK) -> (B, T, 1).  Each sequence is processed exactly as
    LSTMPredictor.forward (eval mode) processes a single (T, LOOK_BACK) input."""
    lstm_slab, head_slab = packed
    B, T, _ = x.shape
    xp = jnp.pad(x.astype(jnp.float32),
                 ((0, 0), (0, 0), (0, PAD_IN0 - LOOK_BACK)))
    x_tm = jnp.transpose(xp, (1, 0, 2)).reshape(T * B, PAD_IN0)   # time-major rows
    kernel = functools.partial(_fused_kernel, seq_len=T, batch=B)
    out_tm = pl.pallas_call(
        kernel,
        out_shape=jax.ShapeDtypeStruct((T * B, 1), jnp.float32),
        in_specs=[_VMEM, _VMEM, _VMEM],
        out_specs=_VMEM,
        scratch_shapes=[
            pltpu.VMEM((T * B, W_IN_COLS), jnp.float32),   # hoisted projections
            pltpu.VMEM((T * B, GATE_COLS), jnp.float32),   # pre-added gate inputs
            pltpu.VMEM((T * B, H2), jnp.float32),          # per-step hidden history
            pltpu.VMEM((T * B, H2), jnp.float32),          # layer-0 features
            pltpu.VMEM((T * B, H2), jnp.float32),          # layer-1 features
        ],
    )(x_tm, lstm_slab, head_slab)
    return out_tm.reshape(T, B, 1).transpose(1, 0, 2)


# --------------------------------------------------------------------------
# Deterministic parameter init (PyTorch-style uniform bounds)
# --------------------------------------------------------------------------
def init_params(key):
    params = {"lstm": {}}
    k = 1.0 / jnp.sqrt(jnp.float32(HIDDEN))
    keys = jax.random.split(key, NUM_LAYERS * 2 * 4 + 4)
    idx = 0
    for layer in range(NUM_LAYERS):
        d_in = LOOK_BACK if layer == 0 else H2
        for direction in range(2):
            wih = jax.random.uniform(keys[idx], (4 * HIDDEN, d_in),
                                     minval=-k, maxval=k); idx += 1
            whh = jax.random.uniform(keys[idx], (4 * HIDDEN, HIDDEN),
                                     minval=-k, maxval=k); idx += 1
            b_ih = jax.random.uniform(keys[idx], (4 * HIDDEN,),
                                      minval=-k, maxval=k); idx += 1
            b_hh = jax.random.uniform(keys[idx], (4 * HIDDEN,),
                                      minval=-k, maxval=k); idx += 1
            params["lstm"][(layer, direction)] = dict(
                wih=wih, whh=whh, b_ih=b_ih, b_hh=b_hh)
    k1 = 1.0 / jnp.sqrt(jnp.float32(H2))
    k2 = 1.0 / jnp.sqrt(jnp.float32(HEAD_DIM))
    params["w1"] = jax.random.uniform(keys[idx], (HEAD_DIM, H2),
                                      minval=-k1, maxval=k1); idx += 1
    params["b1"] = jax.random.uniform(keys[idx], (HEAD_DIM,),
                                      minval=-k1, maxval=k1); idx += 1
    params["w2"] = jax.random.uniform(keys[idx], (1, HEAD_DIM),
                                      minval=-k2, maxval=k2); idx += 1
    params["b2"] = jax.random.uniform(keys[idx], (1,),
                                      minval=-k2, maxval=k2); idx += 1
    return params


# --------------------------------------------------------------------------
# Pure-JAX reference (mirrors PyTorch nn.LSTM eval-mode semantics, 1 sequence)
# --------------------------------------------------------------------------
def ref_forward(x, params):
    feats = x.astype(jnp.float32)
    H = HIDDEN
    for layer in range(NUM_LAYERS):
        outs = []
        for direction in range(2):
            p = params["lstm"][(layer, direction)]
            xin = feats if direction == 0 else feats[::-1]
            h = jnp.zeros((H,), jnp.float32)
            c = jnp.zeros((H,), jnp.float32)
            hs = []
            for t in range(xin.shape[0]):
                pre = p["wih"] @ xin[t] + p["b_ih"] + p["whh"] @ h + p["b_hh"]
                i_g = jax.nn.sigmoid(pre[0:H])
                f_g = jax.nn.sigmoid(pre[H:2 * H])
                g_g = jnp.tanh(pre[2 * H:3 * H])
                o_g = jax.nn.sigmoid(pre[3 * H:4 * H])
                c = f_g * c + i_g * g_g
                h = o_g * jnp.tanh(c)
                hs.append(h)
            h_seq = jnp.stack(hs)
            if direction == 1:
                h_seq = h_seq[::-1]
            outs.append(h_seq)
        feats = jnp.concatenate(outs, axis=1)
    hid = jnp.tanh(feats @ params["w1"].T + params["b1"])
    return hid @ params["w2"].T + params["b2"]


if __name__ == "__main__":
    key = jax.random.PRNGKey(0)
    k_x, k_p = jax.random.split(key)
    B, T = 8, 8                              # batch of sequences, sequence length
    x = jax.random.normal(k_x, (B, T, LOOK_BACK), dtype=jnp.float32)
    params = init_params(k_p)

    # TODO(synk): batch_norm / layer_norm are declared but unused in the PyTorch
    # forward(); LSTM dropout is inactive at inference -> intentionally not emitted.
    packed = prepare_params(params)          # one-time weight packing

    out = lstm_predictor_forward(x, packed)
    out = jax.block_until_ready(out)

    ref = jnp.stack([ref_forward(x[b], params) for b in range(B)])
    assert out.shape == (B, T, 1), out.shape
    assert jnp.allclose(out, ref, atol=2e-4, rtol=2e-4), (
        jnp.max(jnp.abs(out - ref)))
    print("KERNEL_OK")
</pallas_src>

<mosaic_0001>
module attributes {stable_mosaic.version = 11 : i64} {
  func.func @_fused_kernel(%arg0: memref<64x8xf32, #tpu.memory_space<vmem>>, %arg1: memref<144x512xf32, #tpu.memory_space<vmem>>, %arg2: memref<72x128xf32, #tpu.memory_space<vmem>>, %arg3: memref<64x1xf32, #tpu.memory_space<vmem>>, %arg4: memref<64x512xf32, #tpu.memory_space<vmem>>, %arg5: memref<64x256xf32, #tpu.memory_space<vmem>>, %arg6: memref<64x64xf32, #tpu.memory_space<vmem>>, %arg7: memref<64x64xf32, #tpu.memory_space<vmem>>, %arg8: memref<64x64xf32, #tpu.memory_space<vmem>>) attributes {dimension_semantics = [], scalar_prefetch = 0 : i64, scratch_operands = 5 : i64, tpu.core_type = #tpu.core_type<tc>} {
    %c0 = arith.constant 0 : index
    %c0_0 = arith.constant 0 : index
    %0 = vector.load %arg0[%c0, %c0_0] : memref<64x8xf32, #tpu.memory_space<vmem>>, vector<64x8xf32>
    %c0_1 = arith.constant 0 : index
    %c0_2 = arith.constant 0 : index
    %1 = vector.load %arg1[%c0_1, %c0_2] : memref<144x512xf32, #tpu.memory_space<vmem>>, vector<8x512xf32>
    %c72 = arith.constant 72 : index
    %c0_3 = arith.constant 0 : index
    %2 = vector.load %arg1[%c72, %c0_3] : memref<144x512xf32, #tpu.memory_space<vmem>>, vector<64x256xf32>
    %c136 = arith.constant 136 : index
    %c0_4 = arith.constant 0 : index
    %3 = vector.load %arg1[%c136, %c0_4] : memref<144x512xf32, #tpu.memory_space<vmem>>, vector<1x256xf32>
    %cst = arith.constant dense<0.000000e+00> : vector<64x512xf32>
    %4 = tpu.matmul %0, %1, %cst {dimension_numbers = #tpu.dot_dimension_numbers<[1], [0], [0], [1], [0, 0, 1, 1], [], []>} : vector<64x8xf32>, vector<8x512xf32>, vector<64x512xf32> -> vector<64x512xf32>
    %c0_5 = arith.constant 0 : index
    %c0_6 = arith.constant 0 : index
    %5 = vector.load %arg4[%c0_5, %c0_6] : memref<64x512xf32, #tpu.memory_space<vmem>>, vector<64x512xf32>
    tpu.vector_store %arg4[%c0_5, %c0_6], %4 {strides = array<i32>} : memref<64x512xf32, #tpu.memory_space<vmem>>, vector<64x512xf32>,
    %c0_7 = arith.constant 0 : index
    %c0_8 = arith.constant 0 : index
    %6 = vector.load %arg4[%c0_7, %c0_8] : memref<64x512xf32, #tpu.memory_space<vmem>>, vector<8x256xf32>
    %c56 = arith.constant 56 : index
    %c256 = arith.constant 256 : index
    %7 = vector.load %arg4[%c56, %c256] : memref<64x512xf32, #tpu.memory_space<vmem>>, vector<8x256xf32>
    %8 = arith.addf %6, %7 : vector<8x256xf32>
    %9 = vector.broadcast %3 : vector<1x256xf32> to vector<8x256xf32>
    %10 = arith.addf %8, %9 : vector<8x256xf32>
    %c0_9 = arith.constant 0 : index
    %c0_10 = arith.constant 0 : index
    %11 = vector.load %arg5[%c0_9, %c0_10] : memref<64x256xf32, #tpu.memory_space<vmem>>, vector<8x256xf32>
    tpu.vector_store %arg5[%c0_9, %c0_10], %10 {strides = array<i32>} : memref<64x256xf32, #tpu.memory_space<vmem>>, vector<8x256xf32>,
    %c8 = arith.constant 8 : index
    %c0_11 = arith.constant 0 : index
    %12 = vector.load %arg4[%c8, %c0_11] : memref<64x512xf32, #tpu.memory_space<vmem>>, vector<8x256xf32>
    %c48 = arith.constant 48 : index
    %c256_12 = arith.constant 256 : index
    %13 = vector.load %arg4[%c48, %c256_12] : memref<64x512xf32, #tpu.memory_space<vmem>>, vector<8x256xf32>
    %14 = arith.addf %12, %13 : vector<8x256xf32>
    %15 = vector.broadcast %3 : vector<1x256xf32> to vector<8x256xf32>
    %16 = arith.addf %14, %15 : vector<8x256xf32>
    %c8_13 = arith.constant 8 : index
    %c0_14 = arith.constant 0 : index
    %17 = vector.load %arg5[%c8_13, %c0_14] : memref<64x256xf32, #tpu.memory_space<vmem>>, vector<8x256xf32>
    tpu.vector_store %arg5[%c8_13, %c0_14], %16 {strides = array<i32>} : memref<64x256xf32, #tpu.memory_space<vmem>>, vector<8x256xf32>,
    %c16 = arith.constant 16 : index
    %c0_15 = arith.constant 0 : index
    %18 = vector.load %arg4[%c16, %c0_15] : memref<64x512xf32, #tpu.memory_space<vmem>>, vector<8x256xf32>
    %c40 = arith.constant 40 : index
    %c256_16 = arith.constant 256 : index
    %19 = vector.load %arg4[%c40, %c256_16] : memref<64x512xf32, #tpu.memory_space<vmem>>, vector<8x256xf32>
    %20 = arith.addf %18, %19 : vector<8x256xf32>
    %21 = vector.broadcast %3 : vector<1x256xf32> to vector<8x256xf32>
    %22 = arith.addf %20, %21 : vector<8x256xf32>
    %c16_17 = arith.constant 16 : index
    %c0_18 = arith.constant 0 : index
    %23 = vector.load %arg5[%c16_17, %c0_18] : memref<64x256xf32, #tpu.memory_space<vmem>>, vector<8x256xf32>
    tpu.vector_store %arg5[%c16_17, %c0_18], %22 {strides = array<i32>} : memref<64x256xf32, #tpu.memory_space<vmem>>, vector<8x256xf32>,
    %c24 = arith.constant 24 : index
    %c0_19 = arith.constant 0 : index
    %24 = vector.load %arg4[%c24, %c0_19] : memref<64x512xf32, #tpu.memory_space<vmem>>, vector<8x256xf32>
    %c32 = arith.constant 32 : index
    %c256_20 = arith.constant 256 : index
    %25 = vector.load %arg4[%c32, %c256_20] : memref<64x512xf32, #tpu.memory_space<vmem>>, vector<8x256xf32>
    %26 = arith.addf %24, %25 : vector<8x256xf32>
    %27 = vector.broadcast %3 : vector<1x256xf32> to vector<8x256xf32>
    %28 = arith.addf %26, %27 : vector<8x256xf32>
    %c24_21 = arith.constant 24 : index
    %c0_22 = arith.constant 0 : index
    %29 = vector.load %arg5[%c24_21, %c0_22] : memref<64x256xf32, #tpu.memory_space<vmem>>, vector<8x256xf32>
    tpu.vector_store %arg5[%c24_21, %c0_22], %28 {strides = array<i32>} : memref<64x256xf32, #tpu.memory_space<vmem>>, vector<8x256xf32>,
    %c32_23 = arith.constant 32 : index
    %c0_24 = arith.constant 0 : index
    %30 = vector.load %arg4[%c32_23, %c0_24] : memref<64x512xf32, #tpu.memory_space<vmem>>, vector<8x256xf32>
    %c24_25 = arith.constant 24 : index
    %c256_26 = arith.constant 256 : index
    %31 = vector.load %arg4[%c24_25, %c256_26] : memref<64x512xf32, #tpu.memory_space<vmem>>, vector<8x256xf32>
    %32 = arith.addf %30, %31 : vector<8x256xf32>
    %33 = vector.broadcast %3 : vector<1x256xf32> to vector<8x256xf32>
    %34 = arith.addf %32, %33 : vector<8x256xf32>
    %c32_27 = arith.constant 32 : index
    %c0_28 = arith.constant 0 : index
    %35 = vector.load %arg5[%c32_27, %c0_28] : memref<64x256xf32, #tpu.memory_space<vmem>>, vector<8x256xf32>
    tpu.vector_store %arg5[%c32_27, %c0_28], %34 {strides = array<i32>} : memref<64x256xf32, #tpu.memory_space<vmem>>, vector<8x256xf32>,
    %c40_29 = arith.constant 40 : index
    %c0_30 = arith.constant 0 : index
    %36 = vector.load %arg4[%c40_29, %c0_30] : memref<64x512xf32, #tpu.memory_space<vmem>>, vector<8x256xf32>
    %c16_31 = arith.constant 16 : index
    %c256_32 = arith.constant 256 : index
    %37 = vector.load %arg4[%c16_31, %c256_32] : memref<64x512xf32, #tpu.memory_space<vmem>>, vector<8x256xf32>
    %38 = arith.addf %36, %37 : vector<8x256xf32>
    %39 = vector.broadcast %3 : vector<1x256xf32> to vector<8x256xf32>
    %40 = arith.addf %38, %39 : vector<8x256xf32>
    %c40_33 = arith.constant 40 : index
    %c0_34 = arith.constant 0 : index
    %41 = vector.load %arg5[%c40_33, %c0_34] : memref<64x256xf32, #tpu.memory_space<vmem>>, vector<8x256xf32>
    tpu.vector_store %arg5[%c40_33, %c0_34], %40 {strides = array<i32>} : memref<64x256xf32, #tpu.memory_space<vmem>>, vector<8x256xf32>,
    %c48_35 = arith.constant 48 : index
    %c0_36 = arith.constant 0 : index
    %42 = vector.load %arg4[%c48_35, %c0_36] : memref<64x512xf32, #tpu.memory_space<vmem>>, vector<8x256xf32>
    %c8_37 = arith.constant 8 : index
    %c256_38 = arith.constant 256 : index
    %43 = vector.load %arg4[%c8_37, %c256_38] : memref<64x512xf32, #tpu.memory_space<vmem>>, vector<8x256xf32>
    %44 = arith.addf %42, %43 : vector<8x256xf32>
    %45 = vector.broadcast %3 : vector<1x256xf32> to vector<8x256xf32>
    %46 = arith.addf %44, %45 : vector<8x256xf32>
    %c48_39 = arith.constant 48 : index
    %c0_40 = arith.constant 0 : index
    %47 = vector.load %arg5[%c48_39, %c0_40] : memref<64x256xf32, #tpu.memory_space<vmem>>, vector<8x256xf32>
    tpu.vector_store %arg5[%c48_39, %c0_40], %46 {strides = array<i32>} : memref<64x256xf32, #tpu.memory_space<vmem>>, vector<8x256xf32>,
    %c56_41 = arith.constant 56 : index
    %c0_42 = arith.constant 0 : index
    %48 = vector.load %arg4[%c56_41, %c0_42] : memref<64x512xf32, #tpu.memory_space<vmem>>, vector<8x256xf32>
    %c0_43 = arith.constant 0 : index
    %c256_44 = arith.constant 256 : index
    %49 = vector.load %arg4[%c0_43, %c256_44] : memref<64x512xf32, #tpu.memory_space<vmem>>, vector<8x256xf32>
    %50 = arith.addf %48, %49 : vector<8x256xf32>
    %51 = vector.broadcast %3 : vector<1x256xf32> to vector<8x256xf32>
    %52 = arith.addf %50, %51 : vector<8x256xf32>
    %c56_45 = arith.constant 56 : index
    %c0_46 = arith.constant 0 : index
    %53 = vector.load %arg5[%c56_45, %c0_46] : memref<64x256xf32, #tpu.memory_space<vmem>>, vector<8x256xf32>
    tpu.vector_store %arg5[%c56_45, %c0_46], %52 {strides = array<i32>} : memref<64x256xf32, #tpu.memory_space<vmem>>, vector<8x256xf32>,
    %cst_47 = arith.constant 0.000000e+00 : f32
    %54 = vector.broadcast %cst_47 : f32 to vector<8x64xf32>
    %cst_48 = arith.constant 0.000000e+00 : f32
    %55 = vector.broadcast %cst_48 : f32 to vector<8x64xf32>
    %c0_i32 = arith.constant 0 : i32
    %cst_49 = arith.constant dense<0.000000e+00> : vector<8x256xf32>
    %56 = tpu.matmul %54, %2, %cst_49 {dimension_numbers = #tpu.dot_dimension_numbers<[1], [0], [0], [1], [0, 0, 1, 1], [], []>} : vector<8x64xf32>, vector<64x256xf32>, vector<8x256xf32> -> vector<8x256xf32>
    %c8_i32 = arith.constant 8 : i32
    %57 = arith.muli %c0_i32, %c8_i32 : i32
    %58 = tpu.assume_multiple %57, 8 : i32
    %59 = arith.index_cast %58 : i32 to index
    %c0_50 = arith.constant 0 : index
    %60 = vector.load %arg5[%59, %c0_50] : memref<64x256xf32, #tpu.memory_space<vmem>>, vector<8x256xf32>
    %61 = arith.addf %60, %56 : vector<8x256xf32>
    %62 = math.tanh %61 : vector<8x256xf32>
    %cst_51 = arith.constant 5.000000e-01 : f32
    %63 = vector.broadcast %cst_51 : f32 to vector<8x256xf32>
    %64 = arith.mulf %62, %63 : vector<8x256xf32>
    %cst_52 = arith.constant 5.000000e-01 : f32
    %65 = vector.broadcast %cst_52 : f32 to vector<8x256xf32>
    %66 = arith.addf %64, %65 : vector<8x256xf32>
    %67 = vector.extract_strided_slice %66 {offsets = [0, 0], sizes = [8, 64], strides = [1, 1]} : vector<8x256xf32> to vector<8x64xf32>
    %68 = vector.extract_strided_slice %66 {offsets = [0, 64], sizes = [8, 64], strides = [1, 1]} : vector<8x256xf32> to vector<8x64xf32>
    %69 = vector.extract_strided_slice %66 {offsets = [0, 128], sizes = [8, 64], strides = [1, 1]} : vector<8x256xf32> to vector<8x64xf32>
    %70 = vector.extract_strided_slice %62 {offsets = [0, 192], sizes = [8, 64], strides = [1, 1]} : vector<8x256xf32> to vector<8x64xf32>
    %71 = arith.mulf %68, %55 : vector<8x64xf32>
    %72 = arith.mulf %67, %70 : vector<8x64xf32>
    %73 = arith.addf %71, %72 : vector<8x64xf32>
    %74 = math.tanh %73 : vector<8x64xf32>
    %75 = arith.mulf %69, %74 : vector<8x64xf32>
    %76 = arith.index_cast %58 : i32 to index
    %c0_53 = arith.constant 0 : index
    %77 = vector.load %arg6[%76, %c0_53] : memref<64x64xf32, #tpu.memory_space<vmem>>, vector<8x64xf32>
    tpu.vector_store %arg6[%76, %c0_53], %75 {strides = array<i32>} : memref<64x64xf32, #tpu.memory_space<vmem>>, vector<8x64xf32>,
    %c1_i32 = arith.constant 1 : i32
    %cst_54 = arith.constant dense<0.000000e+00> : vector<8x256xf32>
    %78 = tpu.matmul %75, %2, %cst_54 {dimension_numbers = #tpu.dot_dimension_numbers<[1], [0], [0], [1], [0, 0, 1, 1], [], []>} : vector<8x64xf32>, vector<64x256xf32>, vector<8x256xf32> -> vector<8x256xf32>
    %c8_i32_55 = arith.constant 8 : i32
    %79 = arith.muli %c1_i32, %c8_i32_55 : i32
    %80 = tpu.assume_multiple %79, 8 : i32
    %81 = arith.index_cast %80 : i32 to index
    %c0_56 = arith.constant 0 : index
    %82 = vector.load %arg5[%81, %c0_56] : memref<64x256xf32, #tpu.memory_space<vmem>>, vector<8x256xf32>
    %83 = arith.addf %82, %78 : vector<8x256xf32>
    %84 = math.tanh %83 : vector<8x256xf32>
    %cst_57 = arith.constant 5.000000e-01 : f32
    %85 = vector.broadcast %cst_57 : f32 to vector<8x256xf32>
    %86 = arith.mulf %84, %85 : vector<8x256xf32>
    %cst_58 = arith.constant 5.000000e-01 : f32
    %87 = vector.broadcast %cst_58 : f32 to vector<8x256xf32>
    %88 = arith.addf %86, %87 : vector<8x256xf32>
    %89 = vector.extract_strided_slice %88 {offsets = [0, 0], sizes = [8, 64], strides = [1, 1]} : vector<8x256xf32> to vector<8x64xf32>
    %90 = vector.extract_strided_slice %88 {offsets = [0, 64], sizes = [8, 64], strides = [1, 1]} : vector<8x256xf32> to vector<8x64xf32>
    %91 = vector.extract_strided_slice %88 {offsets = [0, 128], sizes = [8, 64], strides = [1, 1]} : vector<8x256xf32> to vector<8x64xf32>
    %92 = vector.extract_strided_slice %84 {offsets = [0, 192], sizes = [8, 64], strides = [1, 1]} : vector<8x256xf32> to vector<8x64xf32>
    %93 = arith.mulf %90, %73 : vector<8x64xf32>
    %94 = arith.mulf %89, %92 : vector<8x64xf32>
    %95 = arith.addf %93, %94 : vector<8x64xf32>
    %96 = math.tanh %95 : vector<8x64xf32>
    %97 = arith.mulf %91, %96 : vector<8x64xf32>
    %98 = arith.index_cast %80 : i32 to index
    %c0_59 = arith.constant 0 : index
    %99 = vector.load %arg6[%98, %c0_59] : memref<64x64xf32, #tpu.memory_space<vmem>>, vector<8x64xf32>
    tpu.vector_store %arg6[%98, %c0_59], %97 {strides = array<i32>} : memref<64x64xf32, #tpu.memory_space<vmem>>, vector<8x64xf32>,
    %c2_i32 = arith.constant 2 : i32
    %cst_60 = arith.constant dense<0.000000e+00> : vector<8x256xf32>
    %100 = tpu.matmul %97, %2, %cst_60 {dimension_numbers = #tpu.dot_dimension_numbers<[1], [0], [0], [1], [0, 0, 1, 1], [], []>} : vector<8x64xf32>, vector<64x256xf32>, vector<8x256xf32> -> vector<8x256xf32>
    %c8_i32_61 = arith.constant 8 : i32
    %101 = arith.muli %c2_i32, %c8_i32_61 : i32
    %102 = tpu.assume_multiple %101, 8 : i32
    %103 = arith.index_cast %102 : i32 to index
    %c0_62 = arith.constant 0 : index
    %104 = vector.load %arg5[%103, %c0_62] : memref<64x256xf32, #tpu.memory_space<vmem>>, vector<8x256xf32>
    %105 = arith.addf %104, %100 : vector<8x256xf32>
    %106 = math.tanh %105 : vector<8x256xf32>
    %cst_63 = arith.constant 5.000000e-01 : f32
    %107 = vector.broadcast %cst_63 : f32 to vector<8x256xf32>
    %108 = arith.mulf %106, %107 : vector<8x256xf32>
    %cst_64 = arith.constant 5.000000e-01 : f32
    %109 = vector.broadcast %cst_64 : f32 to vector<8x256xf32>
    %110 = arith.addf %108, %109 : vector<8x256xf32>
    %111 = vector.extract_strided_slice %110 {offsets = [0, 0], sizes = [8, 64], strides = [1, 1]} : vector<8x256xf32> to vector<8x64xf32>
    %112 = vector.extract_strided_slice %110 {offsets = [0, 64], sizes = [8, 64], strides = [1, 1]} : vector<8x256xf32> to vector<8x64xf32>
    %113 = vector.extract_strided_slice %110 {offsets = [0, 128], sizes = [8, 64], strides = [1, 1]} : vector<8x256xf32> to vector<8x64xf32>
    %114 = vector.extract_strided_slice %106 {offsets = [0, 192], sizes = [8, 64], strides = [1, 1]} : vector<8x256xf32> to vector<8x64xf32>
    %115 = arith.mulf %112, %95 : vector<8x64xf32>
    %116 = arith.mulf %111, %114 : vector<8x64xf32>
    %117 = arith.addf %115, %116 : vector<8x64xf32>
    %118 = math.tanh %117 : vector<8x64xf32>
    %119 = arith.mulf %113, %118 : vector<8x64xf32>
    %120 = arith.index_cast %102 : i32 to index
    %c0_65 = arith.constant 0 : index
    %121 = vector.load %arg6[%120, %c0_65] : memref<64x64xf32, #tpu.memory_space<vmem>>, vector<8x64xf32>
    tpu.vector_store %arg6[%120, %c0_65], %119 {strides = array<i32>} : memref<64x64xf32, #tpu.memory_space<vmem>>, vector<8x64xf32>,
    %c3_i32 = arith.constant 3 : i32
    %cst_66 = arith.constant dense<0.000000e+00> : vector<8x256xf32>
    %122 = tpu.matmul %119, %2, %cst_66 {dimension_numbers = #tpu.dot_dimension_numbers<[1], [0], [0], [1], [0, 0, 1, 1], [], []>} : vector<8x64xf32>, vector<64x256xf32>, vector<8x256xf32> -> vector<8x256xf32>
    %c8_i32_67 = arith.constant 8 : i32
    %123 = arith.muli %c3_i32, %c8_i32_67 : i32
    %124 = tpu.assume_multiple %123, 8 : i32
    %125 = arith.index_cast %124 : i32 to index
    %c0_68 = arith.constant 0 : index
    %126 = vector.load %arg5[%125, %c0_68] : memref<64x256xf32, #tpu.memory_space<vmem>>, vector<8x256xf32>
    %127 = arith.addf %126, %122 : vector<8x256xf32>
    %128 = math.tanh %127 : vector<8x256xf32>
    %cst_69 = arith.constant 5.000000e-01 : f32
    %129 = vector.broadcast %cst_69 : f32 to vector<8x256xf32>
    %130 = arith.mulf %128, %129 : vector<8x256xf32>
    %cst_70 = arith.constant 5.000000e-01 : f32
    %131 = vector.broadcast %cst_70 : f32 to vector<8x256xf32>
    %132 = arith.addf %130, %131 : vector<8x256xf32>
    %133 = vector.extract_strided_slice %132 {offsets = [0, 0], sizes = [8, 64], strides = [1, 1]} : vector<8x256xf32> to vector<8x64xf32>
    %134 = vector.extract_strided_slice %132 {offsets = [0, 64], sizes = [8, 64], strides = [1, 1]} : vector<8x256xf32> to vector<8x64xf32>
    %135 = vector.extract_strided_slice %132 {offsets = [0, 128], sizes = [8, 64], strides = [1, 1]} : vector<8x256xf32> to vector<8x64xf32>
    %136 = vector.extract_strided_slice %128 {offsets = [0, 192], sizes = [8, 64], strides = [1, 1]} : vector<8x256xf32> to vector<8x64xf32>
    %137 = arith.mulf %134, %117 : vector<8x64xf32>
    %138 = arith.mulf %133, %136 : vector<8x64xf32>
    %139 = arith.addf %137, %138 : vector<8x64xf32>
    %140 = math.tanh %139 : vector<8x64xf32>
    %141 = arith.mulf %135, %140 : vector<8x64xf32>
    %142 = arith.index_cast %124 : i32 to index
    %c0_71 = arith.constant 0 : index
    %143 = vector.load %arg6[%142, %c0_71] : memref<64x64xf32, #tpu.memory_space<vmem>>, vector<8x64xf32>
    tpu.vector_store %arg6[%142, %c0_71], %141 {strides = array<i32>} : memref<64x64xf32, #tpu.memory_space<vmem>>, vector<8x64xf32>,
    %c4_i32 = arith.constant 4 : i32
    %cst_72 = arith.constant dense<0.000000e+00> : vector<8x256xf32>
    %144 = tpu.matmul %141, %2, %cst_72 {dimension_numbers = #tpu.dot_dimension_numbers<[1], [0], [0], [1], [0, 0, 1, 1], [], []>} : vector<8x64xf32>, vector<64x256xf32>, vector<8x256xf32> -> vector<8x256xf32>
    %c8_i32_73 = arith.constant 8 : i32
    %145 = arith.muli %c4_i32, %c8_i32_73 : i32
    %146 = tpu.assume_multiple %145, 8 : i32
    %147 = arith.index_cast %146 : i32 to index
    %c0_74 = arith.constant 0 : index
    %148 = vector.load %arg5[%147, %c0_74] : memref<64x256xf32, #tpu.memory_space<vmem>>, vector<8x256xf32>
    %149 = arith.addf %148, %144 : vector<8x256xf32>
    %150 = math.tanh %149 : vector<8x256xf32>
    %cst_75 = arith.constant 5.000000e-01 : f32
    %151 = vector.broadcast %cst_75 : f32 to vector<8x256xf32>
    %152 = arith.mulf %150, %151 : vector<8x256xf32>
    %cst_76 = arith.constant 5.000000e-01 : f32
    %153 = vector.broadcast %cst_76 : f32 to vector<8x256xf32>
    %154 = arith.addf %152, %153 : vector<8x256xf32>
    %155 = vector.extract_strided_slice %154 {offsets = [0, 0], sizes = [8, 64], strides = [1, 1]} : vector<8x256xf32> to vector<8x64xf32>
    %156 = vector.extract_strided_slice %154 {offsets = [0, 64], sizes = [8, 64], strides = [1, 1]} : vector<8x256xf32> to vector<8x64xf32>
    %157 = vector.extract_strided_slice %154 {offsets = [0, 128], sizes = [8, 64], strides = [1, 1]} : vector<8x256xf32> to vector<8x64xf32>
    %158 = vector.extract_strided_slice %150 {offsets = [0, 192], sizes = [8, 64], strides = [1, 1]} : vector<8x256xf32> to vector<8x64xf32>
    %159 = arith.mulf %156, %139 : vector<8x64xf32>
    %160 = arith.mulf %155, %158 : vector<8x64xf32>
    %161 = arith.addf %159, %160 : vector<8x64xf32>
    %162 = math.tanh %161 : vector<8x64xf32>
    %163 = arith.mulf %157, %162 : vector<8x64xf32>
    %164 = arith.index_cast %146 : i32 to index
    %c0_77 = arith.constant 0 : index
    %165 = vector.load %arg6[%164, %c0_77] : memref<64x64xf32, #tpu.memory_space<vmem>>, vector<8x64xf32>
    tpu.vector_store %arg6[%164, %c0_77], %163 {strides = array<i32>} : memref<64x64xf32, #tpu.memory_space<vmem>>, vector<8x64xf32>,
    %c5_i32 = arith.constant 5 : i32
    %cst_78 = arith.constant dense<0.000000e+00> : vector<8x256xf32>
    %166 = tpu.matmul %163, %2, %cst_78 {dimension_numbers = #tpu.dot_dimension_numbers<[1], [0], [0], [1], [0, 0, 1, 1], [], []>} : vector<8x64xf32>, vector<64x256xf32>, vector<8x256xf32> -> vector<8x256xf32>
    %c8_i32_79 = arith.constant 8 : i32
    %167 = arith.muli %c5_i32, %c8_i32_79 : i32
    %168 = tpu.assume_multiple %167, 8 : i32
    %169 = arith.index_cast %168 : i32 to index
    %c0_80 = arith.constant 0 : index
    %170 = vector.load %arg5[%169, %c0_80] : memref<64x256xf32, #tpu.memory_space<vmem>>, vector<8x256xf32>
    %171 = arith.addf %170, %166 : vector<8x256xf32>
    %172 = math.tanh %171 : vector<8x256xf32>
    %cst_81 = arith.constant 5.000000e-01 : f32
    %173 = vector.broadcast %cst_81 : f32 to vector<8x256xf32>
    %174 = arith.mulf %172, %173 : vector<8x256xf32>
    %cst_82 = arith.constant 5.000000e-01 : f32
    %175 = vector.broadcast %cst_82 : f32 to vector<8x256xf32>
    %176 = arith.addf %174, %175 : vector<8x256xf32>
    %177 = vector.extract_strided_slice %176 {offsets = [0, 0], sizes = [8, 64], strides = [1, 1]} : vector<8x256xf32> to vector<8x64xf32>
    %178 = vector.extract_strided_slice %176 {offsets = [0, 64], sizes = [8, 64], strides = [1, 1]} : vector<8x256xf32> to vector<8x64xf32>
    %179 = vector.extract_strided_slice %176 {offsets = [0, 128], sizes = [8, 64], strides = [1, 1]} : vector<8x256xf32> to vector<8x64xf32>
    %180 = vector.extract_strided_slice %172 {offsets = [0, 192], sizes = [8, 64], strides = [1, 1]} : vector<8x256xf32> to vector<8x64xf32>
    %181 = arith.mulf %178, %161 : vector<8x64xf32>
    %182 = arith.mulf %177, %180 : vector<8x64xf32>
    %183 = arith.addf %181, %182 : vector<8x64xf32>
    %184 = math.tanh %183 : vector<8x64xf32>
    %185 = arith.mulf %179, %184 : vector<8x64xf32>
    %186 = arith.index_cast %168 : i32 to index
    %c0_83 = arith.constant 0 : index
    %187 = vector.load %arg6[%186, %c0_83] : memref<64x64xf32, #tpu.memory_space<vmem>>, vector<8x64xf32>
    tpu.vector_store %arg6[%186, %c0_83], %185 {strides = array<i32>} : memref<64x64xf32, #tpu.memory_space<vmem>>, vector<8x64xf32>,
    %c6_i32 = arith.constant 6 : i32
    %cst_84 = arith.constant dense<0.000000e+00> : vector<8x256xf32>
    %188 = tpu.matmul %185, %2, %cst_84 {dimension_numbers = #tpu.dot_dimension_numbers<[1], [0], [0], [1], [0, 0, 1, 1], [], []>} : vector<8x64xf32>, vector<64x256xf32>, vector<8x256xf32> -> vector<8x256xf32>
    %c8_i32_85 = arith.constant 8 : i32
    %189 = arith.muli %c6_i32, %c8_i32_85 : i32
    %190 = tpu.assume_multiple %189, 8 : i32
    %191 = arith.index_cast %190 : i32 to index
    %c0_86 = arith.constant 0 : index
    %192 = vector.load %arg5[%191, %c0_86] : memref<64x256xf32, #tpu.memory_space<vmem>>, vector<8x256xf32>
    %193 = arith.addf %192, %188 : vector<8x256xf32>
    %194 = math.tanh %193 : vector<8x256xf32>
    %cst_87 = arith.constant 5.000000e-01 : f32
    %195 = vector.broadcast %cst_87 : f32 to vector<8x256xf32>
    %196 = arith.mulf %194, %195 : vector<8x256xf32>
    %cst_88 = arith.constant 5.000000e-01 : f32
    %197 = vector.broadcast %cst_88 : f32 to vector<8x256xf32>
    %198 = arith.addf %196, %197 : vector<8x256xf32>
    %199 = vector.extract_strided_slice %198 {offsets = [0, 0], sizes = [8, 64], strides = [1, 1]} : vector<8x256xf32> to vector<8x64xf32>
    %200 = vector.extract_strided_slice %198 {offsets = [0, 64], sizes = [8, 64], strides = [1, 1]} : vector<8x256xf32> to vector<8x64xf32>
    %201 = vector.extract_strided_slice %198 {offsets = [0, 128], sizes = [8, 64], strides = [1, 1]} : vector<8x256xf32> to vector<8x64xf32>
    %202 = vector.extract_strided_slice %194 {offsets = [0, 192], sizes = [8, 64], strides = [1, 1]} : vector<8x256xf32> to vector<8x64xf32>
    %203 = arith.mulf %200, %183 : vector<8x64xf32>
    %204 = arith.mulf %199, %202 : vector<8x64xf32>
    %205 = arith.addf %203, %204 : vector<8x64xf32>
    %206 = math.tanh %205 : vector<8x64xf32>
    %207 = arith.mulf %201, %206 : vector<8x64xf32>
    %208 = arith.index_cast %190 : i32 to index
    %c0_89 = arith.constant 0 : index
    %209 = vector.load %arg6[%208, %c0_89] : memref<64x64xf32, #tpu.memory_space<vmem>>, vector<8x64xf32>
    tpu.vector_store %arg6[%208, %c0_89], %207 {strides = array<i32>} : memref<64x64xf32, #tpu.memory_space<vmem>>, vector<8x64xf32>,
    %c7_i32 = arith.constant 7 : i32
    %cst_90 = arith.constant dense<0.000000e+00> : vector<8x256xf32>
    %210 = tpu.matmul %207, %2, %cst_90 {dimension_numbers = #tpu.dot_dimension_numbers<[1], [0], [0], [1], [0, 0, 1, 1], [], []>} : vector<8x64xf32>, vector<64x256xf32>, vector<8x256xf32> -> vector<8x256xf32>
    %c8_i32_91 = arith.constant 8 : i32
    %211 = arith.muli %c7_i32, %c8_i32_91 : i32
    %212 = tpu.assume_multiple %211, 8 : i32
    %213 = arith.index_cast %212 : i32 to index
    %c0_92 = arith.constant 0 : index
    %214 = vector.load %arg5[%213, %c0_92] : memref<64x256xf32, #tpu.memory_space<vmem>>, vector<8x256xf32>
    %215 = arith.addf %214, %210 : vector<8x256xf32>
    %216 = math.tanh %215 : vector<8x256xf32>
    %cst_93 = arith.constant 5.000000e-01 : f32
    %217 = vector.broadcast %cst_93 : f32 to vector<8x256xf32>
    %218 = arith.mulf %216, %217 : vector<8x256xf32>
    %cst_94 = arith.constant 5.000000e-01 : f32
    %219 = vector.broadcast %cst_94 : f32 to vector<8x256xf32>
    %220 = arith.addf %218, %219 : vector<8x256xf32>
    %221 = vector.extract_strided_slice %220 {offsets = [0, 0], sizes = [8, 64], strides = [1, 1]} : vector<8x256xf32> to vector<8x64xf32>
    %222 = vector.extract_strided_slice %220 {offsets = [0, 64], sizes = [8, 64], strides = [1, 1]} : vector<8x256xf32> to vector<8x64xf32>
    %223 = vector.extract_strided_slice %220 {offsets = [0, 128], sizes = [8, 64], strides = [1, 1]} : vector<8x256xf32> to vector<8x64xf32>
    %224 = vector.extract_strided_slice %216 {offsets = [0, 192], sizes = [8, 64], strides = [1, 1]} : vector<8x256xf32> to vector<8x64xf32>
    %225 = arith.mulf %222, %205 : vector<8x64xf32>
    %226 = arith.mulf %221, %224 : vector<8x64xf32>
    %227 = arith.addf %225, %226 : vector<8x64xf32>
    %228 = math.tanh %227 : vector<8x64xf32>
    %229 = arith.mulf %223, %228 : vector<8x64xf32>
    %230 = arith.index_cast %212 : i32 to index
    %c0_95 = arith.constant 0 : index
    %231 = vector.load %arg6[%230, %c0_95] : memref<64x64xf32, #tpu.memory_space<vmem>>, vector<8x64xf32>
    tpu.vector_store %arg6[%230, %c0_95], %229 {strides = array<i32>} : memref<64x64xf32, #tpu.memory_space<vmem>>, vector<8x64xf32>,
    %c8_i32_96 = arith.constant 8 : i32
    %c0_97 = arith.constant 0 : index
    %c0_98 = arith.constant 0 : index
    %232 = vector.load %arg6[%c0_97, %c0_98] : memref<64x64xf32, #tpu.memory_space<vmem>>, vector<64x64xf32>
    %c0_99 = arith.constant 0 : index
    %c0_100 = arith.constant 0 : index
    %233 = vector.load %arg7[%c0_99, %c0_100] : memref<64x64xf32, #tpu.memory_space<vmem>>, vector<64x64xf32>
    tpu.vector_store %arg7[%c0_99, %c0_100], %232 {strides = array<i32>} : memref<64x64xf32, #tpu.memory_space<vmem>>, vector<64x64xf32>,
    %c56_101 = arith.constant 56 : index
    %c32_102 = arith.constant 32 : index
    %234 = vector.load %arg6[%c56_101, %c32_102] : memref<64x64xf32, #tpu.memory_space<vmem>>, vector<8x32xf32>
    %c0_103 = arith.constant 0 : index
    %c32_104 = arith.constant 32 : index
    %235 = vector.load %arg7[%c0_103, %c32_104] : memref<64x64xf32, #tpu.memory_space<vmem>>, vector<8x32xf32>
    tpu.vector_store %arg7[%c0_103, %c32_104], %234 {strides = array<i32>} : memref<64x64xf32, #tpu.memory_space<vmem>>, vector<8x32xf32>,
    %c48_105 = arith.constant 48 : index
    %c32_106 = arith.constant 32 : index
    %236 = vector.load %arg6[%c48_105, %c32_106] : memref<64x64xf32, #tpu.memory_space<vmem>>, vector<8x32xf32>
    %c8_107 = arith.constant 8 : index
    %c32_108 = arith.constant 32 : index
    %237 = vector.load %arg7[%c8_107, %c32_108] : memref<64x64xf32, #tpu.memory_space<vmem>>, vector<8x32xf32>
    tpu.vector_store %arg7[%c8_107, %c32_108], %236 {strides = array<i32>} : memref<64x64xf32, #tpu.memory_space<vmem>>, vector<8x32xf32>,
    %c40_109 = arith.constant 40 : index
    %c32_110 = arith.constant 32 : index
    %238 = vector.load %arg6[%c40_109, %c32_110] : memref<64x64xf32, #tpu.memory_space<vmem>>, vector<8x32xf32>
    %c16_111 = arith.constant 16 : index
    %c32_112 = arith.constant 32 : index
    %239 = vector.load %arg7[%c16_111, %c32_112] : memref<64x64xf32, #tpu.memory_space<vmem>>, vector<8x32xf32>
    tpu.vector_store %arg7[%c16_111, %c32_112], %238 {strides = array<i32>} : memref<64x64xf32, #tpu.memory_space<vmem>>, vector<8x32xf32>,
    %c32_113 = arith.constant 32 : index
    %c32_114 = arith.constant 32 : index
    %240 = vector.load %arg6[%c32_113, %c32_114] : memref<64x64xf32, #tpu.memory_space<vmem>>, vector<8x32xf32>
    %c24_115 = arith.constant 24 : index
    %c32_116 = arith.constant 32 : index
    %241 = vector.load %arg7[%c24_115, %c32_116] : memref<64x64xf32, #tpu.memory_space<vmem>>, vector<8x32xf32>
    tpu.vector_store %arg7[%c24_115, %c32_116], %240 {strides = array<i32>} : memref<64x64xf32, #tpu.memory_space<vmem>>, vector<8x32xf32>,
    %c24_117 = arith.constant 24 : index
    %c32_118 = arith.constant 32 : index
    %242 = vector.load %arg6[%c24_117, %c32_118] : memref<64x64xf32, #tpu.memory_space<vmem>>, vector<8x32xf32>
    %c32_119 = arith.constant 32 : index
    %c32_120 = arith.constant 32 : index
    %243 = vector.load %arg7[%c32_119, %c32_120] : memref<64x64xf32, #tpu.memory_space<vmem>>, vector<8x32xf32>
    tpu.vector_store %arg7[%c32_119, %c32_120], %242 {strides = array<i32>} : memref<64x64xf32, #tpu.memory_space<vmem>>, vector<8x32xf32>,
    %c16_121 = arith.constant 16 : index
    %c32_122 = arith.constant 32 : index
    %244 = vector.load %arg6[%c16_121, %c32_122] : memref<64x64xf32, #tpu.memory_space<vmem>>, vector<8x32xf32>
    %c40_123 = arith.constant 40 : index
    %c32_124 = arith.constant 32 : index
    %245 = vector.load %arg7[%c40_123, %c32_124] : memref<64x64xf32, #tpu.memory_space<vmem>>, vector<8x32xf32>
    tpu.vector_store %arg7[%c40_123, %c32_124], %244 {strides = array<i32>} : memref<64x64xf32, #tpu.memory_space<vmem>>, vector<8x32xf32>,
    %c8_125 = arith.constant 8 : index
    %c32_126 = arith.constant 32 : index
    %246 = vector.load %arg6[%c8_125, %c32_126] : memref<64x64xf32, #tpu.memory_space<vmem>>, vector<8x32xf32>
    %c48_127 = arith.constant 48 : index
    %c32_128 = arith.constant 32 : index
    %247 = vector.load %arg7[%c48_127, %c32_128] : memref<64x64xf32, #tpu.memory_space<vmem>>, vector<8x32xf32>
    tpu.vector_store %arg7[%c48_127, %c32_128], %246 {strides = array<i32>} : memref<64x64xf32, #tpu.memory_space<vmem>>, vector<8x32xf32>,
    %c0_129 = arith.constant 0 : index
    %c32_130 = arith.constant 32 : index
    %248 = vector.load %arg6[%c0_129, %c32_130] : memref<64x64xf32, #tpu.memory_space<vmem>>, vector<8x32xf32>
    %c56_131 = arith.constant 56 : index
    %c32_132 = arith.constant 32 : index
    %249 = vector.load %arg7[%c56_131, %c32_132] : memref<64x64xf32, #tpu.memory_space<vmem>>, vector<8x32xf32>
    tpu.vector_store %arg7[%c56_131, %c32_132], %248 {strides = array<i32>} : memref<64x64xf32, #tpu.memory_space<vmem>>, vector<8x32xf32>,
    %c0_133 = arith.constant 0 : index
    %c0_134 = arith.constant 0 : index
    %250 = vector.load %arg7[%c0_133, %c0_134] : memref<64x64xf32, #tpu.memory_space<vmem>>, vector<64x64xf32>
    %c8_135 = arith.constant 8 : index
    %c0_136 = arith.constant 0 : index
    %251 = vector.load %arg1[%c8_135, %c0_136] : memref<144x512xf32, #tpu.memory_space<vmem>>, vector<64x512xf32>
    %c72_137 = arith.constant 72 : index
    %c256_138 = arith.constant 256 : index
    %252 = vector.load %arg1[%c72_137, %c256_138] : memref<144x512xf32, #tpu.memory_space<vmem>>, vector<64x256xf32>
    %c136_139 = arith.constant 136 : index
    %c256_140 = arith.constant 256 : index
    %253 = vector.load %arg1[%c136_139, %c256_140] : memref<144x512xf32, #tpu.memory_space<vmem>>, vector<1x256xf32>
    %cst_141 = arith.constant dense<0.000000e+00> : vector<64x512xf32>
    %254 = tpu.matmul %250, %251, %cst_141 {dimension_numbers = #tpu.dot_dimension_numbers<[1], [0], [0], [1], [0, 0, 1, 1], [], []>} : vector<64x64xf32>, vector<64x512xf32>, vector<64x512xf32> -> vector<64x512xf32>
    %c0_142 = arith.constant 0 : index
    %c0_143 = arith.constant 0 : index
    %255 = vector.load %arg4[%c0_142, %c0_143] : memref<64x512xf32, #tpu.memory_space<vmem>>, vector<64x512xf32>
    tpu.vector_store %arg4[%c0_142, %c0_143], %254 {strides = array<i32>} : memref<64x512xf32, #tpu.memory_space<vmem>>, vector<64x512xf32>,
    %c0_144 = arith.constant 0 : index
    %c0_145 = arith.constant 0 : index
    %256 = vector.load %arg4[%c0_144, %c0_145] : memref<64x512xf32, #tpu.memory_space<vmem>>, vector<8x256xf32>
    %c56_146 = arith.constant 56 : index
    %c256_147 = arith.constant 256 : index
    %257 = vector.load %arg4[%c56_146, %c256_147] : memref<64x512xf32, #tpu.memory_space<vmem>>, vector<8x256xf32>
    %258 = arith.addf %256, %257 : vector<8x256xf32>
    %259 = vector.broadcast %253 : vector<1x256xf32> to vector<8x256xf32>
    %260 = arith.addf %258, %259 : vector<8x256xf32>
    %c0_148 = arith.constant 0 : index
    %c0_149 = arith.constant 0 : index
    %261 = vector.load %arg5[%c0_148, %c0_149] : memref<64x256xf32, #tpu.memory_space<vmem>>, vector<8x256xf32>
    tpu.vector_store %arg5[%c0_148, %c0_149], %260 {strides = array<i32>} : memref<64x256xf32, #tpu.memory_space<vmem>>, vector<8x256xf32>,
    %c8_150 = arith.constant 8 : index
    %c0_151 = arith.constant 0 : index
    %262 = vector.load %arg4[%c8_150, %c0_151] : memref<64x512xf32, #tpu.memory_space<vmem>>, vector<8x256xf32>
    %c48_152 = arith.constant 48 : index
    %c256_153 = arith.constant 256 : index
    %263 = vector.load %arg4[%c48_152, %c256_153] : memref<64x512xf32, #tpu.memory_space<vmem>>, vector<8x256xf32>
    %264 = arith.addf %262, %263 : vector<8x256xf32>
    %265 = vector.broadcast %253 : vector<1x256xf32> to vector<8x256xf32>
    %266 = arith.addf %264, %265 : vector<8x256xf32>
    %c8_154 = arith.constant 8 : index
    %c0_155 = arith.constant 0 : index
    %267 = vector.load %arg5[%c8_154, %c0_155] : memref<64x256xf32, #tpu.memory_space<vmem>>, vector<8x256xf32>
    tpu.vector_store %arg5[%c8_154, %c0_155], %266 {strides = array<i32>} : memref<64x256xf32, #tpu.memory_space<vmem>>, vector<8x256xf32>,
    %c16_156 = arith.constant 16 : index
    %c0_157 = arith.constant 0 : index
    %268 = vector.load %arg4[%c16_156, %c0_157] : memref<64x512xf32, #tpu.memory_space<vmem>>, vector<8x256xf32>
    %c40_158 = arith.constant 40 : index
    %c256_159 = arith.constant 256 : index
    %269 = vector.load %arg4[%c40_158, %c256_159] : memref<64x512xf32, #tpu.memory_space<vmem>>, vector<8x256xf32>
    %270 = arith.addf %268, %269 : vector<8x256xf32>
    %271 = vector.broadcast %253 : vector<1x256xf32> to vector<8x256xf32>
    %272 = arith.addf %270, %271 : vector<8x256xf32>
    %c16_160 = arith.constant 16 : index
    %c0_161 = arith.constant 0 : index
    %273 = vector.load %arg5[%c16_160, %c0_161] : memref<64x256xf32, #tpu.memory_space<vmem>>, vector<8x256xf32>
    tpu.vector_store %arg5[%c16_160, %c0_161], %272 {strides = array<i32>} : memref<64x256xf32, #tpu.memory_space<vmem>>, vector<8x256xf32>,
    %c24_162 = arith.constant 24 : index
    %c0_163 = arith.constant 0 : index
    %274 = vector.load %arg4[%c24_162, %c0_163] : memref<64x512xf32, #tpu.memory_space<vmem>>, vector<8x256xf32>
    %c32_164 = arith.constant 32 : index
    %c256_165 = arith.constant 256 : index
    %275 = vector.load %arg4[%c32_164, %c256_165] : memref<64x512xf32, #tpu.memory_space<vmem>>, vector<8x256xf32>
    %276 = arith.addf %274, %275 : vector<8x256xf32>
    %277 = vector.broadcast %253 : vector<1x256xf32> to vector<8x256xf32>
    %278 = arith.addf %276, %277 : vector<8x256xf32>
    %c24_166 = arith.constant 24 : index
    %c0_167 = arith.constant 0 : index
    %279 = vector.load %arg5[%c24_166, %c0_167] : memref<64x256xf32, #tpu.memory_space<vmem>>, vector<8x256xf32>
    tpu.vector_store %arg5[%c24_166, %c0_167], %278 {strides = array<i32>} : memref<64x256xf32, #tpu.memory_space<vmem>>, vector<8x256xf32>,
    %c32_168 = arith.constant 32 : index
    %c0_169 = arith.constant 0 : index
    %280 = vector.load %arg4[%c32_168, %c0_169] : memref<64x512xf32, #tpu.memory_space<vmem>>, vector<8x256xf32>
    %c24_170 = arith.constant 24 : index
    %c256_171 = arith.constant 256 : index
    %281 = vector.load %arg4[%c24_170, %c256_171] : memref<64x512xf32, #tpu.memory_space<vmem>>, vector<8x256xf32>
    %282 = arith.addf %280, %281 : vector<8x256xf32>
    %283 = vector.broadcast %253 : vector<1x256xf32> to vector<8x256xf32>
    %284 = arith.addf %282, %283 : vector<8x256xf32>
    %c32_172 = arith.constant 32 : index
    %c0_173 = arith.constant 0 : index
    %285 = vector.load %arg5[%c32_172, %c0_173] : memref<64x256xf32, #tpu.memory_space<vmem>>, vector<8x256xf32>
    tpu.vector_store %arg5[%c32_172, %c0_173], %284 {strides = array<i32>} : memref<64x256xf32, #tpu.memory_space<vmem>>, vector<8x256xf32>,
    %c40_174 = arith.constant 40 : index
    %c0_175 = arith.constant 0 : index
    %286 = vector.load %arg4[%c40_174, %c0_175] : memref<64x512xf32, #tpu.memory_space<vmem>>, vector<8x256xf32>
    %c16_176 = arith.constant 16 : index
    %c256_177 = arith.constant 256 : index
    %287 = vector.load %arg4[%c16_176, %c256_177] : memref<64x512xf32, #tpu.memory_space<vmem>>, vector<8x256xf32>
    %288 = arith.addf %286, %287 : vector<8x256xf32>
    %289 = vector.broadcast %253 : vector<1x256xf32> to vector<8x256xf32>
    %290 = arith.addf %288, %289 : vector<8x256xf32>
    %c40_178 = arith.constant 40 : index
    %c0_179 = arith.constant 0 : index
    %291 = vector.load %arg5[%c40_178, %c0_179] : memref<64x256xf32, #tpu.memory_space<vmem>>, vector<8x256xf32>
    tpu.vector_store %arg5[%c40_178, %c0_179], %290 {strides = array<i32>} : memref<64x256xf32, #tpu.memory_space<vmem>>, vector<8x256xf32>,
    %c48_180 = arith.constant 48 : index
    %c0_181 = arith.constant 0 : index
    %292 = vector.load %arg4[%c48_180, %c0_181] : memref<64x512xf32, #tpu.memory_space<vmem>>, vector<8x256xf32>
    %c8_182 = arith.constant 8 : index
    %c256_183 = arith.constant 256 : index
    %293 = vector.load %arg4[%c8_182, %c256_183] : memref<64x512xf32, #tpu.memory_space<vmem>>, vector<8x256xf32>
    %294 = arith.addf %292, %293 : vector<8x256xf32>
    %295 = vector.broadcast %253 : vector<1x256xf32> to vector<8x256xf32>
    %296 = arith.addf %294, %295 : vector<8x256xf32>
    %c48_184 = arith.constant 48 : index
    %c0_185 = arith.constant 0 : index
    %297 = vector.load %arg5[%c48_184, %c0_185] : memref<64x256xf32, #tpu.memory_space<vmem>>, vector<8x256xf32>
    tpu.vector_store %arg5[%c48_184, %c0_185], %296 {strides = array<i32>} : memref<64x256xf32, #tpu.memory_space<vmem>>, vector<8x256xf32>,
    %c56_186 = arith.constant 56 : index
    %c0_187 = arith.constant 0 : index
    %298 = vector.load %arg4[%c56_186, %c0_187] : memref<64x512xf32, #tpu.memory_space<vmem>>, vector<8x256xf32>
    %c0_188 = arith.constant 0 : index
    %c256_189 = arith.constant 256 : index
    %299 = vector.load %arg4[%c0_188, %c256_189] : memref<64x512xf32, #tpu.memory_space<vmem>>, vector<8x256xf32>
    %300 = arith.addf %298, %299 : vector<8x256xf32>
    %301 = vector.broadcast %253 : vector<1x256xf32> to vector<8x256xf32>
    %302 = arith.addf %300, %301 : vector<8x256xf32>
    %c56_190 = arith.constant 56 : index
    %c0_191 = arith.constant 0 : index
    %303 = vector.load %arg5[%c56_190, %c0_191] : memref<64x256xf32, #tpu.memory_space<vmem>>, vector<8x256xf32>
    tpu.vector_store %arg5[%c56_190, %c0_191], %302 {strides = array<i32>} : memref<64x256xf32, #tpu.memory_space<vmem>>, vector<8x256xf32>,
    %cst_192 = arith.constant 0.000000e+00 : f32
    %304 = vector.broadcast %cst_192 : f32 to vector<8x64xf32>
    %cst_193 = arith.constant 0.000000e+00 : f32
    %305 = vector.broadcast %cst_193 : f32 to vector<8x64xf32>
    %c0_i32_194 = arith.constant 0 : i32
    %cst_195 = arith.constant dense<0.000000e+00> : vector<8x256xf32>
    %306 = tpu.matmul %304, %252, %cst_195 {dimension_numbers = #tpu.dot_dimension_numbers<[1], [0], [0], [1], [0, 0, 1, 1], [], []>} : vector<8x64xf32>, vector<64x256xf32>, vector<8x256xf32> -> vector<8x256xf32>
    %c8_i32_196 = arith.constant 8 : i32
    %307 = arith.muli %c0_i32_194, %c8_i32_196 : i32
    %308 = tpu.assume_multiple %307, 8 : i32
    %309 = arith.index_cast %308 : i32 to index
    %c0_197 = arith.constant 0 : index
    %310 = vector.load %arg5[%309, %c0_197] : memref<64x256xf32, #tpu.memory_space<vmem>>, vector<8x256xf32>
    %311 = arith.addf %310, %306 : vector<8x256xf32>
    %312 = math.tanh %311 : vector<8x256xf32>
    %cst_198 = arith.constant 5.000000e-01 : f32
    %313 = vector.broadcast %cst_198 : f32 to vector<8x256xf32>
    %314 = arith.mulf %312, %313 : vector<8x256xf32>
    %cst_199 = arith.constant 5.000000e-01 : f32
    %315 = vector.broadcast %cst_199 : f32 to vector<8x256xf32>
    %316 = arith.addf %314, %315 : vector<8x256xf32>
    %317 = vector.extract_strided_slice %316 {offsets = [0, 0], sizes = [8, 64], strides = [1, 1]} : vector<8x256xf32> to vector<8x64xf32>
    %318 = vector.extract_strided_slice %316 {offsets = [0, 64], sizes = [8, 64], strides = [1, 1]} : vector<8x256xf32> to vector<8x64xf32>
    %319 = vector.extract_strided_slice %316 {offsets = [0, 128], sizes = [8, 64], strides = [1, 1]} : vector<8x256xf32> to vector<8x64xf32>
    %320 = vector.extract_strided_slice %312 {offsets = [0, 192], sizes = [8, 64], strides = [1, 1]} : vector<8x256xf32> to vector<8x64xf32>
    %321 = arith.mulf %318, %305 : vector<8x64xf32>
    %322 = arith.mulf %317, %320 : vector<8x64xf32>
    %323 = arith.addf %321, %322 : vector<8x64xf32>
    %324 = math.tanh %323 : vector<8x64xf32>
    %325 = arith.mulf %319, %324 : vector<8x64xf32>
    %326 = arith.index_cast %308 : i32 to index
    %c0_200 = arith.constant 0 : index
    %327 = vector.load %arg6[%326, %c0_200] : memref<64x64xf32, #tpu.memory_space<vmem>>, vector<8x64xf32>
    tpu.vector_store %arg6[%326, %c0_200], %325 {strides = array<i32>} : memref<64x64xf32, #tpu.memory_space<vmem>>, vector<8x64xf32>,
    %c1_i32_201 = arith.constant 1 : i32
    %cst_202 = arith.constant dense<0.000000e+00> : vector<8x256xf32>
    %328 = tpu.matmul %325, %252, %cst_202 {dimension_numbers = #tpu.dot_dimension_numbers<[1], [0], [0], [1], [0, 0, 1, 1], [], []>} : vector<8x64xf32>, vector<64x256xf32>, vector<8x256xf32> -> vector<8x256xf32>
    %c8_i32_203 = arith.constant 8 : i32
    %329 = arith.muli %c1_i32_201, %c8_i32_203 : i32
    %330 = tpu.assume_multiple %329, 8 : i32
    %331 = arith.index_cast %330 : i32 to index
    %c0_204 = arith.constant 0 : index
    %332 = vector.load %arg5[%331, %c0_204] : memref<64x256xf32, #tpu.memory_space<vmem>>, vector<8x256xf32>
    %333 = arith.addf %332, %328 : vector<8x256xf32>
    %334 = math.tanh %333 : vector<8x256xf32>
    %cst_205 = arith.constant 5.000000e-01 : f32
    %335 = vector.broadcast %cst_205 : f32 to vector<8x256xf32>
    %336 = arith.mulf %334, %335 : vector<8x256xf32>
    %cst_206 = arith.constant 5.000000e-01 : f32
    %337 = vector.broadcast %cst_206 : f32 to vector<8x256xf32>
    %338 = arith.addf %336, %337 : vector<8x256xf32>
    %339 = vector.extract_strided_slice %338 {offsets = [0, 0], sizes = [8, 64], strides = [1, 1]} : vector<8x256xf32> to vector<8x64xf32>
    %340 = vector.extract_strided_slice %338 {offsets = [0, 64], sizes = [8, 64], strides = [1, 1]} : vector<8x256xf32> to vector<8x64xf32>
    %341 = vector.extract_strided_slice %338 {offsets = [0, 128], sizes = [8, 64], strides = [1, 1]} : vector<8x256xf32> to vector<8x64xf32>
    %342 = vector.extract_strided_slice %334 {offsets = [0, 192], sizes = [8, 64], strides = [1, 1]} : vector<8x256xf32> to vector<8x64xf32>
    %343 = arith.mulf %340, %323 : vector<8x64xf32>
    %344 = arith.mulf %339, %342 : vector<8x64xf32>
    %345 = arith.addf %343, %344 : vector<8x64xf32>
    %346 = math.tanh %345 : vector<8x64xf32>
    %347 = arith.mulf %341, %346 : vector<8x64xf32>
    %348 = arith.index_cast %330 : i32 to index
    %c0_207 = arith.constant 0 : index
    %349 = vector.load %arg6[%348, %c0_207] : memref<64x64xf32, #tpu.memory_space<vmem>>, vector<8x64xf32>
    tpu.vector_store %arg6[%348, %c0_207], %347 {strides = array<i32>} : memref<64x64xf32, #tpu.memory_space<vmem>>, vector<8x64xf32>,
    %c2_i32_208 = arith.constant 2 : i32
    %cst_209 = arith.constant dense<0.000000e+00> : vector<8x256xf32>
    %350 = tpu.matmul %347, %252, %cst_209 {dimension_numbers = #tpu.dot_dimension_numbers<[1], [0], [0], [1], [0, 0, 1, 1], [], []>} : vector<8x64xf32>, vector<64x256xf32>, vector<8x256xf32> -> vector<8x256xf32>
    %c8_i32_210 = arith.constant 8 : i32
    %351 = arith.muli %c2_i32_208, %c8_i32_210 : i32
    %352 = tpu.assume_multiple %351, 8 : i32
    %353 = arith.index_cast %352 : i32 to index
    %c0_211 = arith.constant 0 : index
    %354 = vector.load %arg5[%353, %c0_211] : memref<64x256xf32, #tpu.memory_space<vmem>>, vector<8x256xf32>
    %355 = arith.addf %354, %350 : vector<8x256xf32>
    %356 = math.tanh %355 : vector<8x256xf32>
    %cst_212 = arith.constant 5.000000e-01 : f32
    %357 = vector.broadcast %cst_212 : f32 to vector<8x256xf32>
    %358 = arith.mulf %356, %357 : vector<8x256xf32>
    %cst_213 = arith.constant 5.000000e-01 : f32
    %359 = vector.broadcast %cst_213 : f32 to vector<8x256xf32>
    %360 = arith.addf %358, %359 : vector<8x256xf32>
    %361 = vector.extract_strided_slice %360 {offsets = [0, 0], sizes = [8, 64], strides = [1, 1]} : vector<8x256xf32> to vector<8x64xf32>
    %362 = vector.extract_strided_slice %360 {offsets = [0, 64], sizes = [8, 64], strides = [1, 1]} : vector<8x256xf32> to vector<8x64xf32>
    %363 = vector.extract_strided_slice %360 {offsets = [0, 128], sizes = [8, 64], strides = [1, 1]} : vector<8x256xf32> to vector<8x64xf32>
    %364 = vector.extract_strided_slice %356 {offsets = [0, 192], sizes = [8, 64], strides = [1, 1]} : vector<8x256xf32> to vector<8x64xf32>
    %365 = arith.mulf %362, %345 : vector<8x64xf32>
    %366 = arith.mulf %361, %364 : vector<8x64xf32>
    %367 = arith.addf %365, %366 : vector<8x64xf32>
    %368 = math.tanh %367 : vector<8x64xf32>
    %369 = arith.mulf %363, %368 : vector<8x64xf32>
    %370 = arith.index_cast %352 : i32 to index
    %c0_214 = arith.constant 0 : index
    %371 = vector.load %arg6[%370, %c0_214] : memref<64x64xf32, #tpu.memory_space<vmem>>, vector<8x64xf32>
    tpu.vector_store %arg6[%370, %c0_214], %369 {strides = array<i32>} : memref<64x64xf32, #tpu.memory_space<vmem>>, vector<8x64xf32>,
    %c3_i32_215 = arith.constant 3 : i32
    %cst_216 = arith.constant dense<0.000000e+00> : vector<8x256xf32>
    %372 = tpu.matmul %369, %252, %cst_216 {dimension_numbers = #tpu.dot_dimension_numbers<[1], [0], [0], [1], [0, 0, 1, 1], [], []>} : vector<8x64xf32>, vector<64x256xf32>, vector<8x256xf32> -> vector<8x256xf32>
    %c8_i32_217 = arith.constant 8 : i32
    %373 = arith.muli %c3_i32_215, %c8_i32_217 : i32
    %374 = tpu.assume_multiple %373, 8 : i32
    %375 = arith.index_cast %374 : i32 to index
    %c0_218 = arith.constant 0 : index
    %376 = vector.load %arg5[%375, %c0_218] : memref<64x256xf32, #tpu.memory_space<vmem>>, vector<8x256xf32>
    %377 = arith.addf %376, %372 : vector<8x256xf32>
    %378 = math.tanh %377 : vector<8x256xf32>
    %cst_219 = arith.constant 5.000000e-01 : f32
    %379 = vector.broadcast %cst_219 : f32 to vector<8x256xf32>
    %380 = arith.mulf %378, %379 : vector<8x256xf32>
    %cst_220 = arith.constant 5.000000e-01 : f32
    %381 = vector.broadcast %cst_220 : f32 to vector<8x256xf32>
    %382 = arith.addf %380, %381 : vector<8x256xf32>
    %383 = vector.extract_strided_slice %382 {offsets = [0, 0], sizes = [8, 64], strides = [1, 1]} : vector<8x256xf32> to vector<8x64xf32>
    %384 = vector.extract_strided_slice %382 {offsets = [0, 64], sizes = [8, 64], strides = [1, 1]} : vector<8x256xf32> to vector<8x64xf32>
    %385 = vector.extract_strided_slice %382 {offsets = [0, 128], sizes = [8, 64], strides = [1, 1]} : vector<8x256xf32> to vector<8x64xf32>
    %386 = vector.extract_strided_slice %378 {offsets = [0, 192], sizes = [8, 64], strides = [1, 1]} : vector<8x256xf32> to vector<8x64xf32>
    %387 = arith.mulf %384, %367 : vector<8x64xf32>
    %388 = arith.mulf %383, %386 : vector<8x64xf32>
    %389 = arith.addf %387, %388 : vector<8x64xf32>
    %390 = math.tanh %389 : vector<8x64xf32>
    %391 = arith.mulf %385, %390 : vector<8x64xf32>
    %392 = arith.index_cast %374 : i32 to index
    %c0_221 = arith.constant 0 : index
    %393 = vector.load %arg6[%392, %c0_221] : memref<64x64xf32, #tpu.memory_space<vmem>>, vector<8x64xf32>
    tpu.vector_store %arg6[%392, %c0_221], %391 {strides = array<i32>} : memref<64x64xf32, #tpu.memory_space<vmem>>, vector<8x64xf32>,
    %c4_i32_222 = arith.constant 4 : i32
    %cst_223 = arith.constant dense<0.000000e+00> : vector<8x256xf32>
    %394 = tpu.matmul %391, %252, %cst_223 {dimension_numbers = #tpu.dot_dimension_numbers<[1], [0], [0], [1], [0, 0, 1, 1], [], []>} : vector<8x64xf32>, vector<64x256xf32>, vector<8x256xf32> -> vector<8x256xf32>
    %c8_i32_224 = arith.constant 8 : i32
    %395 = arith.muli %c4_i32_222, %c8_i32_224 : i32
    %396 = tpu.assume_multiple %395, 8 : i32
    %397 = arith.index_cast %396 : i32 to index
    %c0_225 = arith.constant 0 : index
    %398 = vector.load %arg5[%397, %c0_225] : memref<64x256xf32, #tpu.memory_space<vmem>>, vector<8x256xf32>
    %399 = arith.addf %398, %394 : vector<8x256xf32>
    %400 = math.tanh %399 : vector<8x256xf32>
    %cst_226 = arith.constant 5.000000e-01 : f32
    %401 = vector.broadcast %cst_226 : f32 to vector<8x256xf32>
    %402 = arith.mulf %400, %401 : vector<8x256xf32>
    %cst_227 = arith.constant 5.000000e-01 : f32
    %403 = vector.broadcast %cst_227 : f32 to vector<8x256xf32>
    %404 = arith.addf %402, %403 : vector<8x256xf32>
    %405 = vector.extract_strided_slice %404 {offsets = [0, 0], sizes = [8, 64], strides = [1, 1]} : vector<8x256xf32> to vector<8x64xf32>
    %406 = vector.extract_strided_slice %404 {offsets = [0, 64], sizes = [8, 64], strides = [1, 1]} : vector<8x256xf32> to vector<8x64xf32>
    %407 = vector.extract_strided_slice %404 {offsets = [0, 128], sizes = [8, 64], strides = [1, 1]} : vector<8x256xf32> to vector<8x64xf32>
    %408 = vector.extract_strided_slice %400 {offsets = [0, 192], sizes = [8, 64], strides = [1, 1]} : vector<8x256xf32> to vector<8x64xf32>
    %409 = arith.mulf %406, %389 : vector<8x64xf32>
    %410 = arith.mulf %405, %408 : vector<8x64xf32>
    %411 = arith.addf %409, %410 : vector<8x64xf32>
    %412 = math.tanh %411 : vector<8x64xf32>
    %413 = arith.mulf %407, %412 : vector<8x64xf32>
    %414 = arith.index_cast %396 : i32 to index
    %c0_228 = arith.constant 0 : index
    %415 = vector.load %arg6[%414, %c0_228] : memref<64x64xf32, #tpu.memory_space<vmem>>, vector<8x64xf32>
    tpu.vector_store %arg6[%414, %c0_228], %413 {strides = array<i32>} : memref<64x64xf32, #tpu.memory_space<vmem>>, vector<8x64xf32>,
    %c5_i32_229 = arith.constant 5 : i32
    %cst_230 = arith.constant dense<0.000000e+00> : vector<8x256xf32>
    %416 = tpu.matmul %413, %252, %cst_230 {dimension_numbers = #tpu.dot_dimension_numbers<[1], [0], [0], [1], [0, 0, 1, 1], [], []>} : vector<8x64xf32>, vector<64x256xf32>, vector<8x256xf32> -> vector<8x256xf32>
    %c8_i32_231 = arith.constant 8 : i32
    %417 = arith.muli %c5_i32_229, %c8_i32_231 : i32
    %418 = tpu.assume_multiple %417, 8 : i32
    %419 = arith.index_cast %418 : i32 to index
    %c0_232 = arith.constant 0 : index
    %420 = vector.load %arg5[%419, %c0_232] : memref<64x256xf32, #tpu.memory_space<vmem>>, vector<8x256xf32>
    %421 = arith.addf %420, %416 : vector<8x256xf32>
    %422 = math.tanh %421 : vector<8x256xf32>
    %cst_233 = arith.constant 5.000000e-01 : f32
    %423 = vector.broadcast %cst_233 : f32 to vector<8x256xf32>
    %424 = arith.mulf %422, %423 : vector<8x256xf32>
    %cst_234 = arith.constant 5.000000e-01 : f32
    %425 = vector.broadcast %cst_234 : f32 to vector<8x256xf32>
    %426 = arith.addf %424, %425 : vector<8x256xf32>
    %427 = vector.extract_strided_slice %426 {offsets = [0, 0], sizes = [8, 64], strides = [1, 1]} : vector<8x256xf32> to vector<8x64xf32>
    %428 = vector.extract_strided_slice %426 {offsets = [0, 64], sizes = [8, 64], strides = [1, 1]} : vector<8x256xf32> to vector<8x64xf32>
    %429 = vector.extract_strided_slice %426 {offsets = [0, 128], sizes = [8, 64], strides = [1, 1]} : vector<8x256xf32> to vector<8x64xf32>
    %430 = vector.extract_strided_slice %422 {offsets = [0, 192], sizes = [8, 64], strides = [1, 1]} : vector<8x256xf32> to vector<8x64xf32>
    %431 = arith.mulf %428, %411 : vector<8x64xf32>
    %432 = arith.mulf %427, %430 : vector<8x64xf32>
    %433 = arith.addf %431, %432 : vector<8x64xf32>
    %434 = math.tanh %433 : vector<8x64xf32>
    %435 = arith.mulf %429, %434 : vector<8x64xf32>
    %436 = arith.index_cast %418 : i32 to index
    %c0_235 = arith.constant 0 : index
    %437 = vector.load %arg6[%436, %c0_235] : memref<64x64xf32, #tpu.memory_space<vmem>>, vector<8x64xf32>
    tpu.vector_store %arg6[%436, %c0_235], %435 {strides = array<i32>} : memref<64x64xf32, #tpu.memory_space<vmem>>, vector<8x64xf32>,
    %c6_i32_236 = arith.constant 6 : i32
    %cst_237 = arith.constant dense<0.000000e+00> : vector<8x256xf32>
    %438 = tpu.matmul %435, %252, %cst_237 {dimension_numbers = #tpu.dot_dimension_numbers<[1], [0], [0], [1], [0, 0, 1, 1], [], []>} : vector<8x64xf32>, vector<64x256xf32>, vector<8x256xf32> -> vector<8x256xf32>
    %c8_i32_238 = arith.constant 8 : i32
    %439 = arith.muli %c6_i32_236, %c8_i32_238 : i32
    %440 = tpu.assume_multiple %439, 8 : i32
    %441 = arith.index_cast %440 : i32 to index
    %c0_239 = arith.constant 0 : index
    %442 = vector.load %arg5[%441, %c0_239] : memref<64x256xf32, #tpu.memory_space<vmem>>, vector<8x256xf32>
    %443 = arith.addf %442, %438 : vector<8x256xf32>
    %444 = math.tanh %443 : vector<8x256xf32>
    %cst_240 = arith.constant 5.000000e-01 : f32
    %445 = vector.broadcast %cst_240 : f32 to vector<8x256xf32>
    %446 = arith.mulf %444, %445 : vector<8x256xf32>
    %cst_241 = arith.constant 5.000000e-01 : f32
    %447 = vector.broadcast %cst_241 : f32 to vector<8x256xf32>
    %448 = arith.addf %446, %447 : vector<8x256xf32>
    %449 = vector.extract_strided_slice %448 {offsets = [0, 0], sizes = [8, 64], strides = [1, 1]} : vector<8x256xf32> to vector<8x64xf32>
    %450 = vector.extract_strided_slice %448 {offsets = [0, 64], sizes = [8, 64], strides = [1, 1]} : vector<8x256xf32> to vector<8x64xf32>
    %451 = vector.extract_strided_slice %448 {offsets = [0, 128], sizes = [8, 64], strides = [1, 1]} : vector<8x256xf32> to vector<8x64xf32>
    %452 = vector.extract_strided_slice %444 {offsets = [0, 192], sizes = [8, 64], strides = [1, 1]} : vector<8x256xf32> to vector<8x64xf32>
    %453 = arith.mulf %450, %433 : vector<8x64xf32>
    %454 = arith.mulf %449, %452 : vector<8x64xf32>
    %455 = arith.addf %453, %454 : vector<8x64xf32>
    %456 = math.tanh %455 : vector<8x64xf32>
    %457 = arith.mulf %451, %456 : vector<8x64xf32>
    %458 = arith.index_cast %440 : i32 to index
    %c0_242 = arith.constant 0 : index
    %459 = vector.load %arg6[%458, %c0_242] : memref<64x64xf32, #tpu.memory_space<vmem>>, vector<8x64xf32>
    tpu.vector_store %arg6[%458, %c0_242], %457 {strides = array<i32>} : memref<64x64xf32, #tpu.memory_space<vmem>>, vector<8x64xf32>,
    %c7_i32_243 = arith.constant 7 : i32
    %cst_244 = arith.constant dense<0.000000e+00> : vector<8x256xf32>
    %460 = tpu.matmul %457, %252, %cst_244 {dimension_numbers = #tpu.dot_dimension_numbers<[1], [0], [0], [1], [0, 0, 1, 1], [], []>} : vector<8x64xf32>, vector<64x256xf32>, vector<8x256xf32> -> vector<8x256xf32>
    %c8_i32_245 = arith.constant 8 : i32
    %461 = arith.muli %c7_i32_243, %c8_i32_245 : i32
    %462 = tpu.assume_multiple %461, 8 : i32
    %463 = arith.index_cast %462 : i32 to index
    %c0_246 = arith.constant 0 : index
    %464 = vector.load %arg5[%463, %c0_246] : memref<64x256xf32, #tpu.memory_space<vmem>>, vector<8x256xf32>
    %465 = arith.addf %464, %460 : vector<8x256xf32>
    %466 = math.tanh %465 : vector<8x256xf32>
    %cst_247 = arith.constant 5.000000e-01 : f32
    %467 = vector.broadcast %cst_247 : f32 to vector<8x256xf32>
    %468 = arith.mulf %466, %467 : vector<8x256xf32>
    %cst_248 = arith.constant 5.000000e-01 : f32
    %469 = vector.broadcast %cst_248 : f32 to vector<8x256xf32>
    %470 = arith.addf %468, %469 : vector<8x256xf32>
    %471 = vector.extract_strided_slice %470 {offsets = [0, 0], sizes = [8, 64], strides = [1, 1]} : vector<8x256xf32> to vector<8x64xf32>
    %472 = vector.extract_strided_slice %470 {offsets = [0, 64], sizes = [8, 64], strides = [1, 1]} : vector<8x256xf32> to vector<8x64xf32>
    %473 = vector.extract_strided_slice %470 {offsets = [0, 128], sizes = [8, 64], strides = [1, 1]} : vector<8x256xf32> to vector<8x64xf32>
    %474 = vector.extract_strided_slice %466 {offsets = [0, 192], sizes = [8, 64], strides = [1, 1]} : vector<8x256xf32> to vector<8x64xf32>
    %475 = arith.mulf %472, %455 : vector<8x64xf32>
    %476 = arith.mulf %471, %474 : vector<8x64xf32>
    %477 = arith.addf %475, %476 : vector<8x64xf32>
    %478 = math.tanh %477 : vector<8x64xf32>
    %479 = arith.mulf %473, %478 : vector<8x64xf32>
    %480 = arith.index_cast %462 : i32 to index
    %c0_249 = arith.constant 0 : index
    %481 = vector.load %arg6[%480, %c0_249] : memref<64x64xf32, #tpu.memory_space<vmem>>, vector<8x64xf32>
    tpu.vector_store %arg6[%480, %c0_249], %479 {strides = array<i32>} : memref<64x64xf32, #tpu.memory_space<vmem>>, vector<8x64xf32>,
    %c8_i32_250 = arith.constant 8 : i32
    %c0_251 = arith.constant 0 : index
    %c0_252 = arith.constant 0 : index
    %482 = vector.load %arg6[%c0_251, %c0_252] : memref<64x64xf32, #tpu.memory_space<vmem>>, vector<64x64xf32>
    %c0_253 = arith.constant 0 : index
    %c0_254 = arith.constant 0 : index
    %483 = vector.load %arg8[%c0_253, %c0_254] : memref<64x64xf32, #tpu.memory_space<vmem>>, vector<64x64xf32>
    tpu.vector_store %arg8[%c0_253, %c0_254], %482 {strides = array<i32>} : memref<64x64xf32, #tpu.memory_space<vmem>>, vector<64x64xf32>,
    %c56_255 = arith.constant 56 : index
    %c32_256 = arith.constant 32 : index
    %484 = vector.load %arg6[%c56_255, %c32_256] : memref<64x64xf32, #tpu.memory_space<vmem>>, vector<8x32xf32>
    %c0_257 = arith.constant 0 : index
    %c32_258 = arith.constant 32 : index
    %485 = vector.load %arg8[%c0_257, %c32_258] : memref<64x64xf32, #tpu.memory_space<vmem>>, vector<8x32xf32>
    tpu.vector_store %arg8[%c0_257, %c32_258], %484 {strides = array<i32>} : memref<64x64xf32, #tpu.memory_space<vmem>>, vector<8x32xf32>,
    %c48_259 = arith.constant 48 : index
    %c32_260 = arith.constant 32 : index
    %486 = vector.load %arg6[%c48_259, %c32_260] : memref<64x64xf32, #tpu.memory_space<vmem>>, vector<8x32xf32>
    %c8_261 = arith.constant 8 : index
    %c32_262 = arith.constant 32 : index
    %487 = vector.load %arg8[%c8_261, %c32_262] : memref<64x64xf32, #tpu.memory_space<vmem>>, vector<8x32xf32>
    tpu.vector_store %arg8[%c8_261, %c32_262], %486 {strides = array<i32>} : memref<64x64xf32, #tpu.memory_space<vmem>>, vector<8x32xf32>,
    %c40_263 = arith.constant 40 : index
    %c32_264 = arith.constant 32 : index
    %488 = vector.load %arg6[%c40_263, %c32_264] : memref<64x64xf32, #tpu.memory_space<vmem>>, vector<8x32xf32>
    %c16_265 = arith.constant 16 : index
    %c32_266 = arith.constant 32 : index
    %489 = vector.load %arg8[%c16_265, %c32_266] : memref<64x64xf32, #tpu.memory_space<vmem>>, vector<8x32xf32>
    tpu.vector_store %arg8[%c16_265, %c32_266], %488 {strides = array<i32>} : memref<64x64xf32, #tpu.memory_space<vmem>>, vector<8x32xf32>,
    %c32_267 = arith.constant 32 : index
    %c32_268 = arith.constant 32 : index
    %490 = vector.load %arg6[%c32_267, %c32_268] : memref<64x64xf32, #tpu.memory_space<vmem>>, vector<8x32xf32>
    %c24_269 = arith.constant 24 : index
    %c32_270 = arith.constant 32 : index
    %491 = vector.load %arg8[%c24_269, %c32_270] : memref<64x64xf32, #tpu.memory_space<vmem>>, vector<8x32xf32>
    tpu.vector_store %arg8[%c24_269, %c32_270], %490 {strides = array<i32>} : memref<64x64xf32, #tpu.memory_space<vmem>>, vector<8x32xf32>,
    %c24_271 = arith.constant 24 : index
    %c32_272 = arith.constant 32 : index
    %492 = vector.load %arg6[%c24_271, %c32_272] : memref<64x64xf32, #tpu.memory_space<vmem>>, vector<8x32xf32>
    %c32_273 = arith.constant 32 : index
    %c32_274 = arith.constant 32 : index
    %493 = vector.load %arg8[%c32_273, %c32_274] : memref<64x64xf32, #tpu.memory_space<vmem>>, vector<8x32xf32>
    tpu.vector_store %arg8[%c32_273, %c32_274], %492 {strides = array<i32>} : memref<64x64xf32, #tpu.memory_space<vmem>>, vector<8x32xf32>,
    %c16_275 = arith.constant 16 : index
    %c32_276 = arith.constant 32 : index
    %494 = vector.load %arg6[%c16_275, %c32_276] : memref<64x64xf32, #tpu.memory_space<vmem>>, vector<8x32xf32>
    %c40_277 = arith.constant 40 : index
    %c32_278 = arith.constant 32 : index
    %495 = vector.load %arg8[%c40_277, %c32_278] : memref<64x64xf32, #tpu.memory_space<vmem>>, vector<8x32xf32>
    tpu.vector_store %arg8[%c40_277, %c32_278], %494 {strides = array<i32>} : memref<64x64xf32, #tpu.memory_space<vmem>>, vector<8x32xf32>,
    %c8_279 = arith.constant 8 : index
    %c32_280 = arith.constant 32 : index
    %496 = vector.load %arg6[%c8_279, %c32_280] : memref<64x64xf32, #tpu.memory_space<vmem>>, vector<8x32xf32>
    %c48_281 = arith.constant 48 : index
    %c32_282 = arith.constant 32 : index
    %497 = vector.load %arg8[%c48_281, %c32_282] : memref<64x64xf32, #tpu.memory_space<vmem>>, vector<8x32xf32>
    tpu.vector_store %arg8[%c48_281, %c32_282], %496 {strides = array<i32>} : memref<64x64xf32, #tpu.memory_space<vmem>>, vector<8x32xf32>,
    %c0_283 = arith.constant 0 : index
    %c32_284 = arith.constant 32 : index
    %498 = vector.load %arg6[%c0_283, %c32_284] : memref<64x64xf32, #tpu.memory_space<vmem>>, vector<8x32xf32>
    %c56_285 = arith.constant 56 : index
    %c32_286 = arith.constant 32 : index
    %499 = vector.load %arg8[%c56_285, %c32_286] : memref<64x64xf32, #tpu.memory_space<vmem>>, vector<8x32xf32>
    tpu.vector_store %arg8[%c56_285, %c32_286], %498 {strides = array<i32>} : memref<64x64xf32, #tpu.memory_space<vmem>>, vector<8x32xf32>,
    %c0_287 = arith.constant 0 : index
    %c0_288 = arith.constant 0 : index
    %500 = vector.load %arg8[%c0_287, %c0_288] : memref<64x64xf32, #tpu.memory_space<vmem>>, vector<64x64xf32>
    %c0_289 = arith.constant 0 : index
    %c0_290 = arith.constant 0 : index
    %501 = vector.load %arg2[%c0_289, %c0_290] : memref<72x128xf32, #tpu.memory_space<vmem>>, vector<64x16xf32>
    %c64 = arith.constant 64 : index
    %c0_291 = arith.constant 0 : index
    %502 = vector.load %arg2[%c64, %c0_291] : memref<72x128xf32, #tpu.memory_space<vmem>>, vector<1x16xf32>
    %c65 = arith.constant 65 : index
    %c0_292 = arith.constant 0 : index
    %503 = vector.load %arg2[%c65, %c0_292] : memref<72x128xf32, #tpu.memory_space<vmem>>, vector<1x16xf32>
    %c66 = arith.constant 66 : index
    %c0_293 = arith.constant 0 : index
    %504 = vector.load %arg2[%c66, %c0_293] : memref<72x128xf32, #tpu.memory_space<vmem>>, vector<1x1xf32>
    %cst_294 = arith.constant dense<0.000000e+00> : vector<64x16xf32>
    %505 = tpu.matmul %500, %501, %cst_294 {dimension_numbers = #tpu.dot_dimension_numbers<[1], [0], [0], [1], [0, 0, 1, 1], [], []>} : vector<64x64xf32>, vector<64x16xf32>, vector<64x16xf32> -> vector<64x16xf32>
    %506 = vector.broadcast %502 : vector<1x16xf32> to vector<64x16xf32>
    %507 = arith.addf %505, %506 : vector<64x16xf32>
    %508 = math.tanh %507 : vector<64x16xf32>
    %509 = vector.broadcast %503 : vector<1x16xf32> to vector<64x16xf32>
    %510 = arith.mulf %508, %509 : vector<64x16xf32>
    %cst_295 = arith.constant dense<0.000000e+00> : vector<64xf32>
    %511 = vector.multi_reduction <add>, %510, %cst_295 [1] : vector<64x16xf32> to vector<64xf32>
    %512 = vector.shape_cast %511 : vector<64xf32> to vector<64x1xf32>
    %513 = vector.broadcast %504 : vector<1x1xf32> to vector<64x1xf32>
    %514 = arith.addf %512, %513 : vector<64x1xf32>
    %c0_296 = arith.constant 0 : index
    %c0_297 = arith.constant 0 : index
    %515 = vector.load %arg3[%c0_296, %c0_297] : memref<64x1xf32, #tpu.memory_space<vmem>>, vector<64x1xf32>
    tpu.vector_store %arg3[%c0_296, %c0_297], %514 {strides = array<i32>} : memref<64x1xf32, #tpu.memory_space<vmem>>, vector<64x1xf32>,
    return
  }
}

</mosaic_0001>

<bundles_post_ra>
// kernel: lstm_predictor_forward.1
= control target key start
LH: loop header
LB: loop body
LE: loop exit
PB: predicated region body
PF: predicated region fallthrough
CT: control target
= control target key end

     0   :  { %8 = vsyncpa [#allocation8], 0  ;;  %s3061_s12 = smov [#allocation7]   ;;  %s3834_s0 = inlined_call_operand.vmem [shape: f32[64,8], index: 0, kind: input, shape index: {}]   ;;  %s3835_s1 = inlined_call_operand.hbm [shape: f32[144,512], index: 1, kind: input, shape index: {}]   ;;  %s3836_s2 = inlined_call_operand.vmem [shape: f32[72,128], index: 2, kind: input, shape index: {}]   ;;  %s3837_s3 = inlined_call_operand.vmem [shape: f32[64,1], index: 3, kind: output, shape index: {}]  }
   0x1   :  { %s16_s13 = sshll.u32 %s3061_s12, 4  ;;  %s17_s13 = int_to_ptr.vmem [resolvable:$true] %s16_s13 }
   0x2   :  { %s3047_s14 = scalar_lea.vmem %s17_s13, 9216  ;;  %p3052_p1 = scmp.lt.s32.totalorder %s17_s13, %s17_s13 }
   0x3   :  { %p3048_p0 = scmp.ne.s32.totalorder %s17_s13, %s3047_s14  ;;  %p3053_p2 = scmp.lt.s32.totalorder %s3047_s14, %s3047_s14 }
   0x5   :  { %p3054_p3 = por %p3053_p2, %p3052_p1 }
   0x7   :  { %p3055_p4 = pnand %p3054_p3, %p3048_p0 }
   0x9   :  { %3058 = shalt.err (!%p3055_p4)
}
   0xa   :  { %s3062_s15 = smov 512   ;;  %s3063_s16 = smov 32  }
   0xb   :  { %22 = dma.hbm_to_vmem [thread:$0]  %s3835_s1, 9216, %s17_s13, [#allocation8], %s3062_s15, %s3062_s15, %s3063_s16  }
   0xc   :  { %3059 = dma.done.wait [#allocation8], 9216  }
   0xd   :  { %3060 = vsyncadd [#allocation8], 4294958080  ;;  %v3064_v0 = vmov 0.0   ;;  %v37_v1 = vld [vmem:[#allocation7 + $0x8] sm:$0xff]  ;;  %v36_v2 = vld [vmem:[#allocation7] sm:$0xff]  ;;  %vm58_vm0 = vcmask 64512   ;;  %v348_v31 = vlaneseq }
   0xe   :  { %171 = vmatprep.mubr.f32.mxu1 %v3064_v0  ;;  %147 = vmatprep.mubr.f32.mxu0 %v3064_v0  ;;  %v3094_v3 = vld [vmem:[%s3834_s0 + $0x20] sm:$0xff]  ;;  %v39_v4 = vld [vmem:[#allocation7 + $0x18] sm:$0xff]  ;;  %v38_v5 = vld [vmem:[#allocation7 + $0x10] sm:$0xff]  ;;  %vm432_vm1 = vcmask 523264   ;;  %vm1297_vm2 = vcmask 523520   ;;  %vm2761_vm3 = vcmask 130048  }
   0xf   :  { %2920 = vmatprep.subr.mxu1 %v37_v1  ;;  %113 = vmatprep.subr.mxu0 %v37_v1  ;;  %v3101_v6 = vld [vmem:[%s3834_s0 + $0x28] sm:$0xff]  ;;  %v28_v7 = vld [vmem:[%s3834_s0] sm:$0xff]  ;;  %v3130_v14 = vld [vmem:[%s3834_s0 + $0x30] sm:$0xff]  ;;  %v3247_v35 = vshrl.u32 %v348_v31, 7  ;;  %vm2798_vm4 = vcmask 7168  }
  0x10   :  { %2921 = vmatpush1.msra.mxu1 %v36_v2  ;;  %114 = vmatpush1.msra.mxu0 %v36_v2  ;;  %v3107_v8 = vld [vmem:[#allocation7 + $0x208] sm:$0xff]  ;;  %v3109_v9 = vld [vmem:[#allocation7 + $0x200] sm:$0xff]  ;;  %v3155_v20 = vld [vmem:[%s3834_s0 + $0x38] sm:$0xff] }
  0x11   :  { %2823 = vmatmul.mubr.msk.f32.vlgmr.msra.gmra.mxu1 %vm58_vm0, %v3094_v3  ;;  %226 = vmatprep.subr.mxu1 %v39_v4  ;;  %v3111_v10 = vld [vmem:[#allocation7 + $0x1e8] sm:$0xff]  ;;  %v3115_v11 = vld [vmem:[#allocation7 + $0x1e0] sm:$0xff]  ;;  %v30_v21 = vld [vmem:[%s3834_s0 + $0x10] sm:$0xff]  ;;  %v350_v39 = vsub.s32 0, %v3247_v35  ;;  %v354_v43 = vsub.s32 1, %v3247_v35 }
  0x12   :  { %227 = vmatpush1.msra.mxu1 %v38_v5  ;;  %177 = vmatprep.mubr.f32.mxu1 %v3064_v0  ;;  %v3119_v12 = vld [vmem:[#allocation7 + $0x1c8] sm:$0xff]  ;;  %v3124_v13 = vld [vmem:[#allocation7 + $0x1c0] sm:$0xff]  ;;  %v31_v26 = vld [vmem:[%s3834_s0 + $0x18] sm:$0xff] }
  0x13   :  { %2819 = vmatmul.mubr.msk.f32.vlgmr.msra.gmra.mxu0 %vm58_vm0, %v28_v7  ;;  %452 = vmatprep.subr.mxu0 %v3107_v8  ;;  %v29_v15 = vld [vmem:[%s3834_s0 + $0x8] sm:$0xff]  ;;  %v3140_v17 = vld [vmem:[#allocation7 + $0x1a0] sm:$0xff]  ;;  %s3065_s0 = smov 64  }
  0x14   :  { %153 = vmatprep.mubr.f32.mxu0 %v3064_v0  ;;  %453 = vmatpush1.msra.mxu0 %v3109_v9  ;;  %v3136_v16 = vld [vmem:[#allocation7 + $0x1a8] sm:$0xff]  ;;  %v3149_v19 = vld [vmem:[#allocation7 + $0x180] sm:$0xff] }
  0x15   :  { %2824 = vmatmul.mubr.msk.f32.gmra.mxu1 %vm58_vm0, %v3101_v6  ;;  %454 = vmatprep.subr.mxu0 %v3111_v10  ;;  %v3144_v18 = vld [vmem:[#allocation7 + $0x188] sm:$0xff]  ;;  %v3165_v23 = vld [vmem:[#allocation7 + $0x160] sm:$0xff] }
  0x16   :  { %183 = vmatprep.mubr.f32.mxu1 %v3064_v0  ;;  %455 = vmatpush1.msra.mxu0 %v3115_v11  ;;  %v3161_v22 = vld [vmem:[#allocation7 + $0x168] sm:$0xff]  ;;  %v3174_v25 = vld [vmem:[#allocation7 + $0x140] sm:$0xff] }
  0x17   :  { %2820 = vmatmul.mubr.msk.f32.gmra.mxu0 %vm58_vm0, %v29_v15  ;;  %456 = vmatprep.subr.mxu0 %v3119_v12  ;;  %v3169_v24 = vld [vmem:[#allocation7 + $0x148] sm:$0xff]  ;;  %v3185_v28 = vld [vmem:[#allocation7 + $0x120] sm:$0xff] }
  0x18   :  { %159 = vmatprep.mubr.f32.mxu0 %v3064_v0  ;;  %457 = vmatpush1.msra.mxu0 %v3124_v13  ;;  %v3181_v27 = vld [vmem:[#allocation7 + $0x128] sm:$0xff] }
  0x19   :  { %2825 = vmatmul.mubr.msk.f32.gmra.mxu1 %vm58_vm0, %v3130_v14  ;;  %458 = vmatprep.subr.mxu0 %v3136_v16  ;;  %v57_v42 = vld [vmem:[#allocation7 + $0x220] ss:$8 sm:$0x3] }
  0x1a   :  { %189 = vmatprep.mubr.f32.mxu1 %v3064_v0  ;;  %459 = vmatpush1.msra.mxu0 %v3140_v17  ;;  %v351_v45 = vrot.slane %v57_v42, %v350_v39  ;;  %v355_v49 = vrot.slane %v57_v42, %v354_v43 }
  0x1b   :  { %2821 = vmatmul.mubr.msk.f32.gmra.mxu0 %vm58_vm0, %v30_v21  ;;  %460 = vmatprep.subr.mxu0 %v3144_v18 }
  0x1c   :  { %165 = vmatprep.mubr.f32.mxu0 %v3064_v0  ;;  %461 = vmatpush1.msra.mxu0 %v3149_v19 }
  0x1d   :  { %2826 = vmatmul.mubr.msk.f32.gmra.mxu1 %vm58_vm0, %v3155_v20  ;;  %462 = vmatprep.subr.mxu0 %v3161_v22 }
  0x1e   :  { %260 = vmatprep.mubr.f32.mxu1 %v3064_v0  ;;  %463 = vmatpush1.msra.mxu0 %v3165_v23 }
  0x1f   :  { %2822 = vmatmul.mubr.msk.f32.gmra.mxu0 %vm58_vm0, %v31_v26  ;;  %464 = vmatprep.subr.mxu0 %v3169_v24 }
  0x20   :  { %465 = vmatpush1.msra.mxu0 %v3174_v25  ;;  %500 = vmatprep.mubr.f32.mxu0 %v3064_v0 }
  0x21   :  { %2827 = vmatmul.mubr.msk.f32.vlgmr.msra.gmra.mxu1 %vm58_vm0, %v28_v7  ;;  %466 = vmatprep.subr.mxu0 %v3181_v27 }
  0x22   :  { %266 = vmatprep.mubr.f32.mxu1 %v3064_v0  ;;  %467 = vmatpush1.msra.mxu0 %v3185_v28 }
  0x23   :  { %501 = vmatmul.mubr.f32.vlgmr.msra.gmra.mxu0 %v3064_v0  ;;  %557 = vmatprep.subr.mxu1 %v3107_v8 }
  0x24   :  { %558 = vmatpush1.msra.mxu1 %v3109_v9  ;;  %663 = vmatprep.subr.mxu0 %v3107_v8 }
  0x25   :  { %2828 = vmatmul.mubr.msk.f32.gmra.mxu1 %vm58_vm0, %v29_v15  ;;  %559 = vmatprep.subr.mxu1 %v3111_v10 }
  0x26   :  { %272 = vmatprep.mubr.f32.mxu1 %v3064_v0  ;;  %560 = vmatpush1.msra.mxu1 %v3115_v11 }
  0x27   :  { %561 = vmatprep.subr.mxu1 %v3119_v12  ;;  %664 = vmatpush1.msra.mxu0 %v3109_v9 }
  0x28   :  { %562 = vmatpush1.msra.mxu1 %v3124_v13  ;;  %665 = vmatprep.subr.mxu0 %v3111_v10 }
  0x29   :  { %2829 = vmatmul.mubr.msk.f32.gmra.mxu1 %vm58_vm0, %v30_v21  ;;  %563 = vmatprep.subr.mxu1 %v3136_v16 }
  0x2a   :  { %278 = vmatprep.mubr.f32.mxu1 %v3064_v0  ;;  %564 = vmatpush1.msra.mxu1 %v3140_v17 }
  0x2b   :  { %565 = vmatprep.subr.mxu1 %v3144_v18  ;;  %666 = vmatpush1.msra.mxu0 %v3115_v11 }
  0x2c   :  { %566 = vmatpush1.msra.mxu1 %v3149_v19  ;;  %667 = vmatprep.subr.mxu0 %v3119_v12 }
  0x2d   :  { %2830 = vmatmul.mubr.msk.f32.gmra.mxu1 %vm58_vm0, %v31_v26  ;;  %567 = vmatprep.subr.mxu1 %v3161_v22 }
  0x2e   :  { %284 = vmatprep.mubr.f32.mxu1 %v3064_v0  ;;  %568 = vmatpush1.msra.mxu1 %v3165_v23 }
  0x2f   :  { %569 = vmatprep.subr.mxu1 %v3169_v24  ;;  %668 = vmatpush1.msra.mxu0 %v3124_v13 }
  0x30   :  { %570 = vmatpush1.msra.mxu1 %v3174_v25  ;;  %669 = vmatprep.subr.mxu0 %v3136_v16 }
  0x31   :  { %2831 = vmatmul.mubr.msk.f32.gmra.mxu1 %vm58_vm0, %v3094_v3  ;;  %571 = vmatprep.subr.mxu1 %v3181_v27 }
  0x32   :  { %290 = vmatprep.mubr.f32.mxu1 %v3064_v0  ;;  %572 = vmatpush1.msra.mxu1 %v3185_v28 }
  0x33   :  { %670 = vmatpush1.msra.mxu0 %v3140_v17  ;;  %711 = vmatprep.mubr.f32.mxu0 %v3064_v0 }
  0x34   :  { %671 = vmatprep.subr.mxu0 %v3144_v18  ;;  %769 = vmatprep.subr.mxu1 %v3107_v8 }
  0x35   :  { %2832 = vmatmul.mubr.msk.f32.gmra.mxu1 %vm58_vm0, %v3101_v6  ;;  %672 = vmatpush1.msra.mxu0 %v3149_v19 }
  0x36   :  { %296 = vmatprep.mubr.f32.mxu1 %v3064_v0  ;;  %673 = vmatprep.subr.mxu0 %v3161_v22 }
  0x37   :  { %674 = vmatpush1.msra.mxu0 %v3165_v23 }
  0x38   :  { %675 = vmatprep.subr.mxu0 %v3169_v24 }
  0x39   :  { %2833 = vmatmul.mubr.msk.f32.gmra.mxu1 %vm58_vm0, %v3130_v14  ;;  %676 = vmatpush1.msra.mxu0 %v3174_v25 }
  0x3a   :  { %302 = vmatprep.mubr.f32.mxu1 %v3064_v0  ;;  %677 = vmatprep.subr.mxu0 %v3181_v27 }
  0x3b   :  { %678 = vmatpush1.msra.mxu0 %v3185_v28 }
  0x3c   :  { %875 = vmatprep.subr.mxu0 %v3107_v8 }
  0x3d   :  { %2834 = vmatmul.mubr.msk.f32.gmra.mxu1 %vm58_vm0, %v3155_v20 }
  0x3e   :  { %605 = vmatprep.mubr.f32.mxu1 %v3064_v0 }
  0xd1   :  { %v173_v29 = vpop.f32.mrf.mxu1 }
  0xd3   :  { %v175_v30 = vpop.f32.mrf.mxu1  ;;  %v149_v33 = vpop.f32.mrf.mxu0 }
  0xd5   :  { %v179_v32 = vpop.f32.mrf.mxu1  ;;  %v151_v37 = vpop.f32.mrf.mxu0 }
  0xd7   :  { %v181_v34 = vpop.f32.mrf.mxu1  ;;  %v155_v41 = vpop.f32.mrf.mxu0 }
  0xd9   :  { %v185_v36 = vpop.f32.mrf.mxu1  ;;  %v157_v47 = vpop.f32.mrf.mxu0 }
  0xdb   :  { %v187_v38 = vpop.f32.mrf.mxu1  ;;  %v161_v54 = vpop.f32.mrf.mxu0 }
  0xdd   :  { %v191_v40 = vpop.f32.mrf.mxu1  ;;  %v163_v61 = vpop.f32.mrf.mxu0 }
  0xdf   :  { %v193_v44 = vpop.f32.mrf.mxu1  ;;  %v167_v5 = vpop.f32.mrf.mxu0 }
  0xe1   :  { %v262_v46 = vpop.f32.mrf.mxu1  ;;  %v169_v26 = vpop.f32.mrf.mxu0 }
  0xe2   :  { %v426_v48 = vadd.f32 %v262_v46, %v191_v40 }
  0xe3   :  { %v264_v50 = vpop.f32.mrf.mxu1 }
  0xe4   :  { %v427_v51 = vadd.f32 %v264_v50, %v193_v44  ;;  %v3255_v52 = vadd.f32 %v426_v48, %v351_v45 }
  0xe5   :  { %v268_v53 = vpop.f32.mrf.mxu1 }
  0xe6   :  { %v416_v55 = vadd.f32 %v268_v53, %v185_v36  ;;  %v3257_v56 = vadd.f32 %v427_v51, %v355_v49 }
  0xe7   :  { %v270_v57 = vpop.f32.mrf.mxu1 }
  0xe8   :  { %v417_v58 = vadd.f32 %v270_v57, %v187_v38  ;;  %v3259_v59 = vadd.f32 %v416_v55, %v351_v45 }
  0xe9   :  { %v274_v60 = vpop.f32.mrf.mxu1 }
  0xea   :  { %v406_v62 = vadd.f32 %v274_v60, %v179_v32  ;;  %v3261_v63 = vadd.f32 %v417_v58, %v355_v49 }
  0xeb   :  { %v276_v1 = vpop.f32.mrf.mxu1 }
  0xec   :  { %v407_v2 = vadd.f32 %v276_v1, %v181_v34  ;;  %v3263_v3 = vadd.f32 %v406_v62, %v351_v45 }
  0xed   :  { %v280_v4 = vpop.f32.mrf.mxu1 }
  0xee   :  { %v396_v6 = vadd.f32 %v280_v4, %v173_v29  ;;  %v3265_v7 = vadd.f32 %v407_v2, %v355_v49  ;;  %v502_v2 = vpop.f32.mrf.mxu0 }
  0xef   :  { %v282_v14 = vpop.f32.mrf.mxu1 }
  0xf0   :  { %v397_v15 = vadd.f32 %v282_v14, %v175_v30  ;;  %v3267_v20 = vadd.f32 %v396_v6, %v351_v45  ;;  %v504_v14 = vpop.f32.mrf.mxu0 }
  0xf1   :  { %v286_v21 = vpop.f32.mrf.mxu1 }
  0xf2   :  { %v386_v31 = vadd.f32 %v286_v21, %v167_v5  ;;  %v3269_v36 = vadd.f32 %v397_v15, %v355_v49 }
  0xf3   :  { %v288_v32 = vpop.f32.mrf.mxu1 }
  0xf4   :  { %v387_v38 = vadd.f32 %v288_v32, %v169_v26  ;;  %v3271_v40 = vadd.f32 %v386_v31, %v351_v45 }
  0xf5   :  { %v292_v34 = vpop.f32.mrf.mxu1 }
  0xf6   :  { %v376_v42 = vadd.f32 %v292_v34, %v161_v54  ;;  %v3273_v44 = vadd.f32 %v387_v38, %v355_v49 }
  0xf7   :  { %v294_v29 = vpop.f32.mrf.mxu1 }
  0xf8   :  { %v377_v46 = vadd.f32 %v294_v29, %v163_v61  ;;  %v3275_v48 = vadd.f32 %v376_v42, %v351_v45 }
  0xf9   :  { %v298_v30 = vpop.f32.mrf.mxu1 }
  0xfa   :  { %v366_v50 = vadd.f32 %v298_v30, %v155_v41  ;;  %v3277_v51 = vadd.f32 %v377_v46, %v355_v49 }
  0xfb   :  { %v300_v53 = vpop.f32.mrf.mxu1 }
  0xfc   :  { %v367_v55 = vadd.f32 %v300_v53, %v157_v47  ;;  %v368_v57 = vadd.f32 %v366_v50, %v351_v45 }
  0xfd   :  { %v304_v58 = vpop.f32.mrf.mxu1 }
  0xfe   :  { %v345_v60 = vadd.f32 %v304_v58, %v149_v33  ;;  %v369_v62 = vadd.f32 %v367_v55, %v355_v49 }
  0xff   :  { %v306_v1 = vpop.f32.mrf.mxu1 }
 0x100   :  { %v346_v4 = vadd.f32 %v306_v1, %v151_v37  ;;  %v358_v54 = vadd.f32 %v351_v45, %v345_v60 }
 0x102   :  { %v512_v5 = vadd.f32 %v502_v2, %v358_v54  ;;  %v359_v6 = vadd.f32 %v355_v49, %v346_v4 }
 0x104   :  { %v513_v61 = vadd.f32 %v504_v14, %v359_v6 }
 0x106   :  { %2927 = vtanh.f32 %v513_v61 }
 0x107   :  { %2929 = vtanh.f32 %v512_v5 }
 0x113   :  { %v2928_v15 = vpop.eup %2927 }
 0x114   :  { %522 = vrot.lane.b32.xlu0 %v2928_v15, %s3065_s0  ;;  %v2930_v41 = vpop.eup %2929  ;;  %v517_v32 = vmul.f32 0.5, %v2928_v15 }
 0x115   :  { %v516_v47 = vmul.f32 0.5, %v2930_v41 }
 0x116   :  { %v519_v38 = vadd.f32 0.5, %v517_v32 }
 0x117   :  { %v518_v21 = vadd.f32 0.5, %v516_v47 }
 0x119   :  { %v520_v31 = vmul.f32 0.0, %v518_v21 }
 0x186   :  { %v523_v26 = vpop.permute.xlu0 %522 }
 0x187   :  { %v525_v33 = vmul.f32 %v523_v26, %v518_v21 }
 0x189   :  { %527 = vrot.lane.b32.xlu0 %v525_v33, %s3065_s0 }
 0x1fb   :  { %v528_v37 = vpop.permute.xlu0 %527 }
 0x1fc   :  { %v530_v45 = vadd.f32 %v528_v37, %v520_v31 }
 0x1fe   :  { %2931 = vtanh.f32 %v530_v45 }
 0x20b   :  { %v2932_v49 = vpop.eup %2931 }
 0x20c   :  { %533 = vrot.lane.b32.xlu1 %v2932_v49, %s3065_s0 }
 0x27e   :  { %v534_v34 = vpop.permute.xlu1 %533 }
 0x27f   :  { %v536_v42 = vmul.f32 %v534_v34, %v519_v38 }
 0x281   :  { %537 = vst.msk [vmem:[#allocation4] sm:$0xff] %vm432_vm1, %v536_v42  ;;  %2835 = vmatmul.mubr.msk.f32.vlgmr.msra.gmra.mxu1 %vm432_vm1, %v536_v42 }
 0x282   :  { %770 = vmatpush1.msra.mxu1 %v3109_v9  ;;  %817 = vmatprep.mubr.f32.mxu1 %v3064_v0 }
 0x283   :  { %771 = vmatprep.subr.mxu1 %v3111_v10 }
 0x284   :  { %772 = vmatpush1.msra.mxu1 %v3115_v11 }
 0x285   :  { %773 = vmatprep.subr.mxu1 %v3119_v12 }
 0x286   :  { %774 = vmatpush1.msra.mxu1 %v3124_v13 }
 0x287   :  { %775 = vmatprep.subr.mxu1 %v3136_v16 }
 0x288   :  { %v3291_v29 = vld [vmem:[#allocation4] sm:$0xff]  ;;  %776 = vmatpush1.msra.mxu1 %v3140_v17 }
 0x289   :  { %1288 = vst.msk [vmem:[#allocation5] sm:$0xff] %vm432_vm1, %v3291_v29  ;;  %777 = vmatprep.subr.mxu1 %v3144_v18 }
 0x28a   :  { %778 = vmatpush1.msra.mxu1 %v3149_v19 }
 0x28b   :  { %779 = vmatprep.subr.mxu1 %v3161_v22 }
 0x28c   :  { %780 = vmatpush1.msra.mxu1 %v3165_v23 }
 0x28d   :  { %781 = vmatprep.subr.mxu1 %v3169_v24 }
 0x28e   :  { %782 = vmatpush1.msra.mxu1 %v3174_v25 }
 0x28f   :  { %783 = vmatprep.subr.mxu1 %v3181_v27 }
 0x290   :  { %784 = vmatpush1.msra.mxu1 %v3185_v28 }
 0x291   :  { %981 = vmatprep.subr.mxu1 %v3107_v8 }
 0x341   :  { %v607_v46 = vpop.f32.mrf.mxu1 }
 0x342   :  { %v617_v30 = vadd.f32 %v607_v46, %v368_v57 }
 0x343   :  { %v609_v50 = vpop.f32.mrf.mxu1 }
 0x344   :  { %v618_v53 = vadd.f32 %v609_v50, %v369_v62 }
 0x346   :  { %2933 = vtanh.f32 %v618_v53 }
 0x347   :  { %2935 = vtanh.f32 %v617_v30 }
 0x353   :  { %v2934_v55 = vpop.eup %2933 }
 0x354   :  { %627 = vrot.lane.b32.xlu1 %v2934_v55, %s3065_s0  ;;  %v2936_v58 = vpop.eup %2935  ;;  %v622_v57 = vmul.f32 0.5, %v2934_v55 }
 0x355   :  { %v621_v60 = vmul.f32 0.5, %v2936_v58 }
 0x356   :  { %v624_v62 = vadd.f32 0.5, %v622_v57 }
 0x357   :  { %v623_v1 = vadd.f32 0.5, %v621_v60 }
 0x359   :  { %v625_v54 = vmul.f32 %v623_v1, %v530_v45 }
 0x3c6   :  { %v628_v2 = vpop.permute.xlu1 %627 }
 0x3c7   :  { %v630_v4 = vmul.f32 %v628_v2, %v623_v1 }
 0x3c9   :  { %632 = vrot.lane.b32.xlu0 %v630_v4, %s3065_s0 }
 0x43b   :  { %v633_v5 = vpop.permute.xlu0 %632 }
 0x43c   :  { %v635_v6 = vadd.f32 %v633_v5, %v625_v54 }
 0x43e   :  { %2937 = vtanh.f32 %v635_v6 }
 0x44b   :  { %v2938_v14 = vpop.eup %2937 }
 0x44c   :  { %638 = vrot.lane.b32.xlu1 %v2938_v14, %s3065_s0 }
 0x4be   :  { %v639_v61 = vpop.permute.xlu1 %638 }
 0x4bf   :  { %v641_v15 = vmul.f32 %v639_v61, %v624_v62 }
 0x4c1   :  { %643 = vst.msk [vmem:[#allocation4 + $0x8] sm:$0xff] %vm432_vm1, %v641_v15  ;;  %2836 = vmatmul.mubr.msk.f32.vlgmr.msra.gmra.mxu0 %vm432_vm1, %v641_v15 }
 0x4c2   :  { %876 = vmatpush1.msra.mxu0 %v3109_v9  ;;  %923 = vmatprep.mubr.f32.mxu0 %v3064_v0 }
 0x4c3   :  { %877 = vmatprep.subr.mxu0 %v3111_v10 }
 0x4c4   :  { %878 = vmatpush1.msra.mxu0 %v3115_v11 }
 0x4c5   :  { %879 = vmatprep.subr.mxu0 %v3119_v12 }
 0x4c6   :  { %880 = vmatpush1.msra.mxu0 %v3124_v13 }
 0x4c7   :  { %881 = vmatprep.subr.mxu0 %v3136_v16 }
 0x4c8   :  { %v3317_v41 = vld [vmem:[#allocation4 + $0x8] sm:$0xff]  ;;  %882 = vmatpush1.msra.mxu0 %v3140_v17 }
 0x4c9   :  { %1289 = vst.msk [vmem:[#allocation5 + $0x8] sm:$0xff] %vm432_vm1, %v3317_v41  ;;  %883 = vmatprep.subr.mxu0 %v3144_v18 }
 0x4ca   :  { %884 = vmatpush1.msra.mxu0 %v3149_v19 }
 0x4cb   :  { %885 = vmatprep.subr.mxu0 %v3161_v22 }
 0x4cc   :  { %886 = vmatpush1.msra.mxu0 %v3165_v23 }
 0x4cd   :  { %887 = vmatprep.subr.mxu0 %v3169_v24 }
 0x4ce   :  { %888 = vmatpush1.msra.mxu0 %v3174_v25 }
 0x4cf   :  { %889 = vmatprep.subr.mxu0 %v3181_v27 }
 0x4d0   :  { %890 = vmatpush1.msra.mxu0 %v3185_v28 }
 0x4d1   :  { %1087 = vmatprep.subr.mxu0 %v3107_v8 }
 0x581   :  { %v713_v47 = vpop.f32.mrf.mxu0 }
 0x582   :  { %v723_v21 = vadd.f32 %v713_v47, %v3275_v48 }
 0x583   :  { %v715_v26 = vpop.f32.mrf.mxu0 }
 0x584   :  { %v724_v33 = vadd.f32 %v715_v26, %v3277_v51 }
 0x586   :  { %2939 = vtanh.f32 %v724_v33 }
 0x587   :  { %2941 = vtanh.f32 %v723_v21 }
 0x593   :  { %v2940_v31 = vpop.eup %2939 }
 0x594   :  { %733 = vrot.lane.b32.xlu0 %v2940_v31, %s3065_s0  ;;  %v2942_v37 = vpop.eup %2941  ;;  %v728_v51 = vmul.f32 0.5, %v2940_v31 }
 0x595   :  { %v727_v45 = vmul.f32 0.5, %v2942_v37 }
 0x596   :  { %v730_v30 = vadd.f32 0.5, %v728_v51 }
 0x597   :  { %v729_v49 = vadd.f32 0.5, %v727_v45 }
 0x599   :  { %v731_v34 = vmul.f32 %v729_v49, %v635_v6 }
 0x606   :  { %v734_v32 = vpop.permute.xlu0 %733 }
 0x607   :  { %v736_v38 = vmul.f32 %v734_v32, %v729_v49 }
 0x609   :  { %738 = vrot.lane.b32.xlu1 %v736_v38, %s3065_s0 }
 0x67b   :  { %v739_v42 = vpop.permute.xlu1 %738 }
 0x67c   :  { %v741_v46 = vadd.f32 %v739_v42, %v731_v34 }
 0x67e   :  { %2943 = vtanh.f32 %v741_v46 }
 0x68b   :  { %v2944_v48 = vpop.eup %2943 }
 0x68c   :  { %744 = vrot.lane.b32.xlu0 %v2944_v48, %s3065_s0 }
 0x6fe   :  { %v745_v50 = vpop.permute.xlu0 %744 }
 0x6ff   :  { %v747_v53 = vmul.f32 %v745_v50, %v730_v30 }
 0x701   :  { %749 = vst.msk [vmem:[#allocation4 + $0x10] sm:$0xff] %vm432_vm1, %v747_v53  ;;  %2837 = vmatmul.mubr.msk.f32.vlgmr.msra.gmra.mxu1 %vm432_vm1, %v747_v53 }
 0x702   :  { %982 = vmatpush1.msra.mxu1 %v3109_v9  ;;  %1029 = vmatprep.mubr.f32.mxu1 %v3064_v0 }
 0x703   :  { %983 = vmatprep.subr.mxu1 %v3111_v10 }
 0x704   :  { %984 = vmatpush1.msra.mxu1 %v3115_v11 }
 0x705   :  { %985 = vmatprep.subr.mxu1 %v3119_v12 }
 0x706   :  { %986 = vmatpush1.msra.mxu1 %v3124_v13 }
 0x707   :  { %987 = vmatprep.subr.mxu1 %v3136_v16 }
 0x708   :  { %v3345_v55 = vld [vmem:[#allocation4 + $0x10] sm:$0xff]  ;;  %988 = vmatpush1.msra.mxu1 %v3140_v17 }
 0x709   :  { %1290 = vst.msk [vmem:[#allocation5 + $0x10] sm:$0xff] %vm432_vm1, %v3345_v55  ;;  %989 = vmatprep.subr.mxu1 %v3144_v18 }
 0x70a   :  { %990 = vmatpush1.msra.mxu1 %v3149_v19 }
 0x70b   :  { %991 = vmatprep.subr.mxu1 %v3161_v22 }
 0x70c   :  { %992 = vmatpush1.msra.mxu1 %v3165_v23 }
 0x70d   :  { %993 = vmatprep.subr.mxu1 %v3169_v24 }
 0x70e   :  { %994 = vmatpush1.msra.mxu1 %v3174_v25 }
 0x70f   :  { %995 = vmatprep.subr.mxu1 %v3181_v27 }
 0x710   :  { %996 = vmatpush1.msra.mxu1 %v3185_v28 }
 0x711   :  { %1193 = vmatprep.subr.mxu1 %v3107_v8 }
 0x7c1   :  { %v819_v58 = vpop.f32.mrf.mxu1 }
 0x7c2   :  { %v829_v60 = vadd.f32 %v819_v58, %v3271_v40 }
 0x7c3   :  { %v821_v1 = vpop.f32.mrf.mxu1 }
 0x7c4   :  { %v830_v2 = vadd.f32 %v821_v1, %v3273_v44 }
 0x7c6   :  { %2945 = vtanh.f32 %v830_v2 }
 0x7c7   :  { %2947 = vtanh.f32 %v829_v60 }
 0x7d3   :  { %v2946_v4 = vpop.eup %2945 }
 0x7d4   :  { %839 = vrot.lane.b32.xlu1 %v2946_v4, %s3065_s0  ;;  %v2948_v54 = vpop.eup %2947  ;;  %v834_v44 = vmul.f32 0.5, %v2946_v4 }
 0x7d5   :  { %v833_v5 = vmul.f32 0.5, %v2948_v54 }
 0x7d6   :  { %v836_v15 = vadd.f32 0.5, %v834_v44 }
 0x7d7   :  { %v835_v6 = vadd.f32 0.5, %v833_v5 }
 0x7d9   :  { %v837_v62 = vmul.f32 %v835_v6, %v741_v46 }
 0x846   :  { %v840_v14 = vpop.permute.xlu1 %839 }
 0x847   :  { %v842_v57 = vmul.f32 %v840_v14, %v835_v6 }
 0x849   :  { %844 = vrot.lane.b32.xlu0 %v842_v57, %s3065_s0 }
 0x8bb   :  { %v845_v8 = vpop.permute.xlu0 %844 }
 0x8bc   :  { %v847_v61 = vadd.f32 %v845_v8, %v837_v62 }
 0x8be   :  { %2949 = vtanh.f32 %v847_v61 }
 0x8cb   :  { %v2950_v40 = vpop.eup %2949 }
 0x8cc   :  { %850 = vrot.lane.b32.xlu1 %v2950_v40, %s3065_s0 }
 0x93e   :  { %v851_v47 = vpop.permute.xlu1 %850 }
 0x93f   :  { %v853_v21 = vmul.f32 %v851_v47, %v836_v15 }
 0x941   :  { %855 = vst.msk [vmem:[#allocation4 + $0x18] sm:$0xff] %vm432_vm1, %v853_v21  ;;  %2838 = vmatmul.mubr.msk.f32.vlgmr.msra.gmra.mxu0 %vm432_vm1, %v853_v21 }
 0x942   :  { %1088 = vmatpush1.msra.mxu0 %v3109_v9  ;;  %1135 = vmatprep.mubr.f32.mxu0 %v3064_v0 }
 0x943   :  { %1089 = vmatprep.subr.mxu0 %v3111_v10 }
 0x944   :  { %1090 = vmatpush1.msra.mxu0 %v3115_v11 }
 0x945   :  { %1091 = vmatprep.subr.mxu0 %v3119_v12 }
 0x946   :  { %1092 = vmatpush1.msra.mxu0 %v3124_v13 }
 0x947   :  { %1093 = vmatprep.subr.mxu0 %v3136_v16 }
 0x948   :  { %v1283_v26 = vld [vmem:[#allocation4 + $0x18] sm:$0xff]  ;;  %1094 = vmatpush1.msra.mxu0 %v3140_v17 }
 0x949   :  { %1291 = vst.msk [vmem:[#allocation5 + $0x18] sm:$0xff] %vm432_vm1, %v1283_v26  ;;  %1095 = vmatprep.subr.mxu0 %v3144_v18 }
 0x94a   :  { %1096 = vmatpush1.msra.mxu0 %v3149_v19 }
 0x94b   :  { %1097 = vmatprep.subr.mxu0 %v3161_v22 }
 0x94c   :  { %1098 = vmatpush1.msra.mxu0 %v3165_v23 }
 0x94d   :  { %1099 = vmatprep.subr.mxu0 %v3169_v24 }
 0x94e   :  { %1100 = vmatpush1.msra.mxu0 %v3174_v25 }
 0x94f   :  { %1101 = vmatprep.subr.mxu0 %v3181_v27 }
 0x950   :  { %1102 = vmatpush1.msra.mxu0 %v3185_v28 }
 0xa01   :  { %v925_v33 = vpop.f32.mrf.mxu0 }
 0xa02   :  { %v935_v31 = vadd.f32 %v925_v33, %v3267_v20 }
 0xa03   :  { %v927_v37 = vpop.f32.mrf.mxu0 }
 0xa04   :  { %v936_v45 = vadd.f32 %v927_v37, %v3269_v36 }
 0xa06   :  { %2951 = vtanh.f32 %v936_v45 }
 0xa07   :  { %2953 = vtanh.f32 %v935_v31 }
 0xa13   :  { %v2952_v49 = vpop.eup %2951 }
 0xa14   :  { %945 = vrot.lane.b32.xlu0 %v2952_v49, %s3065_s0  ;;  %v2954_v32 = vpop.eup %2953  ;;  %v940_v36 = vmul.f32 0.5, %v2952_v49 }
 0xa15   :  { %v939_v38 = vmul.f32 0.5, %v2954_v32 }
 0xa16   :  { %v942_v50 = vadd.f32 0.5, %v940_v36  ;;  %v1351_v36 = vld [vmem:[#allocation7 + $0x110] sm:$0xff] }
 0xa17   :  { %v941_v34 = vadd.f32 0.5, %v939_v38 }
 0xa19   :  { %v943_v48 = vmul.f32 %v941_v34, %v847_v61 }
 0xa86   :  { %v946_v42 = vpop.permute.xlu0 %945 }
 0xa87   :  { %v948_v46 = vmul.f32 %v946_v42, %v941_v34 }
 0xa89   :  { %950 = vrot.lane.b32.xlu1 %v948_v46, %s3065_s0 }
 0xafb   :  { %v951_v51 = vpop.permute.xlu1 %950 }
 0xafc   :  { %v953_v30 = vadd.f32 %v951_v51, %v943_v48 }
 0xafe   :  { %2955 = vtanh.f32 %v953_v30 }
 0xb0b   :  { %v2956_v20 = vpop.eup %2955 }
 0xb0c   :  { %956 = vrot.lane.b32.xlu0 %v2956_v20, %s3065_s0  ;;  %v1349_v20 = vld [vmem:[#allocation7 + $0x100] sm:$0xff] }
 0xb7e   :  { %v957_v53 = vpop.permute.xlu0 %956 }
 0xb7f   :  { %v959_v58 = vmul.f32 %v957_v53, %v942_v50  ;;  %v1346_v50 = vld [vmem:[#allocation7 + $0xe8] sm:$0xff]  ;;  %v1348_v53 = vld [vmem:[#allocation7 + $0xf8] sm:$0xff] }
 0xb81   :  { %961 = vst.msk [vmem:[#allocation4 + $0x20] sm:$0xff] %vm432_vm1, %v959_v58  ;;  %2839 = vmatmul.mubr.msk.f32.vlgmr.msra.gmra.mxu1 %vm432_vm1, %v959_v58  ;;  %v1345_v58 = vld [vmem:[#allocation7 + $0xe0] sm:$0xff] }
 0xb82   :  { %1194 = vmatpush1.msra.mxu1 %v3109_v9  ;;  %1241 = vmatprep.mubr.f32.mxu1 %v3064_v0 }
 0xb83   :  { %1195 = vmatprep.subr.mxu1 %v3111_v10 }
 0xb84   :  { %1196 = vmatpush1.msra.mxu1 %v3115_v11 }
 0xb85   :  { %1197 = vmatprep.subr.mxu1 %v3119_v12 }
 0xb86   :  { %1198 = vmatpush1.msra.mxu1 %v3124_v13 }
 0xb87   :  { %1199 = vmatprep.subr.mxu1 %v3136_v16 }
 0xb88   :  { %v1284_v60 = vld [vmem:[#allocation4 + $0x20] sm:$0xff]  ;;  %1200 = vmatpush1.msra.mxu1 %v3140_v17 }
 0xb89   :  { %1292 = vst.msk [vmem:[#allocation5 + $0x20] sm:$0xff] %vm432_vm1, %v1284_v60  ;;  %1201 = vmatprep.subr.mxu1 %v3144_v18 }
 0xb8a   :  { %1304 = vst.msk [vmem:[#allocation5 + $0x18] sm:$0xff] %vm1297_vm2, %v1284_v60  ;;  %1202 = vmatpush1.msra.mxu1 %v3149_v19  ;;  %1306 = vst.msk [vmem:[#allocation5 + $0x20] sm:$0xff] %vm1297_vm2, %v1283_v26  ;;  %v1347_v60 = vld [vmem:[#allocation7 + $0xf0] sm:$0xff] }
 0xb8b   :  { %1203 = vmatprep.subr.mxu1 %v3161_v22 }
 0xb8c   :  { %1204 = vmatpush1.msra.mxu1 %v3165_v23 }
 0xb8d   :  { %1205 = vmatprep.subr.mxu1 %v3169_v24 }
 0xb8e   :  { %1206 = vmatpush1.msra.mxu1 %v3174_v25 }
 0xb8f   :  { %1207 = vmatprep.subr.mxu1 %v3181_v27 }
 0xb90   :  { %1208 = vmatpush1.msra.mxu1 %v3185_v28 }
 0xc41   :  { %v1031_v9 = vpop.f32.mrf.mxu1 }
 0xc42   :  { %v1041_v10 = vadd.f32 %v1031_v9, %v3263_v3  ;;  %v1342_v9 = vld [vmem:[#allocation7 + $0xc8] sm:$0xff] }
 0xc43   :  { %v1033_v11 = vpop.f32.mrf.mxu1 }
 0xc44   :  { %v1042_v12 = vadd.f32 %v1033_v11, %v3265_v7  ;;  %v1341_v11 = vld [vmem:[#allocation7 + $0xc0] sm:$0xff] }
 0xc46   :  { %2957 = vtanh.f32 %v1042_v12  ;;  %v1343_v12 = vld [vmem:[#allocation7 + $0xd0] sm:$0xff] }
 0xc47   :  { %2959 = vtanh.f32 %v1041_v10  ;;  %v1344_v10 = vld [vmem:[#allocation7 + $0xd8] sm:$0xff] }
 0xc53   :  { %v2958_v13 = vpop.eup %2957 }
 0xc54   :  { %1051 = vrot.lane.b32.xlu1 %v2958_v13, %s3065_s0  ;;  %v2960_v16 = vpop.eup %2959  ;;  %v1046_v28 = vmul.f32 0.5, %v2958_v13  ;;  %v1338_v13 = vld [vmem:[#allocation7 + $0xa8] sm:$0xff] }
 0xc55   :  { %v1045_v17 = vmul.f32 0.5, %v2960_v16  ;;  %v1340_v16 = vld [vmem:[#allocation7 + $0xb8] sm:$0xff] }
 0xc56   :  { %v1048_v3 = vadd.f32 0.5, %v1046_v28  ;;  %v1329_v28 = vld [vmem:[#allocation7 + $0x60] sm:$0xff] }
 0xc57   :  { %v1047_v18 = vadd.f32 0.5, %v1045_v17  ;;  %v1337_v17 = vld [vmem:[#allocation7 + $0xa0] sm:$0xff] }
 0xc59   :  { %v1049_v23 = vmul.f32 %v1047_v18, %v953_v30  ;;  %v1350_v30 = vld [vmem:[#allocation7 + $0x108] sm:$0xff] }
 0xc5a   :  { %1411 = vmatprep.subr.mxu0 %v1350_v30  ;;  %v3529_v30 = vld [vmem:[#allocation7 + $0x130] sm:$0xff] }
 0xcc6   :  { %v1052_v19 = vpop.permute.xlu1 %1051 }
 0xcc7   :  { %v1054_v22 = vmul.f32 %v1052_v19, %v1047_v18  ;;  %v1339_v18 = vld [vmem:[#allocation7 + $0xb0] sm:$0xff]  ;;  %v1334_v19 = vld [vmem:[#allocation7 + $0x88] sm:$0xff] }
 0xcc9   :  { %1056 = vrot.lane.b32.xlu0 %v1054_v22, %s3065_s0  ;;  %v1336_v22 = vld [vmem:[#allocation7 + $0x98] sm:$0xff] }
 0xd3b   :  { %v1057_v24 = vpop.permute.xlu0 %1056 }
 0xd3c   :  { %v1059_v25 = vadd.f32 %v1057_v24, %v1049_v23  ;;  %v1333_v23 = vld [vmem:[#allocation7 + $0x80] sm:$0xff]  ;;  %v1335_v24 = vld [vmem:[#allocation7 + $0x90] sm:$0xff] }
 0xd3e   :  { %2961 = vtanh.f32 %v1059_v25 }
 0xd4b   :  { %v2962_v27 = vpop.eup %2961 }
 0xd4c   :  { %1062 = vrot.lane.b32.xlu1 %v2962_v27, %s3065_s0  ;;  %v1332_v27 = vld [vmem:[#allocation7 + $0x78] sm:$0xff] }
 0xdbe   :  { %v1063_v7 = vpop.permute.xlu1 %1062 }
 0xdbf   :  { %v1065_v1 = vmul.f32 %v1063_v7, %v1048_v3  ;;  %v1331_v3 = vld [vmem:[#allocation7 + $0x70] sm:$0xff] }
 0xdc1   :  { %1067 = vst.msk [vmem:[#allocation4 + $0x28] sm:$0xff] %vm432_vm1, %v1065_v1  ;;  %2840 = vmatmul.mubr.msk.f32.vlgmr.msra.gmra.mxu0 %vm432_vm1, %v1065_v1  ;;  %v1326_v1 = vld [vmem:[#allocation7 + $0x48] sm:$0xff] }
 0xdc2   :  { %1459 = vmatprep.mubr.f32.mxu0 %v3064_v0  ;;  %1412 = vmatpush1.msra.mxu0 %v1349_v20 }
 0xdc3   :  { %1413 = vmatprep.subr.mxu0 %v1346_v50 }
 0xdc4   :  { %1414 = vmatpush1.msra.mxu0 %v1345_v58 }
 0xdc5   :  { %1415 = vmatprep.subr.mxu0 %v1342_v9 }
 0xdc6   :  { %1416 = vmatpush1.msra.mxu0 %v1341_v11 }
 0xdc7   :  { %1417 = vmatprep.subr.mxu0 %v1338_v13 }
 0xdc8   :  { %v1285_v2 = vld [vmem:[#allocation4 + $0x28] sm:$0xff]  ;;  %1418 = vmatpush1.msra.mxu0 %v1337_v17 }
 0xdc9   :  { %1293 = vst.msk [vmem:[#allocation5 + $0x28] sm:$0xff] %vm432_vm1, %v1285_v2  ;;  %1419 = vmatprep.subr.mxu0 %v1334_v19  ;;  %v1370_v19 = vld [vmem:[#allocation7 + $0x230] ss:$8 sm:$0x3] }
 0xdca   :  { %1302 = vst.msk [vmem:[#allocation5 + $0x10] sm:$0xff] %vm1297_vm2, %v1285_v2  ;;  %1308 = vst.msk [vmem:[#allocation5 + $0x28] sm:$0xff] %vm1297_vm2, %v3345_v55  ;;  %1420 = vmatpush1.msra.mxu0 %v1333_v23  ;;  %v1328_v2 = vld [vmem:[#allocation7 + $0x58] sm:$0xff] }
 0xe81   :  { %v1137_v4 = vpop.f32.mrf.mxu0 }
 0xe82   :  { %v1147_v54 = vadd.f32 %v1137_v4, %v3259_v59  ;;  %v1325_v4 = vld [vmem:[#allocation7 + $0x40] sm:$0xff] }
 0xe83   :  { %v1139_v5 = vpop.f32.mrf.mxu0 }
 0xe84   :  { %v1148_v6 = vadd.f32 %v1139_v5, %v3261_v63  ;;  %v1322_v5 = vld [vmem:[#allocation7 + $0x28] sm:$0xff] }
 0xe86   :  { %2963 = vtanh.f32 %v1148_v6  ;;  %v1324_v6 = vld [vmem:[#allocation7 + $0x38] sm:$0xff] }
 0xe87   :  { %2965 = vtanh.f32 %v1147_v54  ;;  %v1327_v54 = vld [vmem:[#allocation7 + $0x50] sm:$0xff] }
 0xe93   :  { %v2964_v14 = vpop.eup %2963 }
 0xe94   :  { %1157 = vrot.lane.b32.xlu0 %v2964_v14, %s3065_s0  ;;  %v2966_v57 = vpop.eup %2965  ;;  %v1152_v63 = vmul.f32 0.5, %v2964_v14  ;;  %v1321_v14 = vld [vmem:[#allocation7 + $0x20] sm:$0xff] }
 0xe95   :  { %v1151_v62 = vmul.f32 0.5, %v2966_v57  ;;  %v1323_v57 = vld [vmem:[#allocation7 + $0x30] sm:$0xff] }
 0xe96   :  { %v1154_v47 = vadd.f32 0.5, %v1152_v63  ;;  %v3453_v63 = vld [vmem:[#allocation7 + $0x1f8] sm:$0xff] }
 0xe97   :  { %v1153_v8 = vadd.f32 0.5, %v1151_v62  ;;  %v3441_v62 = vld [vmem:[#allocation7 + $0x218] sm:$0xff] }
 0xe99   :  { %v1155_v44 = vmul.f32 %v1153_v8, %v1059_v25  ;;  %v1330_v25 = vld [vmem:[#allocation7 + $0x68] sm:$0xff] }
 0xe9a   :  { %1421 = vmatprep.subr.mxu0 %v1330_v25 }
 0xe9b   :  { %1422 = vmatpush1.msra.mxu0 %v1329_v28 }
 0xe9c   :  { %1423 = vmatprep.subr.mxu0 %v1326_v1 }
 0xe9d   :  { %1424 = vmatpush1.msra.mxu0 %v1325_v4 }
 0xe9e   :  { %1425 = vmatprep.subr.mxu0 %v1322_v5 }
 0xe9f   :  { %1426 = vmatpush1.msra.mxu0 %v1321_v14 }
 0xea0   :  { %1760 = vmatprep.subr.mxu0 %v3441_v62 }
 0xf06   :  { %v1158_v61 = vpop.permute.xlu0 %1157 }
 0xf07   :  { %v1160_v40 = vmul.f32 %v1158_v61, %v1153_v8 }
 0xf09   :  { %1162 = vrot.lane.b32.xlu1 %v1160_v40, %s3065_s0 }
 0xf7b   :  { %v1163_v55 = vpop.permute.xlu1 %1162 }
 0xf7c   :  { %v1165_v15 = vadd.f32 %v1163_v55, %v1155_v44 }
 0xf7e   :  { %2967 = vtanh.f32 %v1165_v15 }
 0xf8b   :  { %v2968_v59 = vpop.eup %2967 }
 0xf8c   :  { %1168 = vrot.lane.b32.xlu0 %v2968_v59, %s3065_s0 }
 0xffe   :  { %v1169_v21 = vpop.permute.xlu0 %1168 }
 0xfff   :  { %v1171_v26 = vmul.f32 %v1169_v21, %v1154_v47  ;;  %v3457_v47 = vld [vmem:[#allocation7 + $0x1f0] sm:$0xff]  ;;  %v3464_v21 = vld [vmem:[#allocation7 + $0x1d8] sm:$0xff] }
0x1001   :  { %1173 = vst.msk [vmem:[#allocation4 + $0x30] sm:$0xff] %vm432_vm1, %v1171_v26  ;;  %2841 = vmatmul.mubr.msk.f32.vlgmr.msra.gmra.mxu1 %vm432_vm1, %v1171_v26  ;;  %v3469_v26 = vld [vmem:[#allocation7 + $0x1d0] sm:$0xff] }
0x1002   :  { %1572 = vmatprep.mubr.f32.mxu1 %v3064_v0 }
0x1008   :  { %v1286_v33 = vld [vmem:[#allocation4 + $0x30] sm:$0xff] }
0x1009   :  { %1294 = vst.msk [vmem:[#allocation5 + $0x30] sm:$0xff] %vm432_vm1, %v1286_v33 }
0x100a   :  { %1300 = vst.msk [vmem:[#allocation5 + $0x8] sm:$0xff] %vm1297_vm2, %v1286_v33  ;;  %1310 = vst.msk [vmem:[#allocation5 + $0x30] sm:$0xff] %vm1297_vm2, %v3317_v41  ;;  %v1315_v33 = vld [vmem:[#allocation5 + $0x10] sm:$0xff] }
0x10c1   :  { %v1243_v31 = vpop.f32.mrf.mxu1 }
0x10c2   :  { %v1253_v37 = vadd.f32 %v1243_v31, %v3255_v52  ;;  %v3476_v31 = vld [vmem:[#allocation7 + $0x1b8] sm:$0xff] }
0x10c3   :  { %v1245_v45 = vpop.f32.mrf.mxu1 }
0x10c4   :  { %v1254_v49 = vadd.f32 %v1245_v45, %v3257_v56  ;;  %v1352_v56 = vld [vmem:[#allocation7 + $0x118] sm:$0xff] }
0x10c5   :  { %1524 = vmatprep.subr.mxu1 %v1352_v56  ;;  %v1316_v45 = vld [vmem:[#allocation5 + $0x18] sm:$0xff] }
0x10c6   :  { %2969 = vtanh.f32 %v1254_v49  ;;  %1525 = vmatpush1.msra.mxu1 %v1351_v36  ;;  %v3488_v49 = vld [vmem:[#allocation7 + $0x198] sm:$0xff] }
0x10c7   :  { %2971 = vtanh.f32 %v1253_v37  ;;  %1526 = vmatprep.subr.mxu1 %v1348_v53  ;;  %v3481_v37 = vld [vmem:[#allocation7 + $0x1b0] sm:$0xff] }
0x10c8   :  { %1527 = vmatpush1.msra.mxu1 %v1347_v60 }
0x10c9   :  { %1528 = vmatprep.subr.mxu1 %v1344_v10 }
0x10ca   :  { %1529 = vmatpush1.msra.mxu1 %v1343_v12 }
0x10cb   :  { %1530 = vmatprep.subr.mxu1 %v1340_v16 }
0x10cc   :  { %1531 = vmatpush1.msra.mxu1 %v1339_v18 }
0x10cd   :  { %1532 = vmatprep.subr.mxu1 %v1336_v22 }
0x10ce   :  { %1533 = vmatpush1.msra.mxu1 %v1335_v24  ;;  %v1663_v24 = vrot.slane %v1370_v19, %v350_v39 }
0x10cf   :  { %1534 = vmatprep.subr.mxu1 %v1332_v27 }
0x10d0   :  { %1535 = vmatpush1.msra.mxu1 %v1331_v3 }
0x10d1   :  { %1536 = vmatprep.subr.mxu1 %v1328_v2 }
0x10d2   :  { %1537 = vmatpush1.msra.mxu1 %v1327_v54 }
0x10d3   :  { %v3435_v32 = vpop.eup %2969  ;;  %1538 = vmatprep.subr.mxu1 %v1324_v6 }
0x10d4   :  { %1263 = vrot.lane.b32.xlu1 %v3435_v32, %s3065_s0  ;;  %v2972_v38 = vpop.eup %2971  ;;  %1539 = vmatpush1.msra.mxu1 %v1323_v57  ;;  %v1258_v8 = vmul.f32 0.5, %v3435_v32  ;;  %v3493_v32 = vld [vmem:[#allocation7 + $0x190] sm:$0xff] }
0x10d5   :  { %v1257_v34 = vmul.f32 0.5, %v2972_v38  ;;  %1862 = vmatprep.subr.mxu1 %v3441_v62  ;;  %v1317_v38 = vld [vmem:[#allocation5 + $0x20] sm:$0xff] }
0x10d6   :  { %v1260_v61 = vadd.f32 0.5, %v1258_v8 }
0x10d7   :  { %v1259_v42 = vadd.f32 0.5, %v1257_v34  ;;  %v3500_v34 = vld [vmem:[#allocation7 + $0x178] sm:$0xff] }
0x10d9   :  { %v1261_v41 = vmul.f32 %v1259_v42, %v1165_v15  ;;  %v3451_v15 = vld [vmem:[#allocation7 + $0x210] sm:$0xff] }
0x1146   :  { %v1264_v46 = vpop.permute.xlu1 %1263 }
0x1147   :  { %v1266_v48 = vmul.f32 %v1264_v46, %v1259_v42  ;;  %v3505_v42 = vld [vmem:[#allocation7 + $0x170] sm:$0xff]  ;;  %v1318_v46 = vld [vmem:[#allocation5 + $0x28] sm:$0xff] }
0x1149   :  { %1268 = vrot.lane.b32.xlu0 %v1266_v48, %s3065_s0  ;;  %v3512_v48 = vld [vmem:[#allocation7 + $0x158] sm:$0xff] }
0x11bb   :  { %v1269_v51 = vpop.permute.xlu0 %1268 }
0x11bc   :  { %v1271_v52 = vadd.f32 %v1269_v51, %v1261_v41  ;;  %v3517_v41 = vld [vmem:[#allocation7 + $0x150] sm:$0xff] }
0x11bd   :  { %v1319_v51 = vld [vmem:[#allocation5 + $0x30] sm:$0xff] }
0x11be   :  { %2973 = vtanh.f32 %v1271_v52  ;;  %v3524_v52 = vld [vmem:[#allocation7 + $0x138] sm:$0xff] }
0x11cb   :  { %v2974_v7 = vpop.eup %2973 }
0x11cc   :  { %1274 = vrot.lane.b32.xlu1 %v2974_v7, %s3065_s0  ;;  %v1667_v7 = vrot.slane %v1370_v19, %v354_v43 }
0x123e   :  { %v1275_v40 = vpop.permute.xlu1 %1274 }
0x123f   :  { %v1277_v44 = vmul.f32 %v1275_v40, %v1260_v61 }
0x1241   :  { %1279 = vst.msk [vmem:[#allocation4 + $0x38] sm:$0xff] %vm432_vm1, %v1277_v44 }
0x1248   :  { %v1287_v55 = vld [vmem:[#allocation4 + $0x38] sm:$0xff] }
0x1249   :  { %1295 = vst.msk [vmem:[#allocation5 + $0x38] sm:$0xff] %vm432_vm1, %v1287_v55 }
0x124a   :  { %1298 = vst.msk [vmem:[#allocation5] sm:$0xff] %vm1297_vm2, %v1287_v55  ;;  %1312 = vst.msk [vmem:[#allocation5 + $0x38] sm:$0xff] %vm1297_vm2, %v3291_v29  ;;  %v1314_v29 = vld [vmem:[#allocation5 + $0x8] sm:$0xff] }
0x1251   :  { %v1313_v59 = vld [vmem:[#allocation5] sm:$0xff]  ;;  %v1320_v56 = vld [vmem:[#allocation5 + $0x38] sm:$0xff] }
0x1252   :  { %2842 = vmatmul.mubr.msk.f32.vlgmr.msra.gmra.mxu0 %vm432_vm1, %v1313_v59  ;;  %2850 = vmatmul.mubr.msk.f32.vlgmr.msra.gmra.mxu1 %vm432_vm1, %v1313_v59 }
0x1253   :  { %1761 = vmatpush1.msra.mxu0 %v3451_v15  ;;  %1465 = vmatprep.mubr.f32.mxu0 %v3064_v0 }
0x1254   :  { %1578 = vmatprep.mubr.f32.mxu1 %v3064_v0  ;;  %1762 = vmatprep.subr.mxu0 %v3453_v63 }
0x1255   :  { %1763 = vmatpush1.msra.mxu0 %v3457_v47  ;;  %1863 = vmatpush1.msra.mxu1 %v3451_v15 }
0x1256   :  { %2843 = vmatmul.mubr.msk.f32.gmra.mxu0 %vm432_vm1, %v1314_v29  ;;  %2851 = vmatmul.mubr.msk.f32.gmra.mxu1 %vm432_vm1, %v1314_v29 }
0x1257   :  { %1471 = vmatprep.mubr.f32.mxu0 %v3064_v0  ;;  %1584 = vmatprep.mubr.f32.mxu1 %v3064_v0 }
0x1258   :  { %1764 = vmatprep.subr.mxu0 %v3464_v21  ;;  %1864 = vmatprep.subr.mxu1 %v3453_v63 }
0x1259   :  { %1765 = vmatpush1.msra.mxu0 %v3469_v26  ;;  %1865 = vmatpush1.msra.mxu1 %v3457_v47 }
0x125a   :  { %2844 = vmatmul.mubr.msk.f32.gmra.mxu0 %vm432_vm1, %v1315_v33  ;;  %2852 = vmatmul.mubr.msk.f32.gmra.mxu1 %vm432_vm1, %v1315_v33 }
0x125b   :  { %1477 = vmatprep.mubr.f32.mxu0 %v3064_v0  ;;  %1590 = vmatprep.mubr.f32.mxu1 %v3064_v0 }
0x125c   :  { %1766 = vmatprep.subr.mxu0 %v3476_v31  ;;  %1866 = vmatprep.subr.mxu1 %v3464_v21 }
0x125d   :  { %1767 = vmatpush1.msra.mxu0 %v3481_v37  ;;  %1867 = vmatpush1.msra.mxu1 %v3469_v26 }
0x125e   :  { %2845 = vmatmul.mubr.msk.f32.gmra.mxu0 %vm432_vm1, %v1316_v45  ;;  %2853 = vmatmul.mubr.msk.f32.gmra.mxu1 %vm432_vm1, %v1316_v45 }
0x125f   :  { %1483 = vmatprep.mubr.f32.mxu0 %v3064_v0  ;;  %1596 = vmatprep.mubr.f32.mxu1 %v3064_v0 }
0x1260   :  { %1768 = vmatprep.subr.mxu0 %v3488_v49  ;;  %1868 = vmatprep.subr.mxu1 %v3476_v31 }
0x1261   :  { %1769 = vmatpush1.msra.mxu0 %v3493_v32  ;;  %1869 = vmatpush1.msra.mxu1 %v3481_v37 }
0x1262   :  { %2846 = vmatmul.mubr.msk.f32.gmra.mxu0 %vm432_vm1, %v1317_v38  ;;  %2854 = vmatmul.mubr.msk.f32.gmra.mxu1 %vm432_vm1, %v1317_v38 }
0x1263   :  { %1489 = vmatprep.mubr.f32.mxu0 %v3064_v0  ;;  %1602 = vmatprep.mubr.f32.mxu1 %v3064_v0 }
0x1264   :  { %1770 = vmatprep.subr.mxu0 %v3500_v34  ;;  %1870 = vmatprep.subr.mxu1 %v3488_v49 }
0x1265   :  { %1771 = vmatpush1.msra.mxu0 %v3505_v42  ;;  %1871 = vmatpush1.msra.mxu1 %v3493_v32 }
0x1266   :  { %2847 = vmatmul.mubr.msk.f32.gmra.mxu0 %vm432_vm1, %v1318_v46  ;;  %2855 = vmatmul.mubr.msk.f32.gmra.mxu1 %vm432_vm1, %v1318_v46 }
0x1267   :  { %1495 = vmatprep.mubr.f32.mxu0 %v3064_v0  ;;  %1608 = vmatprep.mubr.f32.mxu1 %v3064_v0 }
0x1268   :  { %1772 = vmatprep.subr.mxu0 %v3512_v48  ;;  %1872 = vmatprep.subr.mxu1 %v3500_v34 }
0x1269   :  { %1773 = vmatpush1.msra.mxu0 %v3517_v41  ;;  %1873 = vmatpush1.msra.mxu1 %v3505_v42 }
0x126a   :  { %2848 = vmatmul.mubr.msk.f32.gmra.mxu0 %vm432_vm1, %v1319_v51  ;;  %2856 = vmatmul.mubr.msk.f32.gmra.mxu1 %vm432_vm1, %v1319_v51 }
0x126b   :  { %1501 = vmatprep.mubr.f32.mxu0 %v3064_v0  ;;  %1614 = vmatprep.mubr.f32.mxu1 %v3064_v0 }
0x126c   :  { %1774 = vmatprep.subr.mxu0 %v3524_v52  ;;  %1874 = vmatprep.subr.mxu1 %v3512_v48 }
0x126d   :  { %1775 = vmatpush1.msra.mxu0 %v3529_v30  ;;  %1875 = vmatpush1.msra.mxu1 %v3517_v41 }
0x126e   :  { %2849 = vmatmul.mubr.msk.f32.gmra.mxu0 %vm432_vm1, %v1320_v56  ;;  %2857 = vmatmul.mubr.msk.f32.gmra.mxu1 %vm432_vm1, %v1320_v56 }
0x126f   :  { %1808 = vmatprep.mubr.f32.mxu0 %v3064_v0  ;;  %1876 = vmatprep.subr.mxu1 %v3524_v52 }
0x1270   :  { %1877 = vmatpush1.msra.mxu1 %v3529_v30  ;;  %1910 = vmatprep.mubr.f32.mxu1 %v3064_v0 }
0x1271   :  { %1964 = vmatprep.subr.mxu0 %v3441_v62  ;;  %2066 = vmatprep.subr.mxu1 %v3441_v62 }
0x1272   :  { %1809 = vmatmul.mubr.f32.vlgmr.msra.gmra.mxu0 %v3064_v0 }
0x1273   :  { %1965 = vmatpush1.msra.mxu0 %v3451_v15  ;;  %2012 = vmatprep.mubr.f32.mxu0 %v3064_v0 }
0x1274   :  { %1966 = vmatprep.subr.mxu0 %v3453_v63 }
0x1275   :  { %1967 = vmatpush1.msra.mxu0 %v3457_v47 }
0x1276   :  { %1968 = vmatprep.subr.mxu0 %v3464_v21 }
0x1277   :  { %1969 = vmatpush1.msra.mxu0 %v3469_v26 }
0x1278   :  { %1970 = vmatprep.subr.mxu0 %v3476_v31 }
0x1279   :  { %1971 = vmatpush1.msra.mxu0 %v3481_v37 }
0x127a   :  { %1972 = vmatprep.subr.mxu0 %v3488_v49 }
0x127b   :  { %1973 = vmatpush1.msra.mxu0 %v3493_v32 }
0x127c   :  { %1974 = vmatprep.subr.mxu0 %v3500_v34 }
0x127d   :  { %1975 = vmatpush1.msra.mxu0 %v3505_v42 }
0x127e   :  { %1976 = vmatprep.subr.mxu0 %v3512_v48 }
0x127f   :  { %1977 = vmatpush1.msra.mxu0 %v3517_v41 }
0x1280   :  { %1978 = vmatprep.subr.mxu0 %v3524_v52 }
0x1281   :  { %1979 = vmatpush1.msra.mxu0 %v3529_v30 }
0x1282   :  { %2168 = vmatprep.subr.mxu0 %v3441_v62 }
0x1312   :  { %v1461_v20 = vpop.f32.mrf.mxu0  ;;  %v1574_v36 = vpop.f32.mrf.mxu1 }
0x1314   :  { %v1463_v50 = vpop.f32.mrf.mxu0  ;;  %v1576_v53 = vpop.f32.mrf.mxu1 }
0x1316   :  { %v1467_v58 = vpop.f32.mrf.mxu0  ;;  %v1580_v60 = vpop.f32.mrf.mxu1 }
0x1318   :  { %v1469_v9 = vpop.f32.mrf.mxu0  ;;  %v1582_v10 = vpop.f32.mrf.mxu1 }
0x131a   :  { %v1473_v11 = vpop.f32.mrf.mxu0  ;;  %v1586_v12 = vpop.f32.mrf.mxu1 }
0x131c   :  { %v1475_v13 = vpop.f32.mrf.mxu0  ;;  %v1588_v16 = vpop.f32.mrf.mxu1 }
0x131e   :  { %v1479_v17 = vpop.f32.mrf.mxu0  ;;  %v1592_v18 = vpop.f32.mrf.mxu1 }
0x1320   :  { %v1481_v22 = vpop.f32.mrf.mxu0  ;;  %v1594_v23 = vpop.f32.mrf.mxu1 }
0x1322   :  { %v1485_v25 = vpop.f32.mrf.mxu0  ;;  %v1598_v27 = vpop.f32.mrf.mxu1 }
0x1323   :  { %v1708_v28 = vadd.f32 %v1592_v18, %v1485_v25  ;;  %v1698_v3 = vadd.f32 %v1598_v27, %v1479_v17 }
0x1324   :  { %v1487_v1 = vpop.f32.mrf.mxu0  ;;  %v1600_v2 = vpop.f32.mrf.mxu1 }
0x1325   :  { %v1709_v4 = vadd.f32 %v1594_v23, %v1487_v1  ;;  %v1699_v54 = vadd.f32 %v1600_v2, %v1481_v22  ;;  %v3567_v5 = vadd.f32 %v1698_v3, %v1663_v24  ;;  %v3569_v6 = vadd.f32 %v1708_v28, %v1663_v24 }
0x1326   :  { %v1491_v14 = vpop.f32.mrf.mxu0  ;;  %v1604_v57 = vpop.f32.mrf.mxu1 }
0x1327   :  { %v1718_v8 = vadd.f32 %v1586_v12, %v1491_v14  ;;  %v1688_v61 = vadd.f32 %v1604_v57, %v1473_v11  ;;  %v3571_v39 = vadd.f32 %v1699_v54, %v1667_v7  ;;  %v3573_v40 = vadd.f32 %v1709_v4, %v1667_v7 }
0x1328   :  { %v1493_v44 = vpop.f32.mrf.mxu0  ;;  %v1606_v55 = vpop.f32.mrf.mxu1 }
0x1329   :  { %v1719_v35 = vadd.f32 %v1588_v16, %v1493_v44  ;;  %v1689_v43 = vadd.f32 %v1606_v55, %v1475_v13  ;;  %v3575_v59 = vadd.f32 %v1688_v61, %v1663_v24  ;;  %v3577_v29 = vadd.f32 %v1718_v8, %v1663_v24 }
0x132a   :  { %v1497_v33 = vpop.f32.mrf.mxu0  ;;  %v1610_v45 = vpop.f32.mrf.mxu1 }
0x132b   :  { %v1728_v38 = vadd.f32 %v1580_v60, %v1497_v33  ;;  %v1678_v46 = vadd.f32 %v1610_v45, %v1467_v58  ;;  %v3579_v51 = vadd.f32 %v1689_v43, %v1667_v7  ;;  %v3581_v56 = vadd.f32 %v1719_v35, %v1667_v7 }
0x132c   :  { %v1499_v11 = vpop.f32.mrf.mxu0  ;;  %v1612_v12 = vpop.f32.mrf.mxu1 }
0x132d   :  { %v1729_v17 = vadd.f32 %v1582_v10, %v1499_v11  ;;  %v1679_v18 = vadd.f32 %v1612_v12, %v1469_v9  ;;  %v1680_v19 = vadd.f32 %v1678_v46, %v1663_v24  ;;  %v3583_v22 = vadd.f32 %v1728_v38, %v1663_v24 }
0x132e   :  { %v1503_v13 = vpop.f32.mrf.mxu0  ;;  %v1616_v16 = vpop.f32.mrf.mxu1 }
0x132f   :  { %v1738_v23 = vadd.f32 %v1574_v36, %v1503_v13  ;;  %v1657_v25 = vadd.f32 %v1616_v16, %v1461_v20  ;;  %v1681_v27 = vadd.f32 %v1679_v18, %v1667_v7  ;;  %v3585_v28 = vadd.f32 %v1729_v17, %v1667_v7 }
0x1330   :  { %v1505_v60 = vpop.f32.mrf.mxu0  ;;  %v1618_v58 = vpop.f32.mrf.mxu1 }
0x1331   :  { %v1739_v3 = vadd.f32 %v1576_v53, %v1505_v60  ;;  %v1658_v1 = vadd.f32 %v1618_v58, %v1463_v50  ;;  %v1670_v2 = vadd.f32 %v1663_v24, %v1657_v25  ;;  %v3587_v4 = vadd.f32 %v1738_v23, %v1663_v24 }
0x1332   :  { %v1810_v54 = vpop.f32.mrf.mxu0 }
0x1333   :  { %v1817_v10 = vadd.f32 %v1810_v54, %v1670_v2  ;;  %v1671_v9 = vadd.f32 %v1667_v7, %v1658_v1  ;;  %v3589_v14 = vadd.f32 %v1739_v3, %v1667_v7 }
0x1334   :  { %v1812_v57 = vpop.f32.mrf.mxu0 }
0x1335   :  { %v1818_v8 = vadd.f32 %v1812_v57, %v1671_v9 }
0x1337   :  { %2975 = vtanh.f32 %v1818_v8 }
0x1338   :  { %2977 = vtanh.f32 %v1817_v10 }
0x1344   :  { %v2976_v36 = vpop.eup %2975 }
0x1345   :  { %1827 = vrot.lane.b32.xlu0 %v2976_v36, %s3065_s0  ;;  %v2978_v20 = vpop.eup %2977  ;;  %v1822_v43 = vmul.f32 0.5, %v2976_v36 }
0x1346   :  { %v1821_v61 = vmul.f32 0.5, %v2978_v20 }
0x1347   :  { %v1824_v33 = vadd.f32 0.5, %v1822_v43 }
0x1348   :  { %v1823_v44 = vadd.f32 0.5, %v1821_v61 }
0x134a   :  { %v1825_v24 = vmul.f32 0.0, %v1823_v44 }
0x13b7   :  { %v1828_v53 = vpop.permute.xlu0 %1827 }
0x13b8   :  { %v1830_v50 = vmul.f32 %v1828_v53, %v1823_v44 }
0x13ba   :  { %1832 = vrot.lane.b32.xlu1 %v1830_v50, %s3065_s0 }
0x142c   :  { %v1833_v55 = vpop.permute.xlu1 %1832 }
0x142d   :  { %v1835_v35 = vadd.f32 %v1833_v55, %v1825_v24 }
0x142f   :  { %2979 = vtanh.f32 %v1835_v35 }
0x143c   :  { %v2980_v7 = vpop.eup %2979 }
0x143d   :  { %1838 = vrot.lane.b32.xlu0 %v2980_v7, %s3065_s0 }
0x14af   :  { %v1839_v45 = vpop.permute.xlu0 %1838 }
0x14b0   :  { %v1841_v38 = vmul.f32 %v1839_v45, %v1824_v33 }
0x14b2   :  { %1842 = vst.msk [vmem:[#allocation4] sm:$0xff] %vm432_vm1, %v1841_v38  ;;  %2858 = vmatmul.mubr.msk.f32.vlgmr.msra.gmra.mxu1 %vm432_vm1, %v1841_v38 }
0x14b3   :  { %2067 = vmatpush1.msra.mxu1 %v3451_v15  ;;  %2114 = vmatprep.mubr.f32.mxu1 %v3064_v0 }
0x14b4   :  { %2068 = vmatprep.subr.mxu1 %v3453_v63 }
0x14b5   :  { %2069 = vmatpush1.msra.mxu1 %v3457_v47 }
0x14b6   :  { %2070 = vmatprep.subr.mxu1 %v3464_v21 }
0x14b7   :  { %2071 = vmatpush1.msra.mxu1 %v3469_v26 }
0x14b8   :  { %2072 = vmatprep.subr.mxu1 %v3476_v31 }
0x14b9   :  { %2073 = vmatpush1.msra.mxu1 %v3481_v37  ;;  %v3604_v46 = vld [vmem:[#allocation4] sm:$0xff] }
0x14ba   :  { %2074 = vmatprep.subr.mxu1 %v3488_v49  ;;  %2565 = vst.msk [vmem:[#allocation6] sm:$0xff] %vm432_vm1, %v3604_v46 }
0x14bb   :  { %2075 = vmatpush1.msra.mxu1 %v3493_v32 }
0x14bc   :  { %2076 = vmatprep.subr.mxu1 %v3500_v34 }
0x14bd   :  { %2077 = vmatpush1.msra.mxu1 %v3505_v42 }
0x14be   :  { %2078 = vmatprep.subr.mxu1 %v3512_v48 }
0x14bf   :  { %2079 = vmatpush1.msra.mxu1 %v3517_v41 }
0x14c0   :  { %2080 = vmatprep.subr.mxu1 %v3524_v52 }
0x14c1   :  { %2081 = vmatpush1.msra.mxu1 %v3529_v30 }
0x14c2   :  { %2270 = vmatprep.subr.mxu1 %v3441_v62 }
0x1572   :  { %v1912_v11 = vpop.f32.mrf.mxu1 }
0x1573   :  { %v1919_v12 = vadd.f32 %v1912_v11, %v1680_v19 }
0x1574   :  { %v1914_v17 = vpop.f32.mrf.mxu1 }
0x1575   :  { %v1920_v18 = vadd.f32 %v1914_v17, %v1681_v27 }
0x1577   :  { %2981 = vtanh.f32 %v1920_v18 }
0x1578   :  { %2983 = vtanh.f32 %v1919_v12 }
0x1584   :  { %v2982_v13 = vpop.eup %2981 }
0x1585   :  { %1929 = vrot.lane.b32.xlu1 %v2982_v13, %s3065_s0  ;;  %v2984_v16 = vpop.eup %2983  ;;  %v1924_v19 = vmul.f32 0.5, %v2982_v13 }
0x1586   :  { %v1923_v23 = vmul.f32 0.5, %v2984_v16 }
0x1587   :  { %v1926_v27 = vadd.f32 0.5, %v1924_v19 }
0x1588   :  { %v1925_v25 = vadd.f32 0.5, %v1923_v23 }
0x158a   :  { %v1927_v3 = vmul.f32 %v1925_v25, %v1835_v35 }
0x15f7   :  { %v1930_v60 = vpop.permute.xlu1 %1929 }
0x15f8   :  { %v1932_v58 = vmul.f32 %v1930_v60, %v1925_v25 }
0x15fa   :  { %1934 = vrot.lane.b32.xlu0 %v1932_v58, %s3065_s0 }
0x166c   :  { %v1935_v1 = vpop.permute.xlu0 %1934 }
0x166d   :  { %v1937_v2 = vadd.f32 %v1935_v1, %v1927_v3 }
0x166f   :  { %2985 = vtanh.f32 %v1937_v2 }
0x167c   :  { %v2986_v54 = vpop.eup %2985 }
0x167d   :  { %1940 = vrot.lane.b32.xlu1 %v2986_v54, %s3065_s0 }
0x16ef   :  { %v1941_v10 = vpop.permute.xlu1 %1940 }
0x16f0   :  { %v1943_v9 = vmul.f32 %v1941_v10, %v1926_v27 }
0x16f2   :  { %1944 = vst.msk [vmem:[#allocation4 + $0x8] sm:$0xff] %vm432_vm1, %v1943_v9  ;;  %2859 = vmatmul.mubr.msk.f32.vlgmr.msra.gmra.mxu0 %vm432_vm1, %v1943_v9 }
0x16f3   :  { %2169 = vmatpush1.msra.mxu0 %v3451_v15  ;;  %2216 = vmatprep.mubr.f32.mxu0 %v3064_v0 }
0x16f4   :  { %2170 = vmatprep.subr.mxu0 %v3453_v63 }
0x16f5   :  { %2171 = vmatpush1.msra.mxu0 %v3457_v47 }
0x16f6   :  { %2172 = vmatprep.subr.mxu0 %v3464_v21 }
0x16f7   :  { %2173 = vmatpush1.msra.mxu0 %v3469_v26 }
0x16f8   :  { %2174 = vmatprep.subr.mxu0 %v3476_v31 }
0x16f9   :  { %2175 = vmatpush1.msra.mxu0 %v3481_v37  ;;  %v3630_v57 = vld [vmem:[#allocation4 + $0x8] sm:$0xff] }
0x16fa   :  { %2176 = vmatprep.subr.mxu0 %v3488_v49  ;;  %2566 = vst.msk [vmem:[#allocation6 + $0x8] sm:$0xff] %vm432_vm1, %v3630_v57 }
0x16fb   :  { %2177 = vmatpush1.msra.mxu0 %v3493_v32 }
0x16fc   :  { %2178 = vmatprep.subr.mxu0 %v3500_v34 }
0x16fd   :  { %2179 = vmatpush1.msra.mxu0 %v3505_v42 }
0x16fe   :  { %2180 = vmatprep.subr.mxu0 %v3512_v48 }
0x16ff   :  { %2181 = vmatpush1.msra.mxu0 %v3517_v41 }
0x1700   :  { %2182 = vmatprep.subr.mxu0 %v3524_v52 }
0x1701   :  { %2183 = vmatpush1.msra.mxu0 %v3529_v30 }
0x1702   :  { %2372 = vmatprep.subr.mxu0 %v3441_v62 }
0x17b2   :  { %v2014_v8 = vpop.f32.mrf.mxu0 }
0x17b3   :  { %v2021_v36 = vadd.f32 %v2014_v8, %v3575_v59 }
0x17b4   :  { %v2016_v20 = vpop.f32.mrf.mxu0 }
0x17b5   :  { %v2022_v61 = vadd.f32 %v2016_v20, %v3579_v51 }
0x17b7   :  { %2987 = vtanh.f32 %v2022_v61 }
0x17b8   :  { %2989 = vtanh.f32 %v2021_v36 }
0x17c4   :  { %v2988_v44 = vpop.eup %2987 }
0x17c5   :  { %2031 = vrot.lane.b32.xlu0 %v2988_v44, %s3065_s0  ;;  %v2990_v53 = vpop.eup %2989  ;;  %v2026_v51 = vmul.f32 0.5, %v2988_v44 }
0x17c6   :  { %v2025_v50 = vmul.f32 0.5, %v2990_v53 }
0x17c7   :  { %v2028_v45 = vadd.f32 0.5, %v2026_v51 }
0x17c8   :  { %v2027_v24 = vadd.f32 0.5, %v2025_v50 }
0x17ca   :  { %v2029_v7 = vmul.f32 %v2027_v24, %v1937_v2 }
0x1837   :  { %v2032_v55 = vpop.permute.xlu0 %2031 }
0x1838   :  { %v2034_v35 = vmul.f32 %v2032_v55, %v2027_v24 }
0x183a   :  { %2036 = vrot.lane.b32.xlu1 %v2034_v35, %s3065_s0 }
0x18ac   :  { %v2037_v43 = vpop.permute.xlu1 %2036 }
0x18ad   :  { %v2039_v33 = vadd.f32 %v2037_v43, %v2029_v7 }
0x18af   :  { %2991 = vtanh.f32 %v2039_v33 }
0x18bc   :  { %v2992_v59 = vpop.eup %2991 }
0x18bd   :  { %2042 = vrot.lane.b32.xlu0 %v2992_v59, %s3065_s0 }
0x192f   :  { %v2043_v38 = vpop.permute.xlu0 %2042 }
0x1930   :  { %v2045_v11 = vmul.f32 %v2043_v38, %v2028_v45 }
0x1932   :  { %2046 = vst.msk [vmem:[#allocation4 + $0x10] sm:$0xff] %vm432_vm1, %v2045_v11  ;;  %2860 = vmatmul.mubr.msk.f32.vlgmr.msra.gmra.mxu1 %vm432_vm1, %v2045_v11 }
0x1933   :  { %2271 = vmatpush1.msra.mxu1 %v3451_v15  ;;  %2318 = vmatprep.mubr.f32.mxu1 %v3064_v0 }
0x1934   :  { %2272 = vmatprep.subr.mxu1 %v3453_v63 }
0x1935   :  { %2273 = vmatpush1.msra.mxu1 %v3457_v47 }
0x1936   :  { %2274 = vmatprep.subr.mxu1 %v3464_v21 }
0x1937   :  { %2275 = vmatpush1.msra.mxu1 %v3469_v26 }
0x1938   :  { %2276 = vmatprep.subr.mxu1 %v3476_v31 }
0x1939   :  { %2277 = vmatpush1.msra.mxu1 %v3481_v37  ;;  %v3658_v12 = vld [vmem:[#allocation4 + $0x10] sm:$0xff] }
0x193a   :  { %2278 = vmatprep.subr.mxu1 %v3488_v49  ;;  %2567 = vst.msk [vmem:[#allocation6 + $0x10] sm:$0xff] %vm432_vm1, %v3658_v12 }
0x193b   :  { %2279 = vmatpush1.msra.mxu1 %v3493_v32 }
0x193c   :  { %2280 = vmatprep.subr.mxu1 %v3500_v34 }
0x193d   :  { %2281 = vmatpush1.msra.mxu1 %v3505_v42 }
0x193e   :  { %2282 = vmatprep.subr.mxu1 %v3512_v48 }
0x193f   :  { %2283 = vmatpush1.msra.mxu1 %v3517_v41 }
0x1940   :  { %2284 = vmatprep.subr.mxu1 %v3524_v52 }
0x1941   :  { %2285 = vmatpush1.msra.mxu1 %v3529_v30 }
0x1942   :  { %2474 = vmatprep.subr.mxu1 %v3441_v62 }
0x19f2   :  { %v2116_v17 = vpop.f32.mrf.mxu1 }
0x19f3   :  { %v2123_v18 = vadd.f32 %v2116_v17, %v3567_v5 }
0x19f4   :  { %v2118_v13 = vpop.f32.mrf.mxu1 }
0x19f5   :  { %v2124_v16 = vadd.f32 %v2118_v13, %v3571_v39 }
0x19f7   :  { %2993 = vtanh.f32 %v2124_v16 }
0x19f8   :  { %2995 = vtanh.f32 %v2123_v18 }
0x1a04   :  { %v2994_v23 = vpop.eup %2993 }
0x1a05   :  { %2133 = vrot.lane.b32.xlu1 %v2994_v23, %s3065_s0  ;;  %v2996_v25 = vpop.eup %2995  ;;  %v2128_v39 = vmul.f32 0.5, %v2994_v23 }
0x1a06   :  { %v2127_v60 = vmul.f32 0.5, %v2996_v25 }
0x1a07   :  { %v2130_v19 = vadd.f32 0.5, %v2128_v39 }
0x1a08   :  { %v2129_v58 = vadd.f32 0.5, %v2127_v60 }
0x1a0a   :  { %v2131_v2 = vmul.f32 %v2129_v58, %v2039_v33 }
0x1a77   :  { %v2134_v3 = vpop.permute.xlu1 %2133 }
0x1a78   :  { %v2136_v1 = vmul.f32 %v2134_v3, %v2129_v58 }
0x1a7a   :  { %2138 = vrot.lane.b32.xlu0 %v2136_v1, %s3065_s0 }
0x1aec   :  { %v2139_v62 = vpop.permute.xlu0 %2138 }
0x1aed   :  { %v2141_v54 = vadd.f32 %v2139_v62, %v2131_v2 }
0x1aef   :  { %2997 = vtanh.f32 %v2141_v54 }
0x1afc   :  { %v2998_v5 = vpop.eup %2997 }
0x1afd   :  { %2144 = vrot.lane.b32.xlu1 %v2998_v5, %s3065_s0 }
0x1b6f   :  { %v2145_v27 = vpop.permute.xlu1 %2144 }
0x1b70   :  { %v2147_v10 = vmul.f32 %v2145_v27, %v2130_v19 }
0x1b72   :  { %2148 = vst.msk [vmem:[#allocation4 + $0x18] sm:$0xff] %vm432_vm1, %v2147_v10  ;;  %2861 = vmatmul.mubr.msk.f32.vlgmr.msra.gmra.mxu0 %vm432_vm1, %v2147_v10 }
0x1b73   :  { %2373 = vmatpush1.msra.mxu0 %v3451_v15  ;;  %2420 = vmatprep.mubr.f32.mxu0 %v3064_v0 }
0x1b74   :  { %2374 = vmatprep.subr.mxu0 %v3453_v63 }
0x1b75   :  { %2375 = vmatpush1.msra.mxu0 %v3457_v47 }
0x1b76   :  { %2376 = vmatprep.subr.mxu0 %v3464_v21 }
0x1b77   :  { %2377 = vmatpush1.msra.mxu0 %v3469_v26 }
0x1b78   :  { %2378 = vmatprep.subr.mxu0 %v3476_v31 }
0x1b79   :  { %2379 = vmatpush1.msra.mxu0 %v3481_v37  ;;  %v2560_v9 = vld [vmem:[#allocation4 + $0x18] sm:$0xff] }
0x1b7a   :  { %2380 = vmatprep.subr.mxu0 %v3488_v49  ;;  %2568 = vst.msk [vmem:[#allocation6 + $0x18] sm:$0xff] %vm432_vm1, %v2560_v9 }
0x1b7b   :  { %2381 = vmatpush1.msra.mxu0 %v3493_v32 }
0x1b7c   :  { %2382 = vmatprep.subr.mxu0 %v3500_v34 }
0x1b7d   :  { %2383 = vmatpush1.msra.mxu0 %v3505_v42 }
0x1b7e   :  { %2384 = vmatprep.subr.mxu0 %v3512_v48 }
0x1b7f   :  { %2385 = vmatpush1.msra.mxu0 %v3517_v41 }
0x1b80   :  { %2386 = vmatprep.subr.mxu0 %v3524_v52 }
0x1b81   :  { %2387 = vmatpush1.msra.mxu0 %v3529_v30 }
0x1c32   :  { %v2218_v8 = vpop.f32.mrf.mxu0 }
0x1c33   :  { %v2225_v36 = vadd.f32 %v2218_v8, %v3569_v6 }
0x1c34   :  { %v2220_v20 = vpop.f32.mrf.mxu0 }
0x1c35   :  { %v2226_v61 = vadd.f32 %v2220_v20, %v3573_v40 }
0x1c37   :  { %2999 = vtanh.f32 %v2226_v61 }
0x1c38   :  { %3001 = vtanh.f32 %v2225_v36 }
0x1c44   :  { %v3000_v44 = vpop.eup %2999 }
0x1c45   :  { %2235 = vrot.lane.b32.xlu0 %v3000_v44, %s3065_s0  ;;  %v3002_v53 = vpop.eup %3001  ;;  %v2230_v40 = vmul.f32 0.5, %v3000_v44 }
0x1c46   :  { %v2229_v50 = vmul.f32 0.5, %v3002_v53 }
0x1c47   :  { %v2232_v59 = vadd.f32 0.5, %v2230_v40  ;;  %v2598_v40 = vld [vmem:[%s3836_s2 + $0x8] sm:$0xff] }
0x1c48   :  { %v2231_v24 = vadd.f32 0.5, %v2229_v50 }
0x1c4a   :  { %v2233_v7 = vmul.f32 %v2231_v24, %v2141_v54 }
0x1cb7   :  { %v2236_v55 = vpop.permute.xlu0 %2235 }
0x1cb8   :  { %v2238_v35 = vmul.f32 %v2236_v55, %v2231_v24 }
0x1cba   :  { %2240 = vrot.lane.b32.xlu1 %v2238_v35, %s3065_s0  ;;  %v2602_v35 = vld [vmem:[%s3836_s2 + $0x28] sm:$0xff] }
0x1d2c   :  { %v2241_v43 = vpop.permute.xlu1 %2240 }
0x1d2d   :  { %v2243_v33 = vadd.f32 %v2241_v43, %v2233_v7  ;;  %v2601_v7 = vld [vmem:[%s3836_s2 + $0x20] sm:$0xff]  ;;  %v2600_v43 = vld [vmem:[%s3836_s2 + $0x18] sm:$0xff] }
0x1d2f   :  { %3003 = vtanh.f32 %v2243_v33 }
0x1d3c   :  { %v3004_v6 = vpop.eup %3003 }
0x1d3d   :  { %2246 = vrot.lane.b32.xlu0 %v3004_v6, %s3065_s0 }
0x1daf   :  { %v2247_v51 = vpop.permute.xlu0 %2246 }
0x1db0   :  { %v2249_v45 = vmul.f32 %v2247_v51, %v2232_v59  ;;  %v2597_v59 = vld [vmem:[%s3836_s2] sm:$0xff] }
0x1db2   :  { %2250 = vst.msk [vmem:[#allocation4 + $0x20] sm:$0xff] %vm432_vm1, %v2249_v45  ;;  %2862 = vmatmul.mubr.msk.f32.vlgmr.msra.gmra.mxu1 %vm432_vm1, %v2249_v45 }
0x1db3   :  { %2475 = vmatpush1.msra.mxu1 %v3451_v15  ;;  %2522 = vmatprep.mubr.f32.mxu1 %v3064_v0 }
0x1db4   :  { %2476 = vmatprep.subr.mxu1 %v3453_v63 }
0x1db5   :  { %2477 = vmatpush1.msra.mxu1 %v3457_v47 }
0x1db6   :  { %2478 = vmatprep.subr.mxu1 %v3464_v21 }
0x1db7   :  { %2479 = vmatpush1.msra.mxu1 %v3469_v26 }
0x1db8   :  { %2480 = vmatprep.subr.mxu1 %v3476_v31 }
0x1db9   :  { %2481 = vmatpush1.msra.mxu1 %v3481_v37  ;;  %v2579_v38 = vld [vmem:[#allocation4 + $0x20] sm:$0xff] }
0x1dba   :  { %2482 = vmatprep.subr.mxu1 %v3488_v49  ;;  %2580 = vst.msk [vmem:[#allocation6 + $0x18] sm:$0xff] %vm1297_vm2, %v2579_v38 }
0x1dbb   :  { %2569 = vst.msk [vmem:[#allocation6 + $0x20] sm:$0xff] %vm432_vm1, %v2579_v38  ;;  %2483 = vmatpush1.msra.mxu1 %v3493_v32 }
0x1dbc   :  { %2582 = vst.msk [vmem:[#allocation6 + $0x20] sm:$0xff] %vm1297_vm2, %v2560_v9  ;;  %2484 = vmatprep.subr.mxu1 %v3500_v34 }
0x1dbd   :  { %2485 = vmatpush1.msra.mxu1 %v3505_v42 }
0x1dbe   :  { %2486 = vmatprep.subr.mxu1 %v3512_v48 }
0x1dbf   :  { %2487 = vmatpush1.msra.mxu1 %v3517_v41 }
0x1dc0   :  { %2488 = vmatprep.subr.mxu1 %v3524_v52 }
0x1dc1   :  { %2489 = vmatpush1.msra.mxu1 %v3529_v30 }
0x1e72   :  { %v2320_v0 = vpop.f32.mrf.mxu1 }
0x1e73   :  { %v2327_v15 = vadd.f32 %v2320_v0, %v3577_v29 }
0x1e74   :  { %v2322_v63 = vpop.f32.mrf.mxu1 }
0x1e75   :  { %v2328_v47 = vadd.f32 %v2322_v63, %v3581_v56 }
0x1e77   :  { %3005 = vtanh.f32 %v2328_v47 }
0x1e78   :  { %3007 = vtanh.f32 %v2327_v15 }
0x1e84   :  { %v3006_v21 = vpop.eup %3005 }
0x1e85   :  { %2337 = vrot.lane.b32.xlu1 %v3006_v21, %s3065_s0  ;;  %v3008_v26 = vpop.eup %3007  ;;  %v2332_v52 = vmul.f32 0.5, %v3006_v21 }
0x1e86   :  { %v2331_v31 = vmul.f32 0.5, %v3008_v26  ;;  %v2592_v26 = vld [vmem:[#allocation6 + $0x18] sm:$0xff] }
0x1e87   :  { %v2334_v30 = vadd.f32 0.5, %v2332_v52 }
0x1e88   :  { %v2333_v37 = vadd.f32 0.5, %v2331_v31  ;;  %v2593_v31 = vld [vmem:[#allocation6 + $0x20] sm:$0xff] }
0x1e8a   :  { %v2335_v34 = vmul.f32 %v2333_v37, %v2243_v33  ;;  %v2599_v33 = vld [vmem:[%s3836_s2 + $0x10] sm:$0xff] }
0x1ef7   :  { %v2338_v49 = vpop.permute.xlu1 %2337 }
0x1ef8   :  { %v2340_v32 = vmul.f32 %v2338_v49, %v2333_v37 }
0x1efa   :  { %2342 = vrot.lane.b32.xlu0 %v2340_v32, %s3065_s0  ;;  %v2865_v32 = vld [vmem:[%s3836_s2 + $0x40] ss:$0 sm:$0xff] }
0x1f6c   :  { %v2343_v42 = vpop.permute.xlu0 %2342 }
0x1f6d   :  { %v2345_v48 = vadd.f32 %v2343_v42, %v2335_v34 }
0x1f6f   :  { %3009 = vtanh.f32 %v2345_v48 }
0x1f7c   :  { %v3010_v41 = vpop.eup %3009 }
0x1f7d   :  { %2348 = vrot.lane.b32.xlu1 %v3010_v41, %s3065_s0 }
0x1fef   :  { %v2349_v29 = vpop.permute.xlu1 %2348 }
0x1ff0   :  { %v2351_v56 = vmul.f32 %v2349_v29, %v2334_v30 }
0x1ff2   :  { %2352 = vst.msk [vmem:[#allocation4 + $0x28] sm:$0xff] %vm432_vm1, %v2351_v56  ;;  %2863 = vmatmul.mubr.msk.f32.vlgmr.msra.gmra.mxu0 %vm432_vm1, %v2351_v56 }
0x1ff9   :  { %v2577_v11 = vld [vmem:[#allocation4 + $0x28] sm:$0xff] }
0x1ffa   :  { %2578 = vst.msk [vmem:[#allocation6 + $0x10] sm:$0xff] %vm1297_vm2, %v2577_v11 }
0x1ffb   :  { %2570 = vst.msk [vmem:[#allocation6 + $0x28] sm:$0xff] %vm432_vm1, %v2577_v11 }
0x1ffc   :  { %2584 = vst.msk [vmem:[#allocation6 + $0x28] sm:$0xff] %vm1297_vm2, %v3658_v12 }
0x2001   :  { %v2591_v21 = vld [vmem:[#allocation6 + $0x10] sm:$0xff] }
0x2003   :  { %v2594_v37 = vld [vmem:[#allocation6 + $0x28] sm:$0xff] }
0x20b2   :  { %v2422_v17 = vpop.f32.mrf.mxu0 }
0x20b3   :  { %v2429_v18 = vadd.f32 %v2422_v17, %v3583_v22 }
0x20b4   :  { %v2424_v13 = vpop.f32.mrf.mxu0 }
0x20b5   :  { %v2430_v16 = vadd.f32 %v2424_v13, %v3585_v28 }
0x20b7   :  { %3011 = vtanh.f32 %v2430_v16 }
0x20b8   :  { %3013 = vtanh.f32 %v2429_v18 }
0x20c4   :  { %v3012_v23 = vpop.eup %3011 }
0x20c5   :  { %2439 = vrot.lane.b32.xlu0 %v3012_v23, %s3065_s0  ;;  %v3014_v25 = vpop.eup %3013  ;;  %v2434_v28 = vmul.f32 0.5, %v3012_v23 }
0x20c6   :  { %v2433_v60 = vmul.f32 0.5, %v3014_v25 }
0x20c7   :  { %v2436_v54 = vadd.f32 0.5, %v2434_v28 }
0x20c8   :  { %v2435_v58 = vadd.f32 0.5, %v2433_v60  ;;  %v2874_v60 = vld [vmem:[%s3836_s2 + $0x41] ss:$0 sm:$0xff] }
0x20ca   :  { %v2437_v2 = vmul.f32 %v2435_v58, %v2345_v48 }
0x2137   :  { %v2440_v3 = vpop.permute.xlu0 %2439 }
0x2138   :  { %v2442_v1 = vmul.f32 %v2440_v3, %v2435_v58 }
0x213a   :  { %2444 = vrot.lane.b32.xlu1 %v2442_v1, %s3065_s0 }
0x21ac   :  { %v2445_v12 = vpop.permute.xlu1 %2444 }
0x21ad   :  { %v2447_v62 = vadd.f32 %v2445_v12, %v2437_v2 }
0x21af   :  { %3015 = vtanh.f32 %v2447_v62 }
0x21bc   :  { %v3016_v22 = vpop.eup %3015 }
0x21bd   :  { %2450 = vrot.lane.b32.xlu0 %v3016_v22, %s3065_s0 }
0x222f   :  { %v2451_v5 = vpop.permute.xlu0 %2450 }
0x2230   :  { %v2453_v39 = vmul.f32 %v2451_v5, %v2436_v54 }
0x2232   :  { %2454 = vst.msk [vmem:[#allocation4 + $0x30] sm:$0xff] %vm432_vm1, %v2453_v39  ;;  %2864 = vmatmul.mubr.msk.f32.vlgmr.msra.gmra.mxu1 %vm432_vm1, %v2453_v39 }
0x2239   :  { %v2575_v19 = vld [vmem:[#allocation4 + $0x30] sm:$0xff] }
0x223a   :  { %2576 = vst.msk [vmem:[#allocation6 + $0x8] sm:$0xff] %vm1297_vm2, %v2575_v19 }
0x223b   :  { %2571 = vst.msk [vmem:[#allocation6 + $0x30] sm:$0xff] %vm432_vm1, %v2575_v19 }
0x223c   :  { %2586 = vst.msk [vmem:[#allocation6 + $0x30] sm:$0xff] %vm1297_vm2, %v3630_v57 }
0x2241   :  { %v2590_v47 = vld [vmem:[#allocation6 + $0x8] sm:$0xff] }
0x2243   :  { %v2595_v49 = vld [vmem:[#allocation6 + $0x30] sm:$0xff] }
0x22f2   :  { %v2524_v27 = vpop.f32.mrf.mxu1 }
0x22f3   :  { %v2531_v10 = vadd.f32 %v2524_v27, %v3587_v4  ;;  %v2604_v4 = vld [vmem:[%s3836_s2 + $0x38] sm:$0xff] }
0x22f4   :  { %v2526_v9 = vpop.f32.mrf.mxu1  ;;  %2892 = vmatprep.subr.mxu0 %v2604_v4 }
0x22f5   :  { %v2532_v8 = vadd.f32 %v2526_v9, %v3589_v14  ;;  %v2603_v14 = vld [vmem:[%s3836_s2 + $0x30] sm:$0xff]  ;;  %2893 = vmatpush3.msra.mxu0 %v2604_v4  ;;  %v2875_v4 = vld [vmem:[%s3836_s2 + $0x42] ss:$0 sm:$0xff] }
0x22f6   :  { %2894 = vmatprep.subr.mxu0 %v2603_v14 }
0x22f7   :  { %3017 = vtanh.f32 %v2532_v8  ;;  %2895 = vmatpush3.msra.mxu0 %v2603_v14 }
0x22f8   :  { %3019 = vtanh.f32 %v2531_v10  ;;  %2896 = vmatprep.subr.mxu0 %v2602_v35 }
0x22f9   :  { %2897 = vmatpush3.msra.mxu0 %v2602_v35 }
0x22fa   :  { %2898 = vmatprep.subr.mxu0 %v2601_v7 }
0x22fb   :  { %2899 = vmatpush3.msra.mxu0 %v2601_v7 }
0x22fc   :  { %2900 = vmatprep.subr.mxu0 %v2600_v43 }
0x22fd   :  { %2901 = vmatpush3.msra.mxu0 %v2600_v43 }
0x22fe   :  { %2902 = vmatprep.subr.mxu0 %v2599_v33 }
0x22ff   :  { %2903 = vmatpush3.msra.mxu0 %v2599_v33 }
0x2300   :  { %2904 = vmatprep.subr.mxu0 %v2598_v40 }
0x2301   :  { %2905 = vmatpush3.msra.mxu0 %v2598_v40 }
0x2302   :  { %2906 = vmatprep.subr.mxu0 %v2597_v59 }
0x2303   :  { %2907 = vmatpush3.msra.mxu0 %v2597_v59 }
0x2304   :  { %v3018_v36 = vpop.eup %3017 }
0x2305   :  { %2541 = vrot.lane.b32.xlu1 %v3018_v36, %s3065_s0  ;;  %v3020_v20 = vpop.eup %3019  ;;  %v2536_v51 = vmul.f32 0.5, %v3018_v36 }
0x2306   :  { %v2535_v61 = vmul.f32 0.5, %v3020_v20 }
0x2307   :  { %v2538_v45 = vadd.f32 0.5, %v2536_v51 }
0x2308   :  { %v2537_v44 = vadd.f32 0.5, %v2535_v61 }
0x230a   :  { %v2539_v24 = vmul.f32 %v2537_v44, %v2447_v62 }
0x2377   :  { %v2542_v53 = vpop.permute.xlu1 %2541 }
0x2378   :  { %v2544_v50 = vmul.f32 %v2542_v53, %v2537_v44 }
0x237a   :  { %2546 = vrot.lane.b32.xlu0 %v2544_v50, %s3065_s0 }
0x23ec   :  { %v2547_v57 = vpop.permute.xlu0 %2546 }
0x23ed   :  { %v2549_v55 = vadd.f32 %v2547_v57, %v2539_v24 }
0x23ef   :  { %3021 = vtanh.f32 %v2549_v55 }
0x23fc   :  { %v3022_v6 = vpop.eup %3021 }
0x23fd   :  { %2552 = vrot.lane.b32.xlu1 %v3022_v6, %s3065_s0 }
0x246f   :  { %v2553_v38 = vpop.permute.xlu1 %2552 }
0x2470   :  { %v2555_v0 = vmul.f32 %v2553_v38, %v2538_v45 }
0x2472   :  { %2556 = vst.msk [vmem:[#allocation4 + $0x38] sm:$0xff] %vm432_vm1, %v2555_v0 }
0x2479   :  { %v2573_v15 = vld [vmem:[#allocation4 + $0x38] sm:$0xff] }
0x247a   :  { %2574 = vst.msk [vmem:[#allocation6] sm:$0xff] %vm1297_vm2, %v2573_v15 }
0x247b   :  { %2572 = vst.msk [vmem:[#allocation6 + $0x38] sm:$0xff] %vm432_vm1, %v2573_v15 }
0x247c   :  { %2588 = vst.msk [vmem:[#allocation6 + $0x38] sm:$0xff] %vm1297_vm2, %v3604_v46 }
0x2481   :  { %v2589_v63 = vld [vmem:[#allocation6] sm:$0xff] }
0x2482   :  { %2908 = vmatprep.mubr.msk.f32.mxu0 %vm432_vm1, %v2589_v63 }
0x2483   :  { %2909 = vmatmul.mubr.msk.f32.vlgmr.msra.gmra.mxu0 %vm432_vm1, %v2590_v47  ;;  %v2596_v46 = vld [vmem:[#allocation6 + $0x38] sm:$0xff] }
0x2484   :  { %2911 = vmatprep.mubr.msk.f32.mxu0 %vm432_vm1, %v2591_v21 }
0x2487   :  { %2912 = vmatmul.mubr.msk.f32.gmra.mxu0 %vm432_vm1, %v2592_v26 }
0x2488   :  { %2914 = vmatprep.mubr.msk.f32.mxu0 %vm432_vm1, %v2593_v31 }
0x248b   :  { %2915 = vmatmul.mubr.msk.f32.gmra.mxu0 %vm432_vm1, %v2594_v37 }
0x248c   :  { %2917 = vmatprep.mubr.msk.f32.mxu0 %vm432_vm1, %v2595_v49 }
0x248f   :  { %2918 = vmatmul.mubr.msk.f32.gmra.mxu0 %vm432_vm1, %v2596_v46 }
0x2543   :  { %v2910_v34 = vpop.f32.mrf.mxu0 }
0x2544   :  { %v2708_v42 = vadd.f32 %v2910_v34, %v2865_v32 }
0x2545   :  { %v2702_v48 = vpop.f32.mrf.mxu0 }
0x2546   :  { %3023 = vtanh.f32 %v2708_v42  ;;  %v2703_v41 = vadd.f32 %v2865_v32, %v2702_v48 }
0x2547   :  { %v2913_v52 = vpop.f32.mrf.mxu0 }
0x2548   :  { %3025 = vtanh.f32 %v2703_v41  ;;  %v2718_v30 = vadd.f32 %v2913_v52, %v2865_v32 }
0x2549   :  { %v2712_v29 = vpop.f32.mrf.mxu0 }
0x254a   :  { %3027 = vtanh.f32 %v2718_v30  ;;  %v2713_v56 = vadd.f32 %v2865_v32, %v2712_v29 }
0x254b   :  { %v2916_v11 = vpop.f32.mrf.mxu0 }
0x254c   :  { %3029 = vtanh.f32 %v2713_v56  ;;  %v2728_v17 = vadd.f32 %v2916_v11, %v2865_v32 }
0x254d   :  { %v2722_v18 = vpop.f32.mrf.mxu0 }
0x254e   :  { %v2723_v13 = vadd.f32 %v2865_v32, %v2722_v18  ;;  %3031 = vtanh.f32 %v2728_v17 }
0x254f   :  { %v2919_v16 = vpop.f32.mrf.mxu0 }
0x2550   :  { %3033 = vtanh.f32 %v2723_v13  ;;  %v2738_v23 = vadd.f32 %v2919_v16, %v2865_v32 }
0x2551   :  { %v2732_v25 = vpop.f32.mrf.mxu0 }
0x2552   :  { %v2733_v58 = vadd.f32 %v2865_v32, %v2732_v25  ;;  %3035 = vtanh.f32 %v2738_v23 }
0x2553   :  { %v3024_v3 = vpop.eup %3023 }
0x2554   :  { %3037 = vtanh.f32 %v2733_v58  ;;  %v2754_v1 = vmul.f32 %v3024_v3, %v2874_v60 }
0x2555   :  { %v3026_v2 = vpop.eup %3025 }
0x2556   :  { %v2765_v12 = vsel %vm2761_vm3, %v2754_v1, 0.0  ;;  %v2753_v62 = vmul.f32 %v3026_v2, %v2874_v60 }
0x2557   :  { %v3028_v22 = vpop.eup %3027  ;;  %2766 = vadd.xlane.f32.xlu1 %v2765_v12 }
0x2558   :  { %v2762_v28 = vsel %vm2761_vm3, %v2753_v62, 0.0  ;;  %v2756_v54 = vmul.f32 %v3028_v22, %v2874_v60 }
0x2559   :  { %v3030_v5 = vpop.eup %3029  ;;  %2763 = vadd.xlane.f32.xlu0 %v2762_v28 }
0x255a   :  { %v2771_v19 = vsel %vm2761_vm3, %v2756_v54, 0.0  ;;  %v2755_v27 = vmul.f32 %v3030_v5, %v2874_v60 }
0x255b   :  { %v3032_v39 = vpop.eup %3031 }
0x255c   :  { %v2768_v20 = vsel %vm2761_vm3, %v2755_v27, 0.0  ;;  %v2758_v61 = vmul.f32 %v3032_v39, %v2874_v60 }
0x255d   :  { %v3034_v10 = vpop.eup %3033  ;;  %2772 = vadd.xlane.f32.xlu0 %v2771_v19 }
0x255e   :  { %v2757_v9 = vmul.f32 %v3034_v10, %v2874_v60  ;;  %v2777_v50 = vsel %vm2761_vm3, %v2758_v61, 0.0 }
0x255f   :  { %v3036_v8 = vpop.eup %3035 }
0x2560   :  { %v2774_v36 = vsel %vm2761_vm3, %v2757_v9, 0.0  ;;  %v2760_v57 = vmul.f32 %v3036_v8, %v2874_v60 }
0x2561   :  { %v3038_v44 = vpop.eup %3037  ;;  %2775 = vadd.xlane.f32.xlu1 %v2774_v36  ;;  %2769 = vadd.xlane.f32.xlu0 %v2768_v20 }
0x2562   :  { %v2759_v53 = vmul.f32 %v3038_v44, %v2874_v60  ;;  %v2783_v55 = vsel %vm2761_vm3, %v2760_v57, 0.0 }
0x2564   :  { %v2780_v24 = vsel %vm2761_vm3, %v2759_v53, 0.0 }
0x2565   :  { %2778 = vadd.xlane.f32.xlu0 %v2777_v50  ;;  %2781 = vadd.xlane.f32.xlu1 %v2780_v24 }
0x2569   :  { %2784 = vadd.xlane.f32.xlu0 %v2783_v55 }
0x25e0   :  { %v2767_v14 = vpop.xlane.xlu1 %2766 }
0x25e1   :  { %v2791_v35 = vadd.f32 %v2875_v4, %v2767_v14 }
0x25e2   :  { %v2764_v7 = vpop.xlane.xlu0 %2763 }
0x25e3   :  { %2800 = vst.msk [vmem:[%s3837_s3 + $0x8] sm:$0xff] %vm2798_vm4, %v2791_v35  ;;  %v2790_v43 = vadd.f32 %v2875_v4, %v2764_v7 }
0x25e5   :  { %2799 = vst.msk [vmem:[%s3837_s3] sm:$0xff] %vm2798_vm4, %v2790_v43 }
0x25e6   :  { %v2773_v33 = vpop.xlane.xlu0 %2772 }
0x25e7   :  { %v2793_v6 = vadd.f32 %v2875_v4, %v2773_v33 }
0x25e9   :  { %2802 = vst.msk [vmem:[%s3837_s3 + $0x18] sm:$0xff] %vm2798_vm4, %v2793_v6 }
0x25ea   :  { %v2776_v40 = vpop.xlane.xlu1 %2775  ;;  %v2770_v59 = vpop.xlane.xlu0 %2769 }
0x25eb   :  { %v2794_v51 = vadd.f32 %v2875_v4, %v2776_v40  ;;  %v2792_v45 = vadd.f32 %v2875_v4, %v2770_v59 }
0x25ed   :  { %2803 = vst.msk [vmem:[%s3837_s3 + $0x20] sm:$0xff] %vm2798_vm4, %v2794_v51  ;;  %2801 = vst.msk [vmem:[%s3837_s3 + $0x10] sm:$0xff] %vm2798_vm4, %v2792_v45 }
0x25ee   :  { %v2779_v38 = vpop.xlane.xlu0 %2778  ;;  %v2782_v0 = vpop.xlane.xlu1 %2781 }
0x25ef   :  { %v2795_v15 = vadd.f32 %v2875_v4, %v2779_v38  ;;  %v2796_v63 = vadd.f32 %v2875_v4, %v2782_v0 }
0x25f1   :  { %2804 = vst.msk [vmem:[%s3837_s3 + $0x28] sm:$0xff] %vm2798_vm4, %v2795_v15  ;;  %2805 = vst.msk [vmem:[%s3837_s3 + $0x30] sm:$0xff] %vm2798_vm4, %v2796_v63 }
0x25f2   :  { %v2785_v47 = vpop.xlane.xlu0 %2784 }
0x25f3   :  { %v2797_v21 = vadd.f32 %v2875_v4, %v2785_v47 }
0x25f5   :  { %2806 = vst.msk [vmem:[%s3837_s3 + $0x38] sm:$0xff] %vm2798_vm4, %v2797_v21 }
0x25f6   :  { %2811 = vsyncpa [#allocation8], 1 }

</bundles_post_ra>
